<compile_context>
chip_gen: v7x
topology: tpu7x:2x2x1
jax: 0.10.0
libtpu: 0.0.40
codegen_flags: <defaults>
</compile_context>

<pallas_src>
import math
import numpy as np

import jax
import jax.numpy as jnp
from jax import lax
from jax.experimental import pallas as pl
from jax.experimental.pallas import tpu as pltpu


# ----------------------------- Pallas kernel --------------------------------
def _make_kernel(H):
    """Build the fused ShapeStream kernel.  All activations use the lane-dense,
    batch-folded (N*H, W*C) layout; H is needed for the 3x3-conv row masks."""

    def kernel(l1_ref, lbr_ref, grad_ref, go_ref,
               sqw_ref, rbw_ref, gaw_ref, brw_ref, brr_ref, bruh_ref,
               bow_ref, bias_ref, out_ref):
        M, WC = l1_ref.shape                  # M = N*H, WC = W*C1
        bf16 = jnp.bfloat16

        def mm(a, b):                         # bf16 MXU matmul, f32 accumulation
            return jnp.dot(a.astype(bf16), b.astype(bf16),
                           preferred_element_type=jnp.float32)

        # Row-boundary masks for the 3x3 convs (hoisted: shared by all 6 convs).
        row = lax.broadcasted_iota(jnp.int32, (M, 1), 0) % H
        ok_up = row > 0                       # row r may read row r-1 of same image
        ok_dn = row < H - 1                   # row r may read row r+1 of same image

        def conv3x3(x, j):
            # One (M, WC) x (WC, 3*WC) matmul covers all three kernel rows; the
            # +/-1 row taps are applied with XLU rolls + VPU boundary masks.
            y = mm(x, rbw_ref[j])
            acc = y[:, WC:2 * WC]                                           # row offset  0
            acc = acc + jnp.where(ok_up,
                                  pltpu.roll(y[:, :WC], shift=1, axis=0), 0.0)      # -1
            acc = acc + jnp.where(ok_dn,
                                  pltpu.roll(y[:, 2 * WC:], shift=M - 1, axis=0), 0.0)  # +1
            return acc + bias_ref[1 + j]

        def res_block(x, i):
            h = jnp.maximum(conv3x3(x, 2 * i), 0.0)
            h = conv3x3(h, 2 * i + 1)
            return jnp.maximum(h + x, 0.0)

        def gated(s, r, i):
            # conv1_att: K-concat [s | r] against the K-stacked (2*WC, WC) weight
            sr = jnp.concatenate([s, r], axis=1)
            alpha = jax.nn.sigmoid(mm(sr, gaw_ref[i]) + bias_ref[7 + i])
            return mm(s * alpha + s, sqw_ref[1 + i]) + bias_ref[10 + i]

        def branch(i):
            # conv1_l3/l4/l5 (1x1+BN+ReLU) then bilinear upsample (two matmuls)
            a = jnp.maximum(mm(lbr_ref[i], brw_ref[i]) + bias_ref[13 + i], 0.0)
            return mm(bruh_ref[i], mm(a, brr_ref[i]))

        # conv1_l1: 1x1 conv + BN + ReLU
        x = jnp.maximum(mm(l1_ref[...], sqw_ref[0]) + bias_ref[0], 0.0)

        # three (ResidualBlock -> GatedConv with upsampled side branch) stages
        for i in range(3):
            x = gated(res_block(x, i), branch(i), i)

        # conv1_out (1x1 + BN, scalar bias from SMEM) -> (M, W)
        out = mm(x, bow_ref[...]) + go_ref[3]
        # conv1_grad_out on cat([out, grad]) == scalar FMA (scalars from SMEM)
        out_grad = out * go_ref[0] + grad_ref[...] * go_ref[1] + go_ref[2]

        # single lane-concatenated store of both output planes
        out_ref[...] = jnp.concatenate([out, out_grad], axis=1).astype(out_ref.dtype)

    return kernel


# ------------------------- one-time weight repacking --------------------------
def _fold_bn(w, b, bn, eps=1e-5):
    """Fold eval-mode BatchNorm into the preceding conv weight / bias (OIHW)."""
    gamma, beta, mean, var = bn
    scale = gamma / jnp.sqrt(var + eps)
    return w * scale[:, None, None, None], (b - mean) * scale + beta


def _blockdiag(w2d, width):
    """1x1 conv weight (Cout, Cin) -> block-diag (width*Cin, width*Cout)."""
    return jnp.kron(jnp.eye(width, dtype=jnp.float32), w2d.T)


def _band3x3_wide(w, width):
    """3x3 conv weight (Cout, Cin, 3, 3) -> (width*Cin, 3*width*Cout): the three
    kernel-row bands (ky = 0,1,2 <-> row offset -1,0,+1) concatenated along the
    output axis so the whole conv is ONE matmul; width zero-padding is encoded
    in the banded structure."""
    cout, cin = w.shape[0], w.shape[1]
    bands = []
    for ky in range(3):
        m = jnp.zeros((width * cin, width * cout), jnp.float32)
        for kx in range(3):
            shift = jnp.eye(width, k=-(kx - 1), dtype=jnp.float32)
            m = m + jnp.kron(shift, w[:, :, ky, kx].T)
        bands.append(m)
    return jnp.concatenate(bands, axis=1)


def _tile_bias(b, width):
    return jnp.tile(b, width)[None, :]          # (1, width*Cout)


def _upsample_matrix(n_out, n_in):
    """Bilinear interpolation matrix, align_corners=True (UpsamplingBilinear2d)."""
    U = np.zeros((n_out, n_in), dtype=np.float32)
    if n_in == 1:
        U[:, 0] = 1.0
        return jnp.asarray(U)
    for i in range(n_out):
        src = i * (n_in - 1) / (n_out - 1)
        lo = int(math.floor(src))
        hi = min(lo + 1, n_in - 1)
        frac = src - lo
        U[i, lo] += 1.0 - frac
        U[i, hi] += frac
    return jnp.asarray(U)


def make_shape_stream(params, l1_shape, l3_shape, l4_shape, l5_shape):
    """One-time weight repacking -> jitted fused forward(l1, l3, l4, l5, grad)."""
    f32, bf16 = jnp.float32, jnp.bfloat16
    N, c1, H, W = l1_shape
    WC = W * c1
    M = N * H
    p = params

    def fold(pp):
        return _fold_bn(pp["w"], pp["b"], pp["bn"])

    # conv1_l1
    w, b = fold(p["conv1_l1"])
    sq_w = [_blockdiag(w[:, :, 0, 0], W)]                     # SQ_W[0]
    biases = [_tile_bias(b, W)]                               # BIAS[0]

    # residual blocks -> wide band matrices (one matmul per 3x3 conv)
    rb_w = []
    zero_b = jnp.zeros((c1,), f32)
    for blk in p["res"]:
        w1, b1 = _fold_bn(blk["w1"], zero_b, blk["bn1"])
        w2, b2 = _fold_bn(blk["w2"], zero_b, blk["bn2"])
        rb_w += [_band3x3_wide(w1, W), _band3x3_wide(w2, W)]
        biases += [_tile_bias(b1, W), _tile_bias(b2, W)]      # BIAS[1..6]
    RB_W = jnp.stack(rb_w)                                    # (6, WC, 3*WC)

    # gated convs: conv1_att weight K-stacked over [s | r]; conv1_weight square
    ga_w, ga_b, gg_b = [], [], []
    for g in p["gate"]:
        wa, ba = _fold_bn(g["wa"], g["ba"], g["bna"])
        wa = wa[:, :, 0, 0]                                   # (c1, 2*c1): [s | r]
        ga_w.append(jnp.concatenate([_blockdiag(wa[:, :c1], W),
                                     _blockdiag(wa[:, c1:], W)], axis=0))
        sq_w.append(_blockdiag(g["wg"][:, :, 0, 0], W))       # SQ_W[1..3]
        ga_b.append(_tile_bias(ba, W))
        gg_b.append(_tile_bias(g["bg"], W))
    GA_W = jnp.stack(ga_w)                                    # (3, 2*WC, WC)
    SQ_W = jnp.stack(sq_w)                                    # (4, WC, WC)
    biases += ga_b + gg_b                                     # BIAS[7..9], [10..12]

    # low-res branches: 1x1+BN+ReLU then separable bilinear upsample, padded to a
    # common (h_pad, wcbi) shape and stacked (padded rows/cols contribute zero).
    bshapes = [l3_shape, l4_shape, l5_shape]
    bkeys = ["conv1_l3", "conv1_l4", "conv1_l5"]
    h_pad = max(s[2] for s in bshapes)
    wcbi = max(s[1] * s[3] for s in bshapes)                  # max c_i * w_i
    br_w, br_r, br_uh = [], [], []
    eye_c1 = jnp.eye(c1, dtype=f32)
    eye_n = jnp.eye(N, dtype=f32)
    for (_, ci, hi, wi), key in zip(bshapes, bkeys):
        wf, bf_ = fold(p[key])
        Bi = _blockdiag(wf[:, :, 0, 0], wi)                   # (wi*ci, wi*c1)
        br_w.append(jnp.pad(Bi, ((0, wcbi - wi * ci), (0, WC - wi * c1))))
        biases.append(jnp.pad(_tile_bias(bf_, wi), ((0, 0), (0, WC - wi * c1))))
        Ri = jnp.kron(_upsample_matrix(W, wi).T, eye_c1)      # (wi*c1, WC)
        br_r.append(jnp.pad(Ri, ((0, WC - wi * c1), (0, 0))))
        Uhi = jnp.pad(_upsample_matrix(H, hi), ((0, 0), (0, h_pad - hi)))
        br_uh.append(jnp.kron(eye_n, Uhi))                    # batch block-diag
    BR_W = jnp.stack(br_w)                                    # (3, wcbi, WC)
    BR_R = jnp.stack(br_r)                                    # (3, WC, WC)
    BR_UH = jnp.stack(br_uh)                                  # (3, N*H, N*h_pad)
    BIAS = jnp.stack(biases)                                  # (16, 1, WC) f32

    # conv1_out (single output channel) + conv1_grad_out -> (WC, W) + 4 SMEM scalars
    wo, bo = fold(p["conv1_out"])
    B_OUT = _blockdiag(wo[:, :, 0, 0], W)                     # (WC, W)
    wg, bg = fold(p["conv1_grad_out"])
    GO_grad = jnp.concatenate([wg[0, :, 0, 0], bg, bo]).astype(f32)          # (4,)
    GO_none = jnp.concatenate([jnp.array([1.0, 0.0, 0.0], f32), bo.astype(f32)])

    # bf16 weight storage (half the DMA, bf16 MXU rate); biases/scalars stay f32.
    SQ_W, RB_W, GA_W = SQ_W.astype(bf16), RB_W.astype(bf16), GA_W.astype(bf16)
    BR_W, BR_R, BR_UH = BR_W.astype(bf16), BR_R.astype(bf16), BR_UH.astype(bf16)
    B_OUT = B_OUT.astype(bf16)

    # TODO(synk): the (W*C)^2 band/block-diag representation scales quadratically in
    # W*C; at large GSCNN resolutions tile the band matmuls over a grid axis (and on
    # v7x split the batch over a 2-long "parallel" grid axis to use both TensorCores).
    vmem = pl.BlockSpec(memory_space=pltpu.MemorySpace.VMEM)
    smem = pl.BlockSpec(memory_space=pltpu.MemorySpace.SMEM)
    call = pl.pallas_call(
        _make_kernel(H),
        out_shape=jax.ShapeDtypeStruct((M, 2 * W), f32),
        in_specs=[vmem, vmem, vmem, smem] + [vmem] * 8,
        out_specs=vmem,
        compiler_params=pltpu.CompilerParams(vmem_limit_bytes=32 * 1024 * 1024),
    )

    @jax.jit
    def _run(l1, l3, l4, l5, grad_plane, go):
        # activation packing: NCHW -> lane-dense, batch-folded (N*H, W*C)
        l1p = jnp.transpose(l1.astype(f32), (0, 2, 3, 1)).reshape(M, WC)
        lbr = []
        for x, (_, ci, hi, wi) in zip((l3, l4, l5), bshapes):
            xp = jnp.transpose(x.astype(f32), (0, 2, 3, 1)).reshape(N, hi, wi * ci)
            xp = jnp.pad(xp, ((0, 0), (0, h_pad - hi), (0, wcbi - wi * ci)))
            lbr.append(xp.reshape(N * h_pad, wcbi))
        lbr = jnp.stack(lbr)
        y = call(l1p, lbr, grad_plane.reshape(M, W), go,
                 SQ_W, RB_W, GA_W, BR_W, BR_R, BR_UH, B_OUT, BIAS)
        return y[:, :W].reshape(N, 1, H, W), y[:, W:].reshape(N, 1, H, W)

    def forward(l1, l3, l4, l5, grad=None):
        if grad is None:
            return _run(l1, l3, l4, l5, jnp.zeros((N, H, W), f32), GO_none)
        return _run(l1, l3, l4, l5, grad.astype(f32).reshape(N, H, W), GO_grad)

    return forward


# ------------------------------ parameter init --------------------------------
def init_params(key, c1, c3, c4, c5):
    keys = iter(jax.random.split(key, 128))

    def conv(cout, cin, k, bias=True):
        k1, k2 = next(keys), next(keys)
        bound = 1.0 / math.sqrt(cin * k * k)
        w = jax.random.uniform(k1, (cout, cin, k, k), jnp.float32, -bound, bound)
        b = (jax.random.uniform(k2, (cout,), jnp.float32, -bound, bound)
             if bias else None)
        return w, b

    def bn(c):
        k1, k2, k3, k4 = next(keys), next(keys), next(keys), next(keys)
        return (jax.random.uniform(k1, (c,), jnp.float32, 0.5, 1.5),
                jax.random.uniform(k2, (c,), jnp.float32, -0.2, 0.2),
                0.2 * jax.random.normal(k3, (c,), jnp.float32),
                jax.random.uniform(k4, (c,), jnp.float32, 0.5, 1.5))

    p = {}
    w, b = conv(c1, c1, 1); p["conv1_l1"] = {"w": w, "b": b, "bn": bn(c1)}
    w, b = conv(c1, c3, 1); p["conv1_l3"] = {"w": w, "b": b, "bn": bn(c1)}
    w, b = conv(c1, c4, 1); p["conv1_l4"] = {"w": w, "b": b, "bn": bn(c1)}
    w, b = conv(c1, c5, 1); p["conv1_l5"] = {"w": w, "b": b, "bn": bn(c1)}
    res = []
    for _ in range(3):
        w1, _ = conv(c1, c1, 3, bias=False)
        w2, _ = conv(c1, c1, 3, bias=False)
        res.append({"w1": w1, "bn1": bn(c1), "w2": w2, "bn2": bn(c1)})
    p["res"] = res
    gate = []
    for _ in range(3):
        wa, ba = conv(c1, 2 * c1, 1)
        wg, bg = conv(c1, c1, 1)
        gate.append({"wa": wa, "ba": ba, "bna": bn(c1), "wg": wg, "bg": bg})
    p["gate"] = gate
    w, b = conv(1, c1, 1); p["conv1_out"] = {"w": w, "b": b, "bn": bn(1)}
    w, b = conv(1, 2, 1); p["conv1_grad_out"] = {"w": w, "b": b, "bn": bn(1)}
    return p


# ------------------------------ pure-JAX reference ----------------------------
def _conv2d(x, w, b=None, padding=0):
    dn = lax.conv_dimension_numbers(x.shape, w.shape, ("NCHW", "OIHW", "NCHW"))
    y = lax.conv_general_dilated(x, w, (1, 1),
                                 [(padding, padding), (padding, padding)],
                                 dimension_numbers=dn,
                                 precision=lax.Precision.HIGHEST)
    if b is not None:
        y = y + b[None, :, None, None]
    return y


def _bn_eval(x, bn, eps=1e-5):
    gamma, beta, mean, var = bn
    scale = gamma / jnp.sqrt(var + eps)
    return x * scale[None, :, None, None] + (beta - mean * scale)[None, :, None, None]


def _convbn_ref(x, pp, act, padding=0):
    y = _bn_eval(_conv2d(x, pp["w"], pp["b"], padding), pp["bn"])
    return jnp.maximum(y, 0.0) if act else y


def _res_block_ref(x, blk):
    h = jnp.maximum(_bn_eval(_conv2d(x, blk["w1"], None, 1), blk["bn1"]), 0.0)
    h = _bn_eval(_conv2d(h, blk["w2"], None, 1), blk["bn2"])
    return jnp.maximum(h + x, 0.0)


def _gated_ref(s, r, g):
    a = jax.nn.sigmoid(_bn_eval(_conv2d(jnp.concatenate([s, r], axis=1),
                                        g["wa"], g["ba"]), g["bna"]))
    s = s * a + s
    return _conv2d(s, g["wg"], g["bg"])


def _upsample_ref(x, Uh, Uw):
    return jnp.einsum("Hh,nchw,Ww->ncHW", Uh, x, Uw, precision=lax.Precision.HIGHEST)


def shape_stream_reference(l1, l3, l4, l5, grad, params):
    H, W = l1.shape[2], l1.shape[3]
    p = params
    x = _convbn_ref(l1, p["conv1_l1"], act=True)
    r3 = _upsample_ref(_convbn_ref(l3, p["conv1_l3"], act=True),
                       _upsample_matrix(H, l3.shape[2]), _upsample_matrix(W, l3.shape[3]))
    r4 = _upsample_ref(_convbn_ref(l4, p["conv1_l4"], act=True),
                       _upsample_matrix(H, l4.shape[2]), _upsample_matrix(W, l4.shape[3]))
    r5 = _upsample_ref(_convbn_ref(l5, p["conv1_l5"], act=True),
                       _upsample_matrix(H, l5.shape[2]), _upsample_matrix(W, l5.shape[3]))
    x = _gated_ref(_res_block_ref(x, p["res"][0]), r3, p["gate"][0])
    x = _gated_ref(_res_block_ref(x, p["res"][1]), r4, p["gate"][1])
    x = _gated_ref(_res_block_ref(x, p["res"][2]), r5, p["gate"][2])
    out = _convbn_ref(x, p["conv1_out"], act=False)
    if grad is None:
        og = out
    else:
        og = _convbn_ref(jnp.concatenate([out, grad], axis=1),
                         p["conv1_grad_out"], act=False)
    return out, og


if __name__ == "__main__":
    # ShapeStream(l1_in=8, l3_in=16, l4_in=32, l5_in=64); l1 at 16x16,
    # l3 at 8x8, l4 at 4x4, l5 at 2x2 (so W*C == 128 lanes), batch 2.
    N, C1, C3, C4, C5, H, W = 2, 8, 16, 32, 64, 16, 16

    key = jax.random.PRNGKey(0)
    kl1, kl3, kl4, kl5, kg, kp = jax.random.split(key, 6)
    l1 = jax.random.normal(kl1, (N, C1, H, W), jnp.float32)
    l3 = jax.random.normal(kl3, (N, C3, H // 2, W // 2), jnp.float32)
    l4 = jax.random.normal(kl4, (N, C4, H // 4, W // 4), jnp.float32)
    l5 = jax.random.normal(kl5, (N, C5, H // 8, W // 8), jnp.float32)
    grad = jax.random.normal(kg, (N, 1, H, W), jnp.float32)
    params = init_params(kp, C1, C3, C4, C5)

    forward = make_shape_stream(params, l1.shape, l3.shape, l4.shape, l5.shape)
    out, out_grad = jax.block_until_ready(forward(l1, l3, l4, l5, grad))
    ref_out, ref_og = shape_stream_reference(l1, l3, l4, l5, grad, params)

    assert out.shape == (N, 1, H, W), out.shape
    assert out_grad.shape == (N, 1, H, W), out_grad.shape
    # bf16 weights/activations with f32 accumulation: ~1e-2 relative error is
    # expected after ~13 sequential matmul stages; tolerance set accordingly.
    err = max(float(jnp.max(jnp.abs(out - ref_out))),
              float(jnp.max(jnp.abs(out_grad - ref_og))))
    assert jnp.allclose(out, ref_out, rtol=5e-2, atol=5e-2), err
    assert jnp.allclose(out_grad, ref_og, rtol=5e-2, atol=5e-2), err
    print("KERNEL_OK")
</pallas_src>

<mosaic_0001>
module attributes {stable_mosaic.version = 11 : i64} {
  func.func @kernel(%arg0: memref<32x128xf32, #tpu.memory_space<vmem>>, %arg1: memref<3x16x128xf32, #tpu.memory_space<vmem>>, %arg2: memref<32x16xf32, #tpu.memory_space<vmem>>, %arg3: memref<4xf32, #tpu.memory_space<smem>>, %arg4: memref<4x128x128xbf16, #tpu.memory_space<vmem>>, %arg5: memref<6x128x384xbf16, #tpu.memory_space<vmem>>, %arg6: memref<3x256x128xbf16, #tpu.memory_space<vmem>>, %arg7: memref<3x128x128xbf16, #tpu.memory_space<vmem>>, %arg8: memref<3x128x128xbf16, #tpu.memory_space<vmem>>, %arg9: memref<3x32x16xbf16, #tpu.memory_space<vmem>>, %arg10: memref<128x16xbf16, #tpu.memory_space<vmem>>, %arg11: memref<16x1x128xf32, #tpu.memory_space<vmem>>, %arg12: memref<32x32xf32, #tpu.memory_space<vmem>>) attributes {dimension_semantics = [], scalar_prefetch = 0 : i64, scratch_operands = 0 : i64, tpu.core_type = #tpu.core_type<tc>} {
    %0 = tpu.iota {dimensions = array<i32: 0>} : vector<32x1xi32>
    %c16_i32 = arith.constant 16 : i32
    %c0_i32 = arith.constant 0 : i32
    %1 = arith.cmpi eq, %c16_i32, %c0_i32 : i32
    %c1_i32 = arith.constant 1 : i32
    %2 = arith.select %1, %c1_i32, %c16_i32 : i32
    %3 = vector.broadcast %2 : i32 to vector<32x1xi32>
    %4 = arith.remsi %0, %3 : vector<32x1xi32>
    %c0_i32_0 = arith.constant 0 : i32
    %5 = vector.broadcast %c0_i32_0 : i32 to vector<32x1xi32>
    %6 = arith.cmpi ne, %4, %5 : vector<32x1xi32>
    %c0_i32_1 = arith.constant 0 : i32
    %7 = vector.broadcast %c0_i32_1 : i32 to vector<32x1xi32>
    %8 = arith.cmpi slt, %4, %7 : vector<32x1xi32>
    %c0_i32_2 = arith.constant 0 : i32
    %9 = arith.cmpi slt, %2, %c0_i32_2 : i32
    %10 = vector.broadcast %9 : i1 to vector<32x1xi1>
    %11 = vector.broadcast %10 : vector<32x1xi1> to vector<32x1xi1>
    %12 = arith.xori %8, %11 : vector<32x1xi1>
    %13 = arith.andi %12, %6 : vector<32x1xi1>
    %14 = vector.broadcast %2 : i32 to vector<32x1xi32>
    %15 = arith.addi %4, %14 : vector<32x1xi32>
    %16 = arith.select %13, %15, %4 : vector<32x1xi1>, vector<32x1xi32>
    %c0_i32_3 = arith.constant 0 : i32
    %17 = vector.broadcast %c0_i32_3 : i32 to vector<32x1xi32>
    %18 = arith.cmpi sgt, %16, %17 : vector<32x1xi32>
    %c15_i32 = arith.constant 15 : i32
    %19 = vector.broadcast %c15_i32 : i32 to vector<32x1xi32>
    %20 = arith.cmpi slt, %16, %19 : vector<32x1xi32>
    %c0 = arith.constant 0 : index
    %c0_4 = arith.constant 0 : index
    %21 = vector.load %arg0[%c0, %c0_4] : memref<32x128xf32, #tpu.memory_space<vmem>>, vector<32x128xf32>
    %c0_5 = arith.constant 0 : index
    %c0_6 = arith.constant 0 : index
    %c0_7 = arith.constant 0 : index
    %22 = vector.load %arg4[%c0_5, %c0_6, %c0_7] : memref<4x128x128xbf16, #tpu.memory_space<vmem>>, vector<1x128x128xbf16>
    %23 = vector.shape_cast %22 : vector<1x128x128xbf16> to vector<128x128xbf16>
    %24 = arith.truncf %21 : vector<32x128xf32> to vector<32x128xbf16>
    %cst = arith.constant dense<0.000000e+00> : vector<32x128xf32>
    %25 = tpu.matmul %24, %23, %cst {dimension_numbers = #tpu.dot_dimension_numbers<[1], [0], [0], [1], [0, 0, 1, 1], [], []>} : vector<32x128xbf16>, vector<128x128xbf16>, vector<32x128xf32> -> vector<32x128xf32>
    %c0_8 = arith.constant 0 : index
    %c0_9 = arith.constant 0 : index
    %c0_10 = arith.constant 0 : index
    %26 = vector.load %arg11[%c0_8, %c0_9, %c0_10] : memref<16x1x128xf32, #tpu.memory_space<vmem>>, vector<1x1x128xf32>
    %27 = vector.shape_cast %26 : vector<1x1x128xf32> to vector<1x128xf32>
    %28 = vector.broadcast %27 : vector<1x128xf32> to vector<32x128xf32>
    %29 = arith.addf %25, %28 : vector<32x128xf32>
    %cst_11 = arith.constant 0.000000e+00 : f32
    %30 = vector.broadcast %cst_11 : f32 to vector<32x128xf32>
    %31 = arith.maximumf %29, %30 : vector<32x128xf32>
    %c0_12 = arith.constant 0 : index
    %c0_13 = arith.constant 0 : index
    %c0_14 = arith.constant 0 : index
    %32 = vector.load %arg5[%c0_12, %c0_13, %c0_14] : memref<6x128x384xbf16, #tpu.memory_space<vmem>>, vector<1x128x384xbf16>
    %33 = vector.shape_cast %32 : vector<1x128x384xbf16> to vector<128x384xbf16>
    %34 = arith.truncf %31 : vector<32x128xf32> to vector<32x128xbf16>
    %cst_15 = arith.constant dense<0.000000e+00> : vector<32x384xf32>
    %35 = tpu.matmul %34, %33, %cst_15 {dimension_numbers = #tpu.dot_dimension_numbers<[1], [0], [0], [1], [0, 0, 1, 1], [], []>} : vector<32x128xbf16>, vector<128x384xbf16>, vector<32x384xf32> -> vector<32x384xf32>
    %36 = vector.extract_strided_slice %35 {offsets = [0, 128], sizes = [32, 128], strides = [1, 1]} : vector<32x384xf32> to vector<32x128xf32>
    %37 = vector.extract_strided_slice %35 {offsets = [0, 0], sizes = [32, 128], strides = [1, 1]} : vector<32x384xf32> to vector<32x128xf32>
    %c1_i32_16 = arith.constant 1 : i32
    %38 = tpu.dynamic_rotate %37 by %c1_i32_16 dim 0 : vector<32x128xf32>, i32 -> vector<32x128xf32>
    %cst_17 = arith.constant 0.000000e+00 : f32
    %39 = vector.shape_cast %18 : vector<32x1xi1> to vector<32x1xi1>
    %40 = vector.broadcast %39 : vector<32x1xi1> to vector<32x128xi1>
    %41 = vector.broadcast %cst_17 : f32 to vector<32x128xf32>
    %42 = arith.select %40, %38, %41 : vector<32x128xi1>, vector<32x128xf32>
    %43 = arith.addf %36, %42 : vector<32x128xf32>
    %44 = vector.extract_strided_slice %35 {offsets = [0, 256], sizes = [32, 128], strides = [1, 1]} : vector<32x384xf32> to vector<32x128xf32>
    %c31_i32 = arith.constant 31 : i32
    %45 = tpu.dynamic_rotate %44 by %c31_i32 dim 0 : vector<32x128xf32>, i32 -> vector<32x128xf32>
    %cst_18 = arith.constant 0.000000e+00 : f32
    %46 = vector.shape_cast %20 : vector<32x1xi1> to vector<32x1xi1>
    %47 = vector.broadcast %46 : vector<32x1xi1> to vector<32x128xi1>
    %48 = vector.broadcast %cst_18 : f32 to vector<32x128xf32>
    %49 = arith.select %47, %45, %48 : vector<32x128xi1>, vector<32x128xf32>
    %50 = arith.addf %43, %49 : vector<32x128xf32>
    %c1 = arith.constant 1 : index
    %c0_19 = arith.constant 0 : index
    %c0_20 = arith.constant 0 : index
    %51 = vector.load %arg11[%c1, %c0_19, %c0_20] : memref<16x1x128xf32, #tpu.memory_space<vmem>>, vector<1x1x128xf32>
    %52 = vector.shape_cast %51 : vector<1x1x128xf32> to vector<1x128xf32>
    %53 = vector.broadcast %52 : vector<1x128xf32> to vector<32x128xf32>
    %54 = arith.addf %50, %53 : vector<32x128xf32>
    %cst_21 = arith.constant 0.000000e+00 : f32
    %55 = vector.broadcast %cst_21 : f32 to vector<32x128xf32>
    %56 = arith.maximumf %54, %55 : vector<32x128xf32>
    %c1_22 = arith.constant 1 : index
    %c0_23 = arith.constant 0 : index
    %c0_24 = arith.constant 0 : index
    %57 = vector.load %arg5[%c1_22, %c0_23, %c0_24] : memref<6x128x384xbf16, #tpu.memory_space<vmem>>, vector<1x128x384xbf16>
    %58 = vector.shape_cast %57 : vector<1x128x384xbf16> to vector<128x384xbf16>
    %59 = arith.truncf %56 : vector<32x128xf32> to vector<32x128xbf16>
    %cst_25 = arith.constant dense<0.000000e+00> : vector<32x384xf32>
    %60 = tpu.matmul %59, %58, %cst_25 {dimension_numbers = #tpu.dot_dimension_numbers<[1], [0], [0], [1], [0, 0, 1, 1], [], []>} : vector<32x128xbf16>, vector<128x384xbf16>, vector<32x384xf32> -> vector<32x384xf32>
    %61 = vector.extract_strided_slice %60 {offsets = [0, 128], sizes = [32, 128], strides = [1, 1]} : vector<32x384xf32> to vector<32x128xf32>
    %62 = vector.extract_strided_slice %60 {offsets = [0, 0], sizes = [32, 128], strides = [1, 1]} : vector<32x384xf32> to vector<32x128xf32>
    %c1_i32_26 = arith.constant 1 : i32
    %63 = tpu.dynamic_rotate %62 by %c1_i32_26 dim 0 : vector<32x128xf32>, i32 -> vector<32x128xf32>
    %cst_27 = arith.constant 0.000000e+00 : f32
    %64 = vector.shape_cast %18 : vector<32x1xi1> to vector<32x1xi1>
    %65 = vector.broadcast %64 : vector<32x1xi1> to vector<32x128xi1>
    %66 = vector.broadcast %cst_27 : f32 to vector<32x128xf32>
    %67 = arith.select %65, %63, %66 : vector<32x128xi1>, vector<32x128xf32>
    %68 = arith.addf %61, %67 : vector<32x128xf32>
    %69 = vector.extract_strided_slice %60 {offsets = [0, 256], sizes = [32, 128], strides = [1, 1]} : vector<32x384xf32> to vector<32x128xf32>
    %c31_i32_28 = arith.constant 31 : i32
    %70 = tpu.dynamic_rotate %69 by %c31_i32_28 dim 0 : vector<32x128xf32>, i32 -> vector<32x128xf32>
    %cst_29 = arith.constant 0.000000e+00 : f32
    %71 = vector.shape_cast %20 : vector<32x1xi1> to vector<32x1xi1>
    %72 = vector.broadcast %71 : vector<32x1xi1> to vector<32x128xi1>
    %73 = vector.broadcast %cst_29 : f32 to vector<32x128xf32>
    %74 = arith.select %72, %70, %73 : vector<32x128xi1>, vector<32x128xf32>
    %75 = arith.addf %68, %74 : vector<32x128xf32>
    %c2 = arith.constant 2 : index
    %c0_30 = arith.constant 0 : index
    %c0_31 = arith.constant 0 : index
    %76 = vector.load %arg11[%c2, %c0_30, %c0_31] : memref<16x1x128xf32, #tpu.memory_space<vmem>>, vector<1x1x128xf32>
    %77 = vector.shape_cast %76 : vector<1x1x128xf32> to vector<1x128xf32>
    %78 = vector.broadcast %77 : vector<1x128xf32> to vector<32x128xf32>
    %79 = arith.addf %75, %78 : vector<32x128xf32>
    %80 = arith.addf %79, %31 : vector<32x128xf32>
    %cst_32 = arith.constant 0.000000e+00 : f32
    %81 = vector.broadcast %cst_32 : f32 to vector<32x128xf32>
    %82 = arith.maximumf %80, %81 : vector<32x128xf32>
    %c0_33 = arith.constant 0 : index
    %c0_34 = arith.constant 0 : index
    %c0_35 = arith.constant 0 : index
    %83 = vector.load %arg1[%c0_33, %c0_34, %c0_35] : memref<3x16x128xf32, #tpu.memory_space<vmem>>, vector<1x16x128xf32>
    %84 = vector.shape_cast %83 : vector<1x16x128xf32> to vector<16x128xf32>
    %c0_36 = arith.constant 0 : index
    %c0_37 = arith.constant 0 : index
    %c0_38 = arith.constant 0 : index
    %85 = vector.load %arg7[%c0_36, %c0_37, %c0_38] : memref<3x128x128xbf16, #tpu.memory_space<vmem>>, vector<1x128x128xbf16>
    %86 = vector.shape_cast %85 : vector<1x128x128xbf16> to vector<128x128xbf16>
    %87 = arith.truncf %84 : vector<16x128xf32> to vector<16x128xbf16>
    %cst_39 = arith.constant dense<0.000000e+00> : vector<16x128xf32>
    %88 = tpu.matmul %87, %86, %cst_39 {dimension_numbers = #tpu.dot_dimension_numbers<[1], [0], [0], [1], [0, 0, 1, 1], [], []>} : vector<16x128xbf16>, vector<128x128xbf16>, vector<16x128xf32> -> vector<16x128xf32>
    %c13 = arith.constant 13 : index
    %c0_40 = arith.constant 0 : index
    %c0_41 = arith.constant 0 : index
    %89 = vector.load %arg11[%c13, %c0_40, %c0_41] : memref<16x1x128xf32, #tpu.memory_space<vmem>>, vector<1x1x128xf32>
    %90 = vector.shape_cast %89 : vector<1x1x128xf32> to vector<1x128xf32>
    %91 = vector.broadcast %90 : vector<1x128xf32> to vector<16x128xf32>
    %92 = arith.addf %88, %91 : vector<16x128xf32>
    %cst_42 = arith.constant 0.000000e+00 : f32
    %93 = vector.broadcast %cst_42 : f32 to vector<16x128xf32>
    %94 = arith.maximumf %92, %93 : vector<16x128xf32>
    %c0_43 = arith.constant 0 : index
    %c0_44 = arith.constant 0 : index
    %c0_45 = arith.constant 0 : index
    %95 = vector.load %arg9[%c0_43, %c0_44, %c0_45] : memref<3x32x16xbf16, #tpu.memory_space<vmem>>, vector<1x32x16xbf16>
    %96 = vector.shape_cast %95 : vector<1x32x16xbf16> to vector<32x16xbf16>
    %c0_46 = arith.constant 0 : index
    %c0_47 = arith.constant 0 : index
    %c0_48 = arith.constant 0 : index
    %97 = vector.load %arg8[%c0_46, %c0_47, %c0_48] : memref<3x128x128xbf16, #tpu.memory_space<vmem>>, vector<1x128x128xbf16>
    %98 = vector.shape_cast %97 : vector<1x128x128xbf16> to vector<128x128xbf16>
    %99 = arith.truncf %94 : vector<16x128xf32> to vector<16x128xbf16>
    %cst_49 = arith.constant dense<0.000000e+00> : vector<16x128xf32>
    %100 = tpu.matmul %99, %98, %cst_49 {dimension_numbers = #tpu.dot_dimension_numbers<[1], [0], [0], [1], [0, 0, 1, 1], [], []>} : vector<16x128xbf16>, vector<128x128xbf16>, vector<16x128xf32> -> vector<16x128xf32>
    %101 = arith.truncf %100 : vector<16x128xf32> to vector<16x128xbf16>
    %cst_50 = arith.constant dense<0.000000e+00> : vector<32x128xf32>
    %102 = tpu.matmul %96, %101, %cst_50 {dimension_numbers = #tpu.dot_dimension_numbers<[1], [0], [0], [1], [0, 0, 1, 1], [], []>} : vector<32x16xbf16>, vector<16x128xbf16>, vector<32x128xf32> -> vector<32x128xf32>
    %103 = tpu.concatenate %82, %102 in 1 : vector<32x128xf32>, vector<32x128xf32> -> vector<32x256xf32>
    %c0_51 = arith.constant 0 : index
    %c0_52 = arith.constant 0 : index
    %c0_53 = arith.constant 0 : index
    %104 = vector.load %arg6[%c0_51, %c0_52, %c0_53] : memref<3x256x128xbf16, #tpu.memory_space<vmem>>, vector<1x256x128xbf16>
    %105 = vector.shape_cast %104 : vector<1x256x128xbf16> to vector<256x128xbf16>
    %106 = arith.truncf %103 : vector<32x256xf32> to vector<32x256xbf16>
    %cst_54 = arith.constant dense<0.000000e+00> : vector<32x128xf32>
    %107 = tpu.matmul %106, %105, %cst_54 {dimension_numbers = #tpu.dot_dimension_numbers<[1], [0], [0], [1], [0, 0, 1, 1], [], []>} : vector<32x256xbf16>, vector<256x128xbf16>, vector<32x128xf32> -> vector<32x128xf32>
    %c7 = arith.constant 7 : index
    %c0_55 = arith.constant 0 : index
    %c0_56 = arith.constant 0 : index
    %108 = vector.load %arg11[%c7, %c0_55, %c0_56] : memref<16x1x128xf32, #tpu.memory_space<vmem>>, vector<1x1x128xf32>
    %109 = vector.shape_cast %108 : vector<1x1x128xf32> to vector<1x128xf32>
    %110 = vector.broadcast %109 : vector<1x128xf32> to vector<32x128xf32>
    %111 = arith.addf %107, %110 : vector<32x128xf32>
    %112 = arith.negf %111 : vector<32x128xf32>
    %113 = math.exp %112 : vector<32x128xf32>
    %cst_57 = arith.constant 1.000000e+00 : f32
    %114 = vector.broadcast %cst_57 : f32 to vector<32x128xf32>
    %115 = arith.addf %114, %113 : vector<32x128xf32>
    %116 = arith.divf %114, %115 : vector<32x128xf32>
    %117 = arith.mulf %82, %116 : vector<32x128xf32>
    %118 = arith.addf %117, %82 : vector<32x128xf32>
    %c1_58 = arith.constant 1 : index
    %c0_59 = arith.constant 0 : index
    %c0_60 = arith.constant 0 : index
    %119 = vector.load %arg4[%c1_58, %c0_59, %c0_60] : memref<4x128x128xbf16, #tpu.memory_space<vmem>>, vector<1x128x128xbf16>
    %120 = vector.shape_cast %119 : vector<1x128x128xbf16> to vector<128x128xbf16>
    %121 = arith.truncf %118 : vector<32x128xf32> to vector<32x128xbf16>
    %cst_61 = arith.constant dense<0.000000e+00> : vector<32x128xf32>
    %122 = tpu.matmul %121, %120, %cst_61 {dimension_numbers = #tpu.dot_dimension_numbers<[1], [0], [0], [1], [0, 0, 1, 1], [], []>} : vector<32x128xbf16>, vector<128x128xbf16>, vector<32x128xf32> -> vector<32x128xf32>
    %c10 = arith.constant 10 : index
    %c0_62 = arith.constant 0 : index
    %c0_63 = arith.constant 0 : index
    %123 = vector.load %arg11[%c10, %c0_62, %c0_63] : memref<16x1x128xf32, #tpu.memory_space<vmem>>, vector<1x1x128xf32>
    %124 = vector.shape_cast %123 : vector<1x1x128xf32> to vector<1x128xf32>
    %125 = vector.broadcast %124 : vector<1x128xf32> to vector<32x128xf32>
    %126 = arith.addf %122, %125 : vector<32x128xf32>
    %c2_64 = arith.constant 2 : index
    %c0_65 = arith.constant 0 : index
    %c0_66 = arith.constant 0 : index
    %127 = vector.load %arg5[%c2_64, %c0_65, %c0_66] : memref<6x128x384xbf16, #tpu.memory_space<vmem>>, vector<1x128x384xbf16>
    %128 = vector.shape_cast %127 : vector<1x128x384xbf16> to vector<128x384xbf16>
    %129 = arith.truncf %126 : vector<32x128xf32> to vector<32x128xbf16>
    %cst_67 = arith.constant dense<0.000000e+00> : vector<32x384xf32>
    %130 = tpu.matmul %129, %128, %cst_67 {dimension_numbers = #tpu.dot_dimension_numbers<[1], [0], [0], [1], [0, 0, 1, 1], [], []>} : vector<32x128xbf16>, vector<128x384xbf16>, vector<32x384xf32> -> vector<32x384xf32>
    %131 = vector.extract_strided_slice %130 {offsets = [0, 128], sizes = [32, 128], strides = [1, 1]} : vector<32x384xf32> to vector<32x128xf32>
    %132 = vector.extract_strided_slice %130 {offsets = [0, 0], sizes = [32, 128], strides = [1, 1]} : vector<32x384xf32> to vector<32x128xf32>
    %c1_i32_68 = arith.constant 1 : i32
    %133 = tpu.dynamic_rotate %132 by %c1_i32_68 dim 0 : vector<32x128xf32>, i32 -> vector<32x128xf32>
    %cst_69 = arith.constant 0.000000e+00 : f32
    %134 = vector.shape_cast %18 : vector<32x1xi1> to vector<32x1xi1>
    %135 = vector.broadcast %134 : vector<32x1xi1> to vector<32x128xi1>
    %136 = vector.broadcast %cst_69 : f32 to vector<32x128xf32>
    %137 = arith.select %135, %133, %136 : vector<32x128xi1>, vector<32x128xf32>
    %138 = arith.addf %131, %137 : vector<32x128xf32>
    %139 = vector.extract_strided_slice %130 {offsets = [0, 256], sizes = [32, 128], strides = [1, 1]} : vector<32x384xf32> to vector<32x128xf32>
    %c31_i32_70 = arith.constant 31 : i32
    %140 = tpu.dynamic_rotate %139 by %c31_i32_70 dim 0 : vector<32x128xf32>, i32 -> vector<32x128xf32>
    %cst_71 = arith.constant 0.000000e+00 : f32
    %141 = vector.shape_cast %20 : vector<32x1xi1> to vector<32x1xi1>
    %142 = vector.broadcast %141 : vector<32x1xi1> to vector<32x128xi1>
    %143 = vector.broadcast %cst_71 : f32 to vector<32x128xf32>
    %144 = arith.select %142, %140, %143 : vector<32x128xi1>, vector<32x128xf32>
    %145 = arith.addf %138, %144 : vector<32x128xf32>
    %c3 = arith.constant 3 : index
    %c0_72 = arith.constant 0 : index
    %c0_73 = arith.constant 0 : index
    %146 = vector.load %arg11[%c3, %c0_72, %c0_73] : memref<16x1x128xf32, #tpu.memory_space<vmem>>, vector<1x1x128xf32>
    %147 = vector.shape_cast %146 : vector<1x1x128xf32> to vector<1x128xf32>
    %148 = vector.broadcast %147 : vector<1x128xf32> to vector<32x128xf32>
    %149 = arith.addf %145, %148 : vector<32x128xf32>
    %cst_74 = arith.constant 0.000000e+00 : f32
    %150 = vector.broadcast %cst_74 : f32 to vector<32x128xf32>
    %151 = arith.maximumf %149, %150 : vector<32x128xf32>
    %c3_75 = arith.constant 3 : index
    %c0_76 = arith.constant 0 : index
    %c0_77 = arith.constant 0 : index
    %152 = vector.load %arg5[%c3_75, %c0_76, %c0_77] : memref<6x128x384xbf16, #tpu.memory_space<vmem>>, vector<1x128x384xbf16>
    %153 = vector.shape_cast %152 : vector<1x128x384xbf16> to vector<128x384xbf16>
    %154 = arith.truncf %151 : vector<32x128xf32> to vector<32x128xbf16>
    %cst_78 = arith.constant dense<0.000000e+00> : vector<32x384xf32>
    %155 = tpu.matmul %154, %153, %cst_78 {dimension_numbers = #tpu.dot_dimension_numbers<[1], [0], [0], [1], [0, 0, 1, 1], [], []>} : vector<32x128xbf16>, vector<128x384xbf16>, vector<32x384xf32> -> vector<32x384xf32>
    %156 = vector.extract_strided_slice %155 {offsets = [0, 128], sizes = [32, 128], strides = [1, 1]} : vector<32x384xf32> to vector<32x128xf32>
    %157 = vector.extract_strided_slice %155 {offsets = [0, 0], sizes = [32, 128], strides = [1, 1]} : vector<32x384xf32> to vector<32x128xf32>
    %c1_i32_79 = arith.constant 1 : i32
    %158 = tpu.dynamic_rotate %157 by %c1_i32_79 dim 0 : vector<32x128xf32>, i32 -> vector<32x128xf32>
    %cst_80 = arith.constant 0.000000e+00 : f32
    %159 = vector.shape_cast %18 : vector<32x1xi1> to vector<32x1xi1>
    %160 = vector.broadcast %159 : vector<32x1xi1> to vector<32x128xi1>
    %161 = vector.broadcast %cst_80 : f32 to vector<32x128xf32>
    %162 = arith.select %160, %158, %161 : vector<32x128xi1>, vector<32x128xf32>
    %163 = arith.addf %156, %162 : vector<32x128xf32>
    %164 = vector.extract_strided_slice %155 {offsets = [0, 256], sizes = [32, 128], strides = [1, 1]} : vector<32x384xf32> to vector<32x128xf32>
    %c31_i32_81 = arith.constant 31 : i32
    %165 = tpu.dynamic_rotate %164 by %c31_i32_81 dim 0 : vector<32x128xf32>, i32 -> vector<32x128xf32>
    %cst_82 = arith.constant 0.000000e+00 : f32
    %166 = vector.shape_cast %20 : vector<32x1xi1> to vector<32x1xi1>
    %167 = vector.broadcast %166 : vector<32x1xi1> to vector<32x128xi1>
    %168 = vector.broadcast %cst_82 : f32 to vector<32x128xf32>
    %169 = arith.select %167, %165, %168 : vector<32x128xi1>, vector<32x128xf32>
    %170 = arith.addf %163, %169 : vector<32x128xf32>
    %c4 = arith.constant 4 : index
    %c0_83 = arith.constant 0 : index
    %c0_84 = arith.constant 0 : index
    %171 = vector.load %arg11[%c4, %c0_83, %c0_84] : memref<16x1x128xf32, #tpu.memory_space<vmem>>, vector<1x1x128xf32>
    %172 = vector.shape_cast %171 : vector<1x1x128xf32> to vector<1x128xf32>
    %173 = vector.broadcast %172 : vector<1x128xf32> to vector<32x128xf32>
    %174 = arith.addf %170, %173 : vector<32x128xf32>
    %175 = arith.addf %174, %126 : vector<32x128xf32>
    %cst_85 = arith.constant 0.000000e+00 : f32
    %176 = vector.broadcast %cst_85 : f32 to vector<32x128xf32>
    %177 = arith.maximumf %175, %176 : vector<32x128xf32>
    %c1_86 = arith.constant 1 : index
    %c0_87 = arith.constant 0 : index
    %c0_88 = arith.constant 0 : index
    %178 = vector.load %arg1[%c1_86, %c0_87, %c0_88] : memref<3x16x128xf32, #tpu.memory_space<vmem>>, vector<1x16x128xf32>
    %179 = vector.shape_cast %178 : vector<1x16x128xf32> to vector<16x128xf32>
    %c1_89 = arith.constant 1 : index
    %c0_90 = arith.constant 0 : index
    %c0_91 = arith.constant 0 : index
    %180 = vector.load %arg7[%c1_89, %c0_90, %c0_91] : memref<3x128x128xbf16, #tpu.memory_space<vmem>>, vector<1x128x128xbf16>
    %181 = vector.shape_cast %180 : vector<1x128x128xbf16> to vector<128x128xbf16>
    %182 = arith.truncf %179 : vector<16x128xf32> to vector<16x128xbf16>
    %cst_92 = arith.constant dense<0.000000e+00> : vector<16x128xf32>
    %183 = tpu.matmul %182, %181, %cst_92 {dimension_numbers = #tpu.dot_dimension_numbers<[1], [0], [0], [1], [0, 0, 1, 1], [], []>} : vector<16x128xbf16>, vector<128x128xbf16>, vector<16x128xf32> -> vector<16x128xf32>
    %c14 = arith.constant 14 : index
    %c0_93 = arith.constant 0 : index
    %c0_94 = arith.constant 0 : index
    %184 = vector.load %arg11[%c14, %c0_93, %c0_94] : memref<16x1x128xf32, #tpu.memory_space<vmem>>, vector<1x1x128xf32>
    %185 = vector.shape_cast %184 : vector<1x1x128xf32> to vector<1x128xf32>
    %186 = vector.broadcast %185 : vector<1x128xf32> to vector<16x128xf32>
    %187 = arith.addf %183, %186 : vector<16x128xf32>
    %cst_95 = arith.constant 0.000000e+00 : f32
    %188 = vector.broadcast %cst_95 : f32 to vector<16x128xf32>
    %189 = arith.maximumf %187, %188 : vector<16x128xf32>
    %c1_96 = arith.constant 1 : index
    %c0_97 = arith.constant 0 : index
    %c0_98 = arith.constant 0 : index
    %190 = vector.load %arg9[%c1_96, %c0_97, %c0_98] : memref<3x32x16xbf16, #tpu.memory_space<vmem>>, vector<1x32x16xbf16>
    %191 = vector.shape_cast %190 : vector<1x32x16xbf16> to vector<32x16xbf16>
    %c1_99 = arith.constant 1 : index
    %c0_100 = arith.constant 0 : index
    %c0_101 = arith.constant 0 : index
    %192 = vector.load %arg8[%c1_99, %c0_100, %c0_101] : memref<3x128x128xbf16, #tpu.memory_space<vmem>>, vector<1x128x128xbf16>
    %193 = vector.shape_cast %192 : vector<1x128x128xbf16> to vector<128x128xbf16>
    %194 = arith.truncf %189 : vector<16x128xf32> to vector<16x128xbf16>
    %cst_102 = arith.constant dense<0.000000e+00> : vector<16x128xf32>
    %195 = tpu.matmul %194, %193, %cst_102 {dimension_numbers = #tpu.dot_dimension_numbers<[1], [0], [0], [1], [0, 0, 1, 1], [], []>} : vector<16x128xbf16>, vector<128x128xbf16>, vector<16x128xf32> -> vector<16x128xf32>
    %196 = arith.truncf %195 : vector<16x128xf32> to vector<16x128xbf16>
    %cst_103 = arith.constant dense<0.000000e+00> : vector<32x128xf32>
    %197 = tpu.matmul %191, %196, %cst_103 {dimension_numbers = #tpu.dot_dimension_numbers<[1], [0], [0], [1], [0, 0, 1, 1], [], []>} : vector<32x16xbf16>, vector<16x128xbf16>, vector<32x128xf32> -> vector<32x128xf32>
    %198 = tpu.concatenate %177, %197 in 1 : vector<32x128xf32>, vector<32x128xf32> -> vector<32x256xf32>
    %c1_104 = arith.constant 1 : index
    %c0_105 = arith.constant 0 : index
    %c0_106 = arith.constant 0 : index
    %199 = vector.load %arg6[%c1_104, %c0_105, %c0_106] : memref<3x256x128xbf16, #tpu.memory_space<vmem>>, vector<1x256x128xbf16>
    %200 = vector.shape_cast %199 : vector<1x256x128xbf16> to vector<256x128xbf16>
    %201 = arith.truncf %198 : vector<32x256xf32> to vector<32x256xbf16>
    %cst_107 = arith.constant dense<0.000000e+00> : vector<32x128xf32>
    %202 = tpu.matmul %201, %200, %cst_107 {dimension_numbers = #tpu.dot_dimension_numbers<[1], [0], [0], [1], [0, 0, 1, 1], [], []>} : vector<32x256xbf16>, vector<256x128xbf16>, vector<32x128xf32> -> vector<32x128xf32>
    %c8 = arith.constant 8 : index
    %c0_108 = arith.constant 0 : index
    %c0_109 = arith.constant 0 : index
    %203 = vector.load %arg11[%c8, %c0_108, %c0_109] : memref<16x1x128xf32, #tpu.memory_space<vmem>>, vector<1x1x128xf32>
    %204 = vector.shape_cast %203 : vector<1x1x128xf32> to vector<1x128xf32>
    %205 = vector.broadcast %204 : vector<1x128xf32> to vector<32x128xf32>
    %206 = arith.addf %202, %205 : vector<32x128xf32>
    %207 = arith.negf %206 : vector<32x128xf32>
    %208 = math.exp %207 : vector<32x128xf32>
    %cst_110 = arith.constant 1.000000e+00 : f32
    %209 = vector.broadcast %cst_110 : f32 to vector<32x128xf32>
    %210 = arith.addf %209, %208 : vector<32x128xf32>
    %211 = arith.divf %209, %210 : vector<32x128xf32>
    %212 = arith.mulf %177, %211 : vector<32x128xf32>
    %213 = arith.addf %212, %177 : vector<32x128xf32>
    %c2_111 = arith.constant 2 : index
    %c0_112 = arith.constant 0 : index
    %c0_113 = arith.constant 0 : index
    %214 = vector.load %arg4[%c2_111, %c0_112, %c0_113] : memref<4x128x128xbf16, #tpu.memory_space<vmem>>, vector<1x128x128xbf16>
    %215 = vector.shape_cast %214 : vector<1x128x128xbf16> to vector<128x128xbf16>
    %216 = arith.truncf %213 : vector<32x128xf32> to vector<32x128xbf16>
    %cst_114 = arith.constant dense<0.000000e+00> : vector<32x128xf32>
    %217 = tpu.matmul %216, %215, %cst_114 {dimension_numbers = #tpu.dot_dimension_numbers<[1], [0], [0], [1], [0, 0, 1, 1], [], []>} : vector<32x128xbf16>, vector<128x128xbf16>, vector<32x128xf32> -> vector<32x128xf32>
    %c11 = arith.constant 11 : index
    %c0_115 = arith.constant 0 : index
    %c0_116 = arith.constant 0 : index
    %218 = vector.load %arg11[%c11, %c0_115, %c0_116] : memref<16x1x128xf32, #tpu.memory_space<vmem>>, vector<1x1x128xf32>
    %219 = vector.shape_cast %218 : vector<1x1x128xf32> to vector<1x128xf32>
    %220 = vector.broadcast %219 : vector<1x128xf32> to vector<32x128xf32>
    %221 = arith.addf %217, %220 : vector<32x128xf32>
    %c4_117 = arith.constant 4 : index
    %c0_118 = arith.constant 0 : index
    %c0_119 = arith.constant 0 : index
    %222 = vector.load %arg5[%c4_117, %c0_118, %c0_119] : memref<6x128x384xbf16, #tpu.memory_space<vmem>>, vector<1x128x384xbf16>
    %223 = vector.shape_cast %222 : vector<1x128x384xbf16> to vector<128x384xbf16>
    %224 = arith.truncf %221 : vector<32x128xf32> to vector<32x128xbf16>
    %cst_120 = arith.constant dense<0.000000e+00> : vector<32x384xf32>
    %225 = tpu.matmul %224, %223, %cst_120 {dimension_numbers = #tpu.dot_dimension_numbers<[1], [0], [0], [1], [0, 0, 1, 1], [], []>} : vector<32x128xbf16>, vector<128x384xbf16>, vector<32x384xf32> -> vector<32x384xf32>
    %226 = vector.extract_strided_slice %225 {offsets = [0, 128], sizes = [32, 128], strides = [1, 1]} : vector<32x384xf32> to vector<32x128xf32>
    %227 = vector.extract_strided_slice %225 {offsets = [0, 0], sizes = [32, 128], strides = [1, 1]} : vector<32x384xf32> to vector<32x128xf32>
    %c1_i32_121 = arith.constant 1 : i32
    %228 = tpu.dynamic_rotate %227 by %c1_i32_121 dim 0 : vector<32x128xf32>, i32 -> vector<32x128xf32>
    %cst_122 = arith.constant 0.000000e+00 : f32
    %229 = vector.shape_cast %18 : vector<32x1xi1> to vector<32x1xi1>
    %230 = vector.broadcast %229 : vector<32x1xi1> to vector<32x128xi1>
    %231 = vector.broadcast %cst_122 : f32 to vector<32x128xf32>
    %232 = arith.select %230, %228, %231 : vector<32x128xi1>, vector<32x128xf32>
    %233 = arith.addf %226, %232 : vector<32x128xf32>
    %234 = vector.extract_strided_slice %225 {offsets = [0, 256], sizes = [32, 128], strides = [1, 1]} : vector<32x384xf32> to vector<32x128xf32>
    %c31_i32_123 = arith.constant 31 : i32
    %235 = tpu.dynamic_rotate %234 by %c31_i32_123 dim 0 : vector<32x128xf32>, i32 -> vector<32x128xf32>
    %cst_124 = arith.constant 0.000000e+00 : f32
    %236 = vector.shape_cast %20 : vector<32x1xi1> to vector<32x1xi1>
    %237 = vector.broadcast %236 : vector<32x1xi1> to vector<32x128xi1>
    %238 = vector.broadcast %cst_124 : f32 to vector<32x128xf32>
    %239 = arith.select %237, %235, %238 : vector<32x128xi1>, vector<32x128xf32>
    %240 = arith.addf %233, %239 : vector<32x128xf32>
    %c5 = arith.constant 5 : index
    %c0_125 = arith.constant 0 : index
    %c0_126 = arith.constant 0 : index
    %241 = vector.load %arg11[%c5, %c0_125, %c0_126] : memref<16x1x128xf32, #tpu.memory_space<vmem>>, vector<1x1x128xf32>
    %242 = vector.shape_cast %241 : vector<1x1x128xf32> to vector<1x128xf32>
    %243 = vector.broadcast %242 : vector<1x128xf32> to vector<32x128xf32>
    %244 = arith.addf %240, %243 : vector<32x128xf32>
    %cst_127 = arith.constant 0.000000e+00 : f32
    %245 = vector.broadcast %cst_127 : f32 to vector<32x128xf32>
    %246 = arith.maximumf %244, %245 : vector<32x128xf32>
    %c5_128 = arith.constant 5 : index
    %c0_129 = arith.constant 0 : index
    %c0_130 = arith.constant 0 : index
    %247 = vector.load %arg5[%c5_128, %c0_129, %c0_130] : memref<6x128x384xbf16, #tpu.memory_space<vmem>>, vector<1x128x384xbf16>
    %248 = vector.shape_cast %247 : vector<1x128x384xbf16> to vector<128x384xbf16>
    %249 = arith.truncf %246 : vector<32x128xf32> to vector<32x128xbf16>
    %cst_131 = arith.constant dense<0.000000e+00> : vector<32x384xf32>
    %250 = tpu.matmul %249, %248, %cst_131 {dimension_numbers = #tpu.dot_dimension_numbers<[1], [0], [0], [1], [0, 0, 1, 1], [], []>} : vector<32x128xbf16>, vector<128x384xbf16>, vector<32x384xf32> -> vector<32x384xf32>
    %251 = vector.extract_strided_slice %250 {offsets = [0, 128], sizes = [32, 128], strides = [1, 1]} : vector<32x384xf32> to vector<32x128xf32>
    %252 = vector.extract_strided_slice %250 {offsets = [0, 0], sizes = [32, 128], strides = [1, 1]} : vector<32x384xf32> to vector<32x128xf32>
    %c1_i32_132 = arith.constant 1 : i32
    %253 = tpu.dynamic_rotate %252 by %c1_i32_132 dim 0 : vector<32x128xf32>, i32 -> vector<32x128xf32>
    %cst_133 = arith.constant 0.000000e+00 : f32
    %254 = vector.shape_cast %18 : vector<32x1xi1> to vector<32x1xi1>
    %255 = vector.broadcast %254 : vector<32x1xi1> to vector<32x128xi1>
    %256 = vector.broadcast %cst_133 : f32 to vector<32x128xf32>
    %257 = arith.select %255, %253, %256 : vector<32x128xi1>, vector<32x128xf32>
    %258 = arith.addf %251, %257 : vector<32x128xf32>
    %259 = vector.extract_strided_slice %250 {offsets = [0, 256], sizes = [32, 128], strides = [1, 1]} : vector<32x384xf32> to vector<32x128xf32>
    %c31_i32_134 = arith.constant 31 : i32
    %260 = tpu.dynamic_rotate %259 by %c31_i32_134 dim 0 : vector<32x128xf32>, i32 -> vector<32x128xf32>
    %cst_135 = arith.constant 0.000000e+00 : f32
    %261 = vector.shape_cast %20 : vector<32x1xi1> to vector<32x1xi1>
    %262 = vector.broadcast %261 : vector<32x1xi1> to vector<32x128xi1>
    %263 = vector.broadcast %cst_135 : f32 to vector<32x128xf32>
    %264 = arith.select %262, %260, %263 : vector<32x128xi1>, vector<32x128xf32>
    %265 = arith.addf %258, %264 : vector<32x128xf32>
    %c6 = arith.constant 6 : index
    %c0_136 = arith.constant 0 : index
    %c0_137 = arith.constant 0 : index
    %266 = vector.load %arg11[%c6, %c0_136, %c0_137] : memref<16x1x128xf32, #tpu.memory_space<vmem>>, vector<1x1x128xf32>
    %267 = vector.shape_cast %266 : vector<1x1x128xf32> to vector<1x128xf32>
    %268 = vector.broadcast %267 : vector<1x128xf32> to vector<32x128xf32>
    %269 = arith.addf %265, %268 : vector<32x128xf32>
    %270 = arith.addf %269, %221 : vector<32x128xf32>
    %cst_138 = arith.constant 0.000000e+00 : f32
    %271 = vector.broadcast %cst_138 : f32 to vector<32x128xf32>
    %272 = arith.maximumf %270, %271 : vector<32x128xf32>
    %c2_139 = arith.constant 2 : index
    %c0_140 = arith.constant 0 : index
    %c0_141 = arith.constant 0 : index
    %273 = vector.load %arg1[%c2_139, %c0_140, %c0_141] : memref<3x16x128xf32, #tpu.memory_space<vmem>>, vector<1x16x128xf32>
    %274 = vector.shape_cast %273 : vector<1x16x128xf32> to vector<16x128xf32>
    %c2_142 = arith.constant 2 : index
    %c0_143 = arith.constant 0 : index
    %c0_144 = arith.constant 0 : index
    %275 = vector.load %arg7[%c2_142, %c0_143, %c0_144] : memref<3x128x128xbf16, #tpu.memory_space<vmem>>, vector<1x128x128xbf16>
    %276 = vector.shape_cast %275 : vector<1x128x128xbf16> to vector<128x128xbf16>
    %277 = arith.truncf %274 : vector<16x128xf32> to vector<16x128xbf16>
    %cst_145 = arith.constant dense<0.000000e+00> : vector<16x128xf32>
    %278 = tpu.matmul %277, %276, %cst_145 {dimension_numbers = #tpu.dot_dimension_numbers<[1], [0], [0], [1], [0, 0, 1, 1], [], []>} : vector<16x128xbf16>, vector<128x128xbf16>, vector<16x128xf32> -> vector<16x128xf32>
    %c15 = arith.constant 15 : index
    %c0_146 = arith.constant 0 : index
    %c0_147 = arith.constant 0 : index
    %279 = vector.load %arg11[%c15, %c0_146, %c0_147] : memref<16x1x128xf32, #tpu.memory_space<vmem>>, vector<1x1x128xf32>
    %280 = vector.shape_cast %279 : vector<1x1x128xf32> to vector<1x128xf32>
    %281 = vector.broadcast %280 : vector<1x128xf32> to vector<16x128xf32>
    %282 = arith.addf %278, %281 : vector<16x128xf32>
    %cst_148 = arith.constant 0.000000e+00 : f32
    %283 = vector.broadcast %cst_148 : f32 to vector<16x128xf32>
    %284 = arith.maximumf %282, %283 : vector<16x128xf32>
    %c2_149 = arith.constant 2 : index
    %c0_150 = arith.constant 0 : index
    %c0_151 = arith.constant 0 : index
    %285 = vector.load %arg9[%c2_149, %c0_150, %c0_151] : memref<3x32x16xbf16, #tpu.memory_space<vmem>>, vector<1x32x16xbf16>
    %286 = vector.shape_cast %285 : vector<1x32x16xbf16> to vector<32x16xbf16>
    %c2_152 = arith.constant 2 : index
    %c0_153 = arith.constant 0 : index
    %c0_154 = arith.constant 0 : index
    %287 = vector.load %arg8[%c2_152, %c0_153, %c0_154] : memref<3x128x128xbf16, #tpu.memory_space<vmem>>, vector<1x128x128xbf16>
    %288 = vector.shape_cast %287 : vector<1x128x128xbf16> to vector<128x128xbf16>
    %289 = arith.truncf %284 : vector<16x128xf32> to vector<16x128xbf16>
    %cst_155 = arith.constant dense<0.000000e+00> : vector<16x128xf32>
    %290 = tpu.matmul %289, %288, %cst_155 {dimension_numbers = #tpu.dot_dimension_numbers<[1], [0], [0], [1], [0, 0, 1, 1], [], []>} : vector<16x128xbf16>, vector<128x128xbf16>, vector<16x128xf32> -> vector<16x128xf32>
    %291 = arith.truncf %290 : vector<16x128xf32> to vector<16x128xbf16>
    %cst_156 = arith.constant dense<0.000000e+00> : vector<32x128xf32>
    %292 = tpu.matmul %286, %291, %cst_156 {dimension_numbers = #tpu.dot_dimension_numbers<[1], [0], [0], [1], [0, 0, 1, 1], [], []>} : vector<32x16xbf16>, vector<16x128xbf16>, vector<32x128xf32> -> vector<32x128xf32>
    %293 = tpu.concatenate %272, %292 in 1 : vector<32x128xf32>, vector<32x128xf32> -> vector<32x256xf32>
    %c2_157 = arith.constant 2 : index
    %c0_158 = arith.constant 0 : index
    %c0_159 = arith.constant 0 : index
    %294 = vector.load %arg6[%c2_157, %c0_158, %c0_159] : memref<3x256x128xbf16, #tpu.memory_space<vmem>>, vector<1x256x128xbf16>
    %295 = vector.shape_cast %294 : vector<1x256x128xbf16> to vector<256x128xbf16>
    %296 = arith.truncf %293 : vector<32x256xf32> to vector<32x256xbf16>
    %cst_160 = arith.constant dense<0.000000e+00> : vector<32x128xf32>
    %297 = tpu.matmul %296, %295, %cst_160 {dimension_numbers = #tpu.dot_dimension_numbers<[1], [0], [0], [1], [0, 0, 1, 1], [], []>} : vector<32x256xbf16>, vector<256x128xbf16>, vector<32x128xf32> -> vector<32x128xf32>
    %c9 = arith.constant 9 : index
    %c0_161 = arith.constant 0 : index
    %c0_162 = arith.constant 0 : index
    %298 = vector.load %arg11[%c9, %c0_161, %c0_162] : memref<16x1x128xf32, #tpu.memory_space<vmem>>, vector<1x1x128xf32>
    %299 = vector.shape_cast %298 : vector<1x1x128xf32> to vector<1x128xf32>
    %300 = vector.broadcast %299 : vector<1x128xf32> to vector<32x128xf32>
    %301 = arith.addf %297, %300 : vector<32x128xf32>
    %302 = arith.negf %301 : vector<32x128xf32>
    %303 = math.exp %302 : vector<32x128xf32>
    %cst_163 = arith.constant 1.000000e+00 : f32
    %304 = vector.broadcast %cst_163 : f32 to vector<32x128xf32>
    %305 = arith.addf %304, %303 : vector<32x128xf32>
    %306 = arith.divf %304, %305 : vector<32x128xf32>
    %307 = arith.mulf %272, %306 : vector<32x128xf32>
    %308 = arith.addf %307, %272 : vector<32x128xf32>
    %c3_164 = arith.constant 3 : index
    %c0_165 = arith.constant 0 : index
    %c0_166 = arith.constant 0 : index
    %309 = vector.load %arg4[%c3_164, %c0_165, %c0_166] : memref<4x128x128xbf16, #tpu.memory_space<vmem>>, vector<1x128x128xbf16>
    %310 = vector.shape_cast %309 : vector<1x128x128xbf16> to vector<128x128xbf16>
    %311 = arith.truncf %308 : vector<32x128xf32> to vector<32x128xbf16>
    %cst_167 = arith.constant dense<0.000000e+00> : vector<32x128xf32>
    %312 = tpu.matmul %311, %310, %cst_167 {dimension_numbers = #tpu.dot_dimension_numbers<[1], [0], [0], [1], [0, 0, 1, 1], [], []>} : vector<32x128xbf16>, vector<128x128xbf16>, vector<32x128xf32> -> vector<32x128xf32>
    %c12 = arith.constant 12 : index
    %c0_168 = arith.constant 0 : index
    %c0_169 = arith.constant 0 : index
    %313 = vector.load %arg11[%c12, %c0_168, %c0_169] : memref<16x1x128xf32, #tpu.memory_space<vmem>>, vector<1x1x128xf32>
    %314 = vector.shape_cast %313 : vector<1x1x128xf32> to vector<1x128xf32>
    %315 = vector.broadcast %314 : vector<1x128xf32> to vector<32x128xf32>
    %316 = arith.addf %312, %315 : vector<32x128xf32>
    %c0_170 = arith.constant 0 : index
    %c0_171 = arith.constant 0 : index
    %317 = vector.load %arg10[%c0_170, %c0_171] : memref<128x16xbf16, #tpu.memory_space<vmem>>, vector<128x16xbf16>
    %318 = arith.truncf %316 : vector<32x128xf32> to vector<32x128xbf16>
    %cst_172 = arith.constant dense<0.000000e+00> : vector<32x16xf32>
    %319 = tpu.matmul %318, %317, %cst_172 {dimension_numbers = #tpu.dot_dimension_numbers<[1], [0], [0], [1], [0, 0, 1, 1], [], []>} : vector<32x128xbf16>, vector<128x16xbf16>, vector<32x16xf32> -> vector<32x16xf32>
    %c3_173 = arith.constant 3 : index
    %320 = memref.load %arg3[%c3_173] : memref<4xf32, #tpu.memory_space<smem>>
    %321 = vector.broadcast %320 : f32 to vector<32x16xf32>
    %322 = arith.addf %319, %321 : vector<32x16xf32>
    %c0_174 = arith.constant 0 : index
    %323 = memref.load %arg3[%c0_174] : memref<4xf32, #tpu.memory_space<smem>>
    %324 = vector.broadcast %323 : f32 to vector<32x16xf32>
    %325 = arith.mulf %322, %324 : vector<32x16xf32>
    %c0_175 = arith.constant 0 : index
    %c0_176 = arith.constant 0 : index
    %326 = vector.load %arg2[%c0_175, %c0_176] : memref<32x16xf32, #tpu.memory_space<vmem>>, vector<32x16xf32>
    %c1_177 = arith.constant 1 : index
    %327 = memref.load %arg3[%c1_177] : memref<4xf32, #tpu.memory_space<smem>>
    %328 = vector.broadcast %327 : f32 to vector<32x16xf32>
    %329 = arith.mulf %326, %328 : vector<32x16xf32>
    %330 = arith.addf %325, %329 : vector<32x16xf32>
    %c2_178 = arith.constant 2 : index
    %331 = memref.load %arg3[%c2_178] : memref<4xf32, #tpu.memory_space<smem>>
    %332 = vector.broadcast %331 : f32 to vector<32x16xf32>
    %333 = arith.addf %330, %332 : vector<32x16xf32>
    %334 = tpu.concatenate %322, %333 in 1 : vector<32x16xf32>, vector<32x16xf32> -> vector<32x32xf32>
    %c0_179 = arith.constant 0 : index
    %c0_180 = arith.constant 0 : index
    %335 = vector.load %arg12[%c0_179, %c0_180] : memref<32x32xf32, #tpu.memory_space<vmem>>, vector<32x32xf32>
    tpu.vector_store %arg12[%c0_179, %c0_180], %334 {strides = array<i32>} : memref<32x32xf32, #tpu.memory_space<vmem>>, vector<32x32xf32>,
    return
  }
}

</mosaic_0001>

<bundles_post_ra>
// kernel: _run.1
= control target key start
LH: loop header
LB: loop body
LE: loop exit
PB: predicated region body
PF: predicated region fallthrough
CT: control target
= control target key end

     0   :  { %17 = vsyncpa [#allocation3], 0  ;;  %s7394_s0 = inlined_call_operand.vmem [shape: f32[32,128], index: 0, kind: input, shape index: {}]   ;;  %s7395_s1 = inlined_call_operand.vmem [shape: f32[3,16,128], index: 1, kind: input, shape index: {}]   ;;  %s7396_s2 = inlined_call_operand.vmem [shape: f32[32,16], index: 2, kind: input, shape index: {}]   ;;  %s7397_s3 = inlined_call_operand.vmem [shape: f32[4], index: 3, kind: input, shape index: {}]   ;;  %s7398_s4 = inlined_call_operand.vmem [shape: bf16[4,128,128], index: 4, kind: input, shape index: {}]   ;;  %s7399_s5 = inlined_call_operand.vmem [shape: bf16[6,128,384], index: 5, kind: input, shape index: {}]   ;;  %s7400_s6 = inlined_call_operand.vmem [shape: bf16[3,256,128], index: 6, kind: input, shape index: {}]   ;;  %s7401_s7 = inlined_call_operand.vmem [shape: bf16[3,128,128], index: 7, kind: input, shape index: {}]   ;;  %s7402_s8 = inlined_call_operand.vmem [shape: bf16[3,128,128], index: 8, kind: input, shape index: {}]   ;;  %s7403_s9 = inlined_call_operand.vmem [shape: bf16[3,32,16], index: 9, kind: input, shape index: {}]   ;;  %s7404_s10 = inlined_call_operand.vmem [shape: bf16[128,16], index: 10, kind: input, shape index: {}]   ;;  %s7405_s11 = inlined_call_operand.vmem [shape: f32[16,1,128], index: 11, kind: input, shape index: {}]   ;;  %s7406_s12 = inlined_call_operand.vmem [shape: f32[32,32], index: 12, kind: output, shape index: {}]  }
   0x1   :  { %s30_s23 = sshll.u32 %s7397_s3, 4  ;;  %s31_s23 = int_to_ptr.vmem [resolvable:$true] %s30_s23 }
   0x2   :  { %s5942_s24 = scalar_lea.vmem %s31_s23, 16  ;;  %p5947_p1 = scmp.lt.s32.totalorder %s31_s23, %s31_s23 }
   0x3   :  { %p5943_p0 = scmp.ne.s32.totalorder %s31_s23, %s5942_s24  ;;  %p5948_p2 = scmp.lt.s32.totalorder %s5942_s24, %s5942_s24 }
   0x5   :  { %p5949_p3 = por %p5948_p2, %p5947_p1 }
   0x7   :  { %p5950_p4 = pnand %p5949_p3, %p5943_p0 }
   0x9   :  { %5953 = shalt.err (!%p5950_p4)
}
   0xa   :  { %s5956_s25 = smov [#allocation2]  }
   0xb   :  { %33 = dma.vmem_to_smem %s31_s23, 16, %s5956_s25, [#allocation3]  }
   0xc   :  { %5954 = dma.done.wait [#allocation3], 16  }
   0xd   :  { %5955 = vsyncadd [#allocation3], 4294967280 }
   0xe   :  { %53 = sfence }
   0xf   :  { %v5560_v0 = vld [vmem:[%s7398_s4] sm:$0xff]   ;;  %v5561_v1 = vld [vmem:[%s7398_s4 + $0x8] sm:$0xff]   ;;  %v5562_v2 = vld [vmem:[%s7398_s4 + $0x10] sm:$0xff]   ;;  %v5957_v38 = vmov 0   ;;  %vm5959_vm6 = vmmov 0   ;;  %vm1132_vm7 = vcmask 130048  }
  0x10   :  { %5197 = vmatprep.subr.bf16.mxu0 %v5560_v0  ;;  %v5563_v3 = vld [vmem:[%s7398_s4 + $0x18] sm:$0xff]   ;;  %v116_v4 = vld [vmem:[%s7394_s0] sm:$0xff]  ;;  %v117_v5 = vld [vmem:[%s7394_s0 + $0x8] sm:$0xff]  ;;  %440 = vmatprep.mubr.bf16.mxu1 %v5957_v38  ;;  %s4929_s3 = sld [smem:[#allocation2 + $0x3]]  ;;  %s4198_s30 = sld [smem:[#allocation2]]  ;;  %vm4244_vm8 = vcmask 261120  }
  0x11   :  { %5198 = vmatpush3.bf16.msra.mxu0 %v5560_v0  ;;  %v136_v6 = vpack.c.bf16 %v117_v5, %v116_v4  ;;  %v5568_v7 = vld [vmem:[%s7399_s5 + $0x4] ss:$12 sps:$4 sm:$0xff]   ;;  %v5570_v8 = vld [vmem:[%s7399_s5] ss:$12 sps:$4 sm:$0xff]   ;;  %v5572_v10 = vld [vmem:[%s7399_s5 + $0x1c] ss:$12 sps:$4 sm:$0xff]  }
  0x12   :  { %5199 = vmatprep.subr.bf16.mxu0 %v5561_v1  ;;  %v5564_v9 = vld [vmem:[%s7398_s4 + $0x20] sm:$0xff]   ;;  %408 = vmatprep.subr.bf16.mxu1 %v5568_v7  ;;  %v5565_v13 = vld [vmem:[%s7398_s4 + $0x28] sm:$0xff]   ;;  %v5578_v14 = vld [vmem:[%s7399_s5 + $0x30] ss:$12 sps:$4 sm:$0xff]  }
  0x13   :  { %5213 = vmatprep.mubr.bf16.mxu0 %v136_v6  ;;  %409 = vmatpush1.bf16.msra.mxu1 %v5570_v8  ;;  %v5574_v11 = vld [vmem:[%s7399_s5 + $0x18] ss:$12 sps:$4 sm:$0xff]   ;;  %v5576_v12 = vld [vmem:[%s7399_s5 + $0x34] ss:$12 sps:$4 sm:$0xff]   ;;  %v5588_v21 = vld [vmem:[%s7399_s5 + $0x7c] ss:$12 sps:$4 sm:$0xff]  }
  0x14   :  { %410 = vmatprep.subr.bf16.mxu1 %v5572_v10  ;;  %v5580_v15 = vld [vmem:[%s7399_s5 + $0x4c] ss:$12 sps:$4 sm:$0xff]   ;;  %v5566_v16 = vld [vmem:[%s7398_s4 + $0x30] sm:$0xff]   ;;  %v4254_v41 = vld [vmem:[%s7405_s11] ss:$0 sm:$0xff] }
  0x15   :  { %5200 = vmatpush3.bf16.msra.mxu0 %v5561_v1  ;;  %v5582_v17 = vld [vmem:[%s7399_s5 + $0x48] ss:$12 sps:$4 sm:$0xff]   ;;  %v5567_v18 = vld [vmem:[%s7398_s4 + $0x38] sm:$0xff]   ;;  %v5584_v19 = vld [vmem:[%s7399_s5 + $0x64] ss:$12 sps:$4 sm:$0xff]  }
  0x16   :  { %5201 = vmatprep.subr.bf16.mxu0 %v5562_v2  ;;  %v5586_v20 = vld [vmem:[%s7399_s5 + $0x60] ss:$12 sps:$4 sm:$0xff]   ;;  %v118_v22 = vld [vmem:[%s7394_s0 + $0x10] sm:$0xff]  ;;  %v119_v23 = vld [vmem:[%s7394_s0 + $0x18] sm:$0xff] }
  0x17   :  { %411 = vmatpush1.bf16.msra.mxu1 %v5574_v11  ;;  %v5571_v24 = vld [vmem:[%s7399_s5 + $0x8] ss:$12 sps:$4 sm:$0xff]   ;;  %v5590_v25 = vld [vmem:[%s7399_s5 + $0x78] ss:$12 sps:$4 sm:$0xff]   ;;  %v137_v26 = vpack.c.bf16 %v119_v23, %v118_v22  ;;  %v5575_v27 = vld [vmem:[%s7399_s5 + $0x20] ss:$12 sps:$4 sm:$0xff]  }
  0x18   :  { %412 = vmatprep.subr.bf16.mxu1 %v5576_v12  ;;  %v5579_v28 = vld [vmem:[%s7399_s5 + $0x38] ss:$12 sps:$4 sm:$0xff]   ;;  %v5583_v29 = vld [vmem:[%s7399_s5 + $0x50] ss:$12 sps:$4 sm:$0xff]   ;;  %v5587_v30 = vld [vmem:[%s7399_s5 + $0x68] ss:$12 sps:$4 sm:$0xff]  }
  0x19   :  { %5202 = vmatpush3.bf16.msra.mxu0 %v5562_v2  ;;  %v5591_v31 = vld [vmem:[%s7399_s5 + $0x80] ss:$12 sps:$4 sm:$0xff]   ;;  %v5594_v33 = vld [vmem:[%s7399_s5 + $0x90] ss:$12 sps:$4 sm:$0xff]   ;;  %v5595_v34 = vld [vmem:[%s7399_s5 + $0x98] ss:$12 sps:$4 sm:$0xff]  }
  0x1a   :  { %5203 = vmatprep.subr.bf16.mxu0 %v5563_v3  ;;  %v5592_v32 = vld [vmem:[%s7399_s5 + $0x94] ss:$12 sps:$4 sm:$0xff]   ;;  %v5596_v35 = vld [vmem:[%s7399_s5 + $0xac] ss:$12 sps:$4 sm:$0xff]   ;;  %v5599_v37 = vld [vmem:[%s7399_s5 + $0xb0] ss:$12 sps:$4 sm:$0xff]  }
  0x1b   :  { %413 = vmatpush1.bf16.msra.mxu1 %v5578_v14  ;;  %v5598_v36 = vld [vmem:[%s7399_s5 + $0xa8] ss:$12 sps:$4 sm:$0xff]   ;;  %v5602_v39 = vld [vmem:[%s7399_s5 + $0xc4] ss:$12 sps:$4 sm:$0xff]   ;;  %v5600_v55 = vld [vmem:[%s7399_s5 + $0xc0] ss:$12 sps:$4 sm:$0xff]  }
  0x1c   :  { %414 = vmatprep.subr.bf16.mxu1 %v5580_v15  ;;  %v5603_v40 = vld [vmem:[%s7399_s5 + $0xc8] ss:$12 sps:$4 sm:$0xff]   ;;  %v5607_v58 = vld [vmem:[%s7399_s5 + $0xe0] ss:$12 sps:$4 sm:$0xff]   ;;  %v5604_v59 = vld [vmem:[%s7399_s5 + $0xd8] ss:$12 sps:$4 sm:$0xff]   ;;  %v55_v15 = vlaneseq }
  0x1d   :  { %5204 = vmatpush3.bf16.msra.mxu0 %v5563_v3  ;;  %v5606_v57 = vld [vmem:[%s7399_s5 + $0xdc] ss:$12 sps:$4 sm:$0xff]   ;;  %v5610_v60 = vld [vmem:[%s7399_s5 + $0xf4] ss:$12 sps:$4 sm:$0xff]   ;;  %v5611_v62 = vld [vmem:[%s7399_s5 + $0xf8] ss:$12 sps:$4 sm:$0xff]  }
  0x1e   :  { %5205 = vmatprep.subr.bf16.mxu0 %v5564_v9  ;;  %v5608_v61 = vld [vmem:[%s7399_s5 + $0xf0] ss:$12 sps:$4 sm:$0xff]   ;;  %v5614_v63 = vld [vmem:[%s7399_s5 + $0x10c] ss:$12 sps:$4 sm:$0xff]   ;;  %v5612_v0 = vld [vmem:[%s7399_s5 + $0x108] ss:$12 sps:$4 sm:$0xff]  }
  0x1f   :  { %415 = vmatpush1.bf16.msra.mxu1 %v5582_v17  ;;  %v5615_v1 = vld [vmem:[%s7399_s5 + $0x110] ss:$12 sps:$4 sm:$0xff]   ;;  %v5616_v3 = vld [vmem:[%s7399_s5 + $0x120] ss:$12 sps:$4 sm:$0xff]   ;;  %v5619_v4 = vld [vmem:[%s7399_s5 + $0x128] ss:$12 sps:$4 sm:$0xff]  }
  0x20   :  { %416 = vmatprep.subr.bf16.mxu1 %v5584_v19  ;;  %v5618_v2 = vld [vmem:[%s7399_s5 + $0x124] ss:$12 sps:$4 sm:$0xff]   ;;  %v5622_v5 = vld [vmem:[%s7399_s5 + $0x13c] ss:$12 sps:$4 sm:$0xff]   ;;  %v5623_v7 = vld [vmem:[%s7399_s5 + $0x140] ss:$12 sps:$4 sm:$0xff]  }
  0x21   :  { %5206 = vmatpush3.bf16.msra.mxu0 %v5564_v9  ;;  %v5620_v6 = vld [vmem:[%s7399_s5 + $0x138] ss:$12 sps:$4 sm:$0xff]   ;;  %v5626_v8 = vld [vmem:[%s7399_s5 + $0x154] ss:$12 sps:$4 sm:$0xff]   ;;  %v5624_v9 = vld [vmem:[%s7399_s5 + $0x150] ss:$12 sps:$4 sm:$0xff]  }
  0x22   :  { %5207 = vmatprep.subr.bf16.mxu0 %v5565_v13  ;;  %v5627_v10 = vld [vmem:[%s7399_s5 + $0x158] ss:$12 sps:$4 sm:$0xff]   ;;  %v5628_v12 = vld [vmem:[%s7399_s5 + $0x168] ss:$12 sps:$4 sm:$0xff]   ;;  %v5958_v14 = vmov 0.0  }
  0x23   :  { %417 = vmatpush1.bf16.msra.mxu1 %v5586_v20  ;;  %v5630_v11 = vld [vmem:[%s7399_s5 + $0x16c] ss:$12 sps:$4 sm:$0xff]  }
  0x24   :  { %418 = vmatprep.subr.bf16.mxu1 %v5588_v21 }
  0x25   :  { %5208 = vmatpush3.bf16.msra.mxu0 %v5565_v13  ;;  %v5631_v13 = vld [vmem:[%s7399_s5 + $0x170] ss:$12 sps:$4 sm:$0xff]  }
  0x26   :  { %5209 = vmatprep.subr.bf16.mxu0 %v5566_v16 }
  0x27   :  { %419 = vmatpush1.bf16.msra.mxu1 %v5590_v25 }
  0x28   :  { %420 = vmatprep.subr.bf16.mxu1 %v5592_v32 }
  0x29   :  { %5210 = vmatpush3.bf16.msra.mxu0 %v5566_v16  ;;  %v6237_v16 = vshrl.u32 %v55_v15, 7 }
  0x2a   :  { %5211 = vmatprep.subr.bf16.mxu0 %v5567_v18 }
  0x2b   :  { %421 = vmatpush1.bf16.msra.mxu1 %v5594_v33  ;;  %v57_v17 = vadd.s32 8, %v6237_v16  ;;  %v58_v22 = vadd.s32 16, %v6237_v16  ;;  %vm514_vm0 = vcmp.lt.s32.totalorder %v6237_v16, 1  ;;  %vm539_vm1 = vcmp.lt.s32.totalorder %v6237_v16, 7 }
  0x2c   :  { %422 = vmatprep.subr.bf16.mxu1 %v5596_v35  ;;  %v59_v33 = vadd.s32 24, %v6237_v16 }
  0x2d   :  { %5212 = vmatpush3.bf16.msra.mxu0 %v5567_v18  ;;  %v71_v21 = vand.u32 15, %v57_v17 }
  0x2e   :  { %5217 = vmatprep.subr.bf16.mxu0 %v5571_v24 }
  0x2f   :  { %423 = vmatpush1.bf16.msra.mxu1 %v5598_v36  ;;  %vm6246_vm2 = vcmp.lt.s32.totalorder %v71_v21, 15 }
  0x30   :  { %5214 = vmatmul.mubr.bf16.vlgmr.msra.gmra.mrb[0].mxu0 %v137_v26  ;;  %739 = vmatprep.subr.bf16.mxu1 %v5602_v39 }
  0x31   :  { %5218 = vmatpush3.bf16.msra.mxu0 %v5571_v24 }
  0x32   :  { %5219 = vmatprep.subr.bf16.mxu0 %v5575_v27 }
  0x35   :  { %5220 = vmatpush3.bf16.msra.mxu0 %v5575_v27 }
  0x36   :  { %5221 = vmatprep.subr.bf16.mxu0 %v5579_v28 }
  0x39   :  { %5222 = vmatpush3.bf16.msra.mxu0 %v5579_v28 }
  0x3a   :  { %5223 = vmatprep.subr.bf16.mxu0 %v5583_v29 }
  0x3d   :  { %5224 = vmatpush3.bf16.msra.mxu0 %v5583_v29 }
  0x3e   :  { %5225 = vmatprep.subr.bf16.mxu0 %v5587_v30 }
  0x41   :  { %5226 = vmatpush3.bf16.msra.mxu0 %v5587_v30 }
  0x42   :  { %5227 = vmatprep.subr.bf16.mxu0 %v5591_v31 }
  0x45   :  { %5228 = vmatpush3.bf16.msra.mxu0 %v5591_v31 }
  0x46   :  { %5229 = vmatprep.subr.bf16.mxu0 %v5595_v34 }
  0x49   :  { %5230 = vmatpush3.bf16.msra.mxu0 %v5595_v34 }
  0x4a   :  { %5231 = vmatprep.subr.bf16.mxu0 %v5599_v37 }
  0x4d   :  { %5232 = vmatpush3.bf16.msra.mxu0 %v5599_v37  ;;  %v78_v37 = vand.u32 15, %v58_v22 }
  0x4e   :  { %5237 = vmatprep.subr.bf16.mxu0 %v5603_v40 }
  0x4f   :  { %vm6261_vm3 = vcmp.gt.s32.totalorder %v78_v37, 0 }
 0x103   :  { %v5215_v42 = vpop.f32.mrb[0].mxu0 }
 0x104   :  { %v227_v43 = vpop.f32.mrb[1].mxu0  ;;  %v6149_v46 = vadd.f32 %v5215_v42, %v4254_v41 }
 0x105   :  { %v6147_v44 = vadd.f32 %v4254_v41, %v227_v43  ;;  %v5216_v45 = vpop.f32.mrb[2].mxu0 }
 0x106   :  { %v6151_v47 = vadd.f32 %v5216_v45, %v4254_v41  ;;  %v230_v48 = vpop.f32.mrb[3].mxu0  ;;  %v244_v53 = vmax.f32 %v6149_v46, 0.0  ;;  %v64_v45 = vand.u32 15, %v6237_v16  ;;  %v5666_v46 = vld [vmem:[%s7398_s4 + $0x40] sm:$0xff]  }
 0x107   :  { %v6153_v49 = vadd.f32 %v4254_v41, %v230_v48  ;;  %v242_v51 = vmax.f32 %v6147_v44, 0.0 }
 0x108   :  { %v245_v50 = vmax.f32 %v6151_v47, 0.0  ;;  %vm6267_vm4 = vcmp.gt.s32.totalorder %v64_v45, 0  ;;  %v5645_v45 = vld [vmem:[%s7402_s8 + $0x28] sm:$0xff]  }
 0x109   :  { %v243_v52 = vmax.f32 %v6153_v49, 0.0  ;;  %v5667_v47 = vld [vmem:[%s7398_s4 + $0x48] sm:$0xff]  }
 0x10a   :  { %v279_v56 = vpack.c.bf16 %v245_v50, %v244_v53 }
 0x10b   :  { %v278_v54 = vpack.c.bf16 %v243_v52, %v242_v51 }
 0x10d   :  { %441 = vmatmul.mubr.bf16.vlgmr.msra.gmra.mrb[0].mxu1 %v278_v54  ;;  %5233 = vmatprep.mubr.bf16.mxu0 %v278_v54 }
 0x10e   :  { %5234 = vmatmul.mubr.bf16.vlgmr.msra.gmra.mrb[4].mxu0 %v279_v56  ;;  %450 = vmatprep.mubr.bf16.mxu1 %v5957_v38 }
 0x10f   :  { %740 = vmatpush1.bf16.msra.mxu1 %v5600_v55  ;;  %5238 = vmatpush3.bf16.msra.mxu0 %v5603_v40  ;;  %v85_v55 = vand.u32 15, %v59_v33  ;;  %v5639_v33 = vld [vmem:[%s7401_s7 + $0x38] sm:$0xff]  }
 0x110   :  { %741 = vmatprep.subr.bf16.mxu1 %v5606_v57  ;;  %5239 = vmatprep.subr.bf16.mxu0 %v5607_v58 }
 0x111   :  { %vm6273_vm5 = vcmp.lt.s32.totalorder %v85_v55, 15 }
 0x113   :  { %742 = vmatpush1.bf16.msra.mxu1 %v5604_v59  ;;  %5240 = vmatpush3.bf16.msra.mxu0 %v5607_v58 }
 0x114   :  { %743 = vmatprep.subr.bf16.mxu1 %v5610_v60  ;;  %5241 = vmatprep.subr.bf16.mxu0 %v5611_v62 }
 0x115   :  { %451 = vmatmul.mubr.bf16.gmra.mrb[4].mxu1 %v279_v56 }
 0x116   :  { %771 = vmatprep.mubr.bf16.mxu1 %v5957_v38 }
 0x117   :  { %744 = vmatpush1.bf16.msra.mxu1 %v5608_v61  ;;  %5242 = vmatpush3.bf16.msra.mxu0 %v5611_v62 }
 0x118   :  { %745 = vmatprep.subr.bf16.mxu1 %v5614_v63  ;;  %5243 = vmatprep.subr.bf16.mxu0 %v5615_v1 }
 0x11b   :  { %746 = vmatpush1.bf16.msra.mxu1 %v5612_v0  ;;  %5244 = vmatpush3.bf16.msra.mxu0 %v5615_v1 }
 0x11c   :  { %747 = vmatprep.subr.bf16.mxu1 %v5618_v2  ;;  %5245 = vmatprep.subr.bf16.mxu0 %v5619_v4  ;;  %v5860_v2 = vld [vmem:[%s7403_s9 + $0x20] sm:$0xff]  }
 0x11f   :  { %748 = vmatpush1.bf16.msra.mxu1 %v5616_v3  ;;  %5246 = vmatpush3.bf16.msra.mxu0 %v5619_v4 }
 0x120   :  { %749 = vmatprep.subr.bf16.mxu1 %v5622_v5  ;;  %5247 = vmatprep.subr.bf16.mxu0 %v5623_v7 }
 0x123   :  { %750 = vmatpush1.bf16.msra.mxu1 %v5620_v6  ;;  %5248 = vmatpush3.bf16.msra.mxu0 %v5623_v7  ;;  %v4288_v6 = vld [vmem:[%s7405_s11 + $0x1] ss:$0 sm:$0xff] }
 0x124   :  { %751 = vmatprep.subr.bf16.mxu1 %v5626_v8  ;;  %5249 = vmatprep.subr.bf16.mxu0 %v5627_v10 }
 0x127   :  { %752 = vmatpush1.bf16.msra.mxu1 %v5624_v9  ;;  %5250 = vmatpush3.bf16.msra.mxu0 %v5627_v10 }
 0x128   :  { %753 = vmatprep.subr.bf16.mxu1 %v5630_v11  ;;  %5251 = vmatprep.subr.bf16.mxu0 %v5631_v13 }
 0x12b   :  { %754 = vmatpush1.bf16.msra.mxu1 %v5628_v12  ;;  %5252 = vmatpush3.bf16.msra.mxu0 %v5631_v13 }
 0x12c   :  { %5257 = vmatprep.subr.bf16.mxu1 %v5958_v14  ;;  %5277 = vmatprep.subr.bf16.mxu0 %v5958_v14 }
 0x1e0   :  { %v442_v18 = vpop.f32.mrb[0].mxu1 }
 0x1e1   :  { %v444_v19 = vpop.f32.mrb[1].mxu1  ;;  %v5235_v20 = vpop.f32.mrb[4].mxu0  ;;  %v510_v25 = vrot.slane %v442_v18, 7 }
 0x1e2   :  { %v446_v23 = vpop.f32.mrb[2].mxu1  ;;  %v495_v24 = vpop.f32.mrb[5].mxu0  ;;  %v537_v30 = vrot.slane %v5235_v20, 1 }
 0x1e3   :  { %v511_v26 = vrot.slane %v446_v23, 7  ;;  %v535_v27 = vrot.slane %v495_v24, 1  ;;  %v448_v28 = vpop.f32.mrb[3].mxu1  ;;  %v5236_v29 = vpop.f32.mrb[6].mxu0 }
 0x1e4   :  { %v538_v31 = vrot.slane %v5236_v29, 1  ;;  %v498_v32 = vpop.f32.mrb[7].mxu0  ;;  %v5635_v29 = vld [vmem:[%s7401_s7 + $0x18] sm:$0xff]  }
 0x1e5   :  { %v517_v34 = vsel %vm514_vm0, %v510_v25, %v511_v26  ;;  %v536_v36 = vrot.slane %v498_v32, 1  ;;  %v5638_v32 = vld [vmem:[%s7401_s7 + $0x30] sm:$0xff]  }
 0x1e6   :  { %v532_v39 = vadd.f32 %v517_v34, %v448_v28  ;;  %v540_v40 = vsel %vm539_vm1, %v537_v30, %v538_v31  ;;  %v543_v41 = vsel %vm539_vm1, %v538_v31, %v535_v27  ;;  %v5634_v28 = vld [vmem:[%s7401_s7 + $0x10] sm:$0xff]   ;;  %v5637_v31 = vld [vmem:[%s7401_s7 + $0x28] sm:$0xff]   ;;  %v893_v34 = vld [vmem:[%s7395_s1] sm:$0xff] }
 0x1e7   :  { %v541_v42 = vsel %vm539_vm1, %v536_v36, %v537_v30  ;;  %v542_v43 = vsel %vm539_vm1, %v535_v27, %v536_v36  ;;  %v555_v11 = vsel %vm6273_vm5, %v543_v41, 0.0  ;;  %v5636_v30 = vld [vmem:[%s7401_s7 + $0x20] sm:$0xff]   ;;  %v894_v36 = vld [vmem:[%s7395_s1 + $0x8] sm:$0xff]  ;;  %v5642_v41 = vld [vmem:[%s7402_s8 + $0x10] sm:$0xff]  }
 0x1e8   :  { %v553_v48 = vsel %vm6246_vm2, %v541_v42, 0.0  ;;  %v452_v54 = vpop.f32.mrb[4].mxu1  ;;  %v911_v37 = vpack.c.bf16 %v894_v36, %v893_v34  ;;  %v5643_v42 = vld [vmem:[%s7402_s8 + $0x18] sm:$0xff]  }
 0x1e9   :  { %v557_v56 = vadd.f32 %v553_v48, %v532_v39  ;;  %v512_v57 = vrot.slane %v452_v54, 7  ;;  %v454_v59 = vpop.f32.mrb[5].mxu1  ;;  %v5640_v39 = vld [vmem:[%s7402_s8] sm:$0xff]   ;;  %v5646_v48 = vld [vmem:[%s7402_s8 + $0x30] sm:$0xff]   ;;  %v5647_v54 = vld [vmem:[%s7402_s8 + $0x38] sm:$0xff]  }
 0x1ea   :  { %v456_v60 = vpop.f32.mrb[6].mxu1 }
 0x1eb   :  { %v516_v61 = vsel %vm514_vm0, %v511_v26, %v512_v57  ;;  %v513_v63 = vrot.slane %v456_v60, 7  ;;  %v458_v0 = vpop.f32.mrb[7].mxu1  ;;  %v569_v13 = vadd.f32 %v4288_v6, %v557_v56  ;;  %v5632_v26 = vld [vmem:[%s7401_s7] sm:$0xff]  }
 0x1ec   :  { %v529_v1 = vsel %vm6261_vm3, %v516_v61, 0.0 }
 0x1ed   :  { %v533_v3 = vadd.f32 %v529_v1, %v454_v59  ;;  %v518_v4 = vsel %vm514_vm0, %v513_v63, %v510_v25  ;;  %v515_v5 = vsel %vm514_vm0, %v512_v57, %v513_v63  ;;  %v573_v23 = vmax.f32 %v569_v13, 0.0 }
 0x1ee   :  { %v527_v7 = vsel %vm6267_vm4, %v518_v4, 0.0  ;;  %v534_v8 = vadd.f32 %v515_v5, %v458_v0 }
 0x1ef   :  { %v558_v9 = vadd.f32 %v540_v40, %v533_v3  ;;  %v531_v10 = vadd.f32 %v527_v7, %v444_v19  ;;  %v5633_v19 = vld [vmem:[%s7401_s7 + $0x8] sm:$0xff]  }
 0x1f0   :  { %v559_v12 = vadd.f32 %v555_v11, %v534_v8  ;;  %v5641_v40 = vld [vmem:[%s7402_s8 + $0x8] sm:$0xff]  }
 0x1f1   :  { %v570_v15 = vadd.f32 %v4288_v6, %v558_v9  ;;  %v556_v17 = vadd.f32 %v542_v43, %v531_v10  ;;  %v5644_v43 = vld [vmem:[%s7402_s8 + $0x20] sm:$0xff]  }
 0x1f2   :  { %v571_v18 = vadd.f32 %v4288_v6, %v559_v12 }
 0x1f3   :  { %v574_v20 = vmax.f32 %v570_v15, 0.0  ;;  %v568_v21 = vadd.f32 %v4288_v6, %v556_v17 }
 0x1f4   :  { %v575_v22 = vmax.f32 %v571_v18, 0.0 }
 0x1f5   :  { %v572_v24 = vmax.f32 %v568_v21, 0.0 }
 0x1f6   :  { %v610_v25 = vpack.c.bf16 %v575_v22, %v574_v20 }
 0x1f7   :  { %v609_v27 = vpack.c.bf16 %v573_v23, %v572_v24 }
 0x1f9   :  { %772 = vmatmul.mubr.bf16.vlgmr.msra.gmra.mrb[8].mxu1 %v609_v27  ;;  %5253 = vmatprep.mubr.bf16.mxu0 %v609_v27 }
 0x1fa   :  { %5258 = vmatpush3.bf16.msra.mxu1 %v5632_v26  ;;  %5254 = vmatmul.mubr.bf16.vlgmr.msra.gmra.mrb[8].mxu0 %v610_v25 }
 0x1fb   :  { %5259 = vmatprep.subr.bf16.mxu1 %v5958_v14  ;;  %781 = vmatprep.mubr.bf16.mxu1 %v5957_v38 }
 0x1fc   :  { %5293 = vmatprep.mubr.msk.bf16.mxu0 %vm5959_vm6, %v5958_v14  ;;  %5278 = vmatpush3.bf16.msra.mxu0 %v5640_v39 }
 0x1fd   :  { %5279 = vmatprep.subr.bf16.mxu0 %v5958_v14 }
 0x1fe   :  { %5260 = vmatpush3.bf16.msra.mxu1 %v5633_v19 }
 0x1ff   :  { %5261 = vmatprep.subr.bf16.mxu1 %v5958_v14 }
 0x200   :  { %5280 = vmatpush3.bf16.msra.mxu0 %v5641_v40 }
 0x201   :  { %782 = vmatmul.mubr.bf16.gmra.mrb[12].mxu1 %v610_v25  ;;  %5281 = vmatprep.subr.bf16.mxu0 %v5958_v14 }
 0x202   :  { %5262 = vmatpush3.bf16.msra.mxu1 %v5634_v28  ;;  %5273 = vmatprep.mubr.msk.bf16.mxu1 %vm5959_vm6, %v5958_v14 }
 0x203   :  { %5263 = vmatprep.subr.bf16.mxu1 %v5958_v14 }
 0x204   :  { %5282 = vmatpush3.bf16.msra.mxu0 %v5642_v41 }
 0x205   :  { %5283 = vmatprep.subr.bf16.mxu0 %v5958_v14 }
 0x206   :  { %5264 = vmatpush3.bf16.msra.mxu1 %v5635_v29 }
 0x207   :  { %5265 = vmatprep.subr.bf16.mxu1 %v5958_v14 }
 0x208   :  { %5284 = vmatpush3.bf16.msra.mxu0 %v5643_v42 }
 0x209   :  { %5285 = vmatprep.subr.bf16.mxu0 %v5958_v14 }
 0x20a   :  { %5266 = vmatpush3.bf16.msra.mxu1 %v5636_v30 }
 0x20b   :  { %5267 = vmatprep.subr.bf16.mxu1 %v5958_v14 }
 0x20c   :  { %5286 = vmatpush3.bf16.msra.mxu0 %v5644_v43 }
 0x20d   :  { %5287 = vmatprep.subr.bf16.mxu0 %v5958_v14 }
 0x20e   :  { %5268 = vmatpush3.bf16.msra.mxu1 %v5637_v31 }
 0x20f   :  { %5269 = vmatprep.subr.bf16.mxu1 %v5958_v14 }
 0x210   :  { %5288 = vmatpush3.bf16.msra.mxu0 %v5645_v45 }
 0x211   :  { %5289 = vmatprep.subr.bf16.mxu0 %v5958_v14 }
 0x212   :  { %5270 = vmatpush3.bf16.msra.mxu1 %v5638_v32 }
 0x213   :  { %5271 = vmatprep.subr.bf16.mxu1 %v5958_v14 }
 0x214   :  { %5290 = vmatpush3.bf16.msra.mxu0 %v5646_v48 }
 0x215   :  { %5291 = vmatprep.subr.bf16.mxu0 %v5958_v14 }
 0x216   :  { %5272 = vmatpush3.bf16.msra.mxu1 %v5639_v33 }
 0x218   :  { %5292 = vmatpush3.bf16.msra.mxu0 %v5647_v54 }
 0x219   :  { %5274 = vmatmul.mubr.bf16.vlgmr.msra.gmra.mrb[16].mxu1 %v911_v37  ;;  %v4348_v37 = vld [vmem:[%s7405_s11 + $0xd] ss:$0 sm:$0xff] }
 0x2cc   :  { %v773_v55 = vpop.f32.mrb[8].mxu1 }
 0x2cd   :  { %v775_v56 = vpop.f32.mrb[9].mxu1  ;;  %v5255_v57 = vpop.f32.mrb[8].mxu0  ;;  %v841_v61 = vrot.slane %v773_v55, 7 }
 0x2ce   :  { %v777_v59 = vpop.f32.mrb[10].mxu1  ;;  %v826_v60 = vpop.f32.mrb[9].mxu0  ;;  %v859_v4 = vrot.slane %v5255_v57, 1  ;;  %v5650_v57 = vld [vmem:[%s7400_s6 + $0x40] sm:$0xff]  }
 0x2cf   :  { %v842_v63 = vrot.slane %v777_v59, 7  ;;  %v857_v0 = vrot.slane %v826_v60, 1  ;;  %v779_v1 = vpop.f32.mrb[11].mxu1  ;;  %v5256_v3 = vpop.f32.mrb[10].mxu0  ;;  %v5651_v59 = vld [vmem:[%s7400_s6] sm:$0xff]   ;;  %v5652_v60 = vld [vmem:[%s7400_s6 + $0x48] sm:$0xff]   ;;  %4991 = vmatprep.subr.bf16.mxu1 %v5650_v57 }
 0x2d0   :  { %v860_v5 = vrot.slane %v5256_v3, 1  ;;  %v829_v6 = vpop.f32.mrb[11].mxu0  ;;  %4992 = vmatpush3.bf16.msra.mxu1 %v5651_v59  ;;  %v5657_v3 = vld [vmem:[%s7400_s6 + $0x18] sm:$0xff]  }
 0x2d1   :  { %v847_v7 = vsel %vm514_vm0, %v841_v61, %v842_v63  ;;  %v858_v8 = vrot.slane %v829_v6, 1  ;;  %4993 = vmatprep.subr.bf16.mxu1 %v5652_v60  ;;  %v5660_v6 = vld [vmem:[%s7400_s6 + $0x68] sm:$0xff]   ;;  %v5682_v57 = vld [vmem:[%s7399_s5 + $0x1b0] ss:$12 sps:$4 sm:$0xff]  }
 0x2d2   :  { %v854_v9 = vadd.f32 %v847_v7, %v779_v1  ;;  %v861_v10 = vsel %vm539_vm1, %v859_v4, %v860_v5  ;;  %v864_v11 = vsel %vm539_vm1, %v860_v5, %v857_v0  ;;  %v5656_v1 = vld [vmem:[%s7400_s6 + $0x58] sm:$0xff]   ;;  %v5659_v5 = vld [vmem:[%s7400_s6 + $0x20] sm:$0xff]   ;;  %v5661_v7 = vld [vmem:[%s7400_s6 + $0x28] sm:$0xff]  }
 0x2d3   :  { %v862_v12 = vsel %vm539_vm1, %v858_v8, %v859_v4  ;;  %v863_v13 = vsel %vm539_vm1, %v857_v0, %v858_v8  ;;  %v868_v33 = vsel %vm6273_vm5, %v864_v11, 0.0  ;;  %v5655_v0 = vld [vmem:[%s7400_s6 + $0x10] sm:$0xff]   ;;  %v5658_v4 = vld [vmem:[%s7400_s6 + $0x60] sm:$0xff]   ;;  %v5688_v59 = vld [vmem:[%s7399_s5 + $0x1cc] ss:$12 sps:$4 sm:$0xff]  }
 0x2d4   :  { %v866_v15 = vsel %vm6246_vm2, %v862_v12, 0.0  ;;  %v783_v17 = vpop.f32.mrb[12].mxu1  ;;  %v5662_v8 = vld [vmem:[%s7400_s6 + $0x70] sm:$0xff]  }
 0x2d5   :  { %v6373_v18 = vadd.f32 %v866_v15, %v854_v9  ;;  %v843_v20 = vrot.slane %v783_v17, 7  ;;  %v785_v21 = vpop.f32.mrb[13].mxu1  ;;  %v5649_v15 = vld [vmem:[%s7403_s9 + $0x8] sm:$0xff]   ;;  %v5663_v17 = vld [vmem:[%s7400_s6 + $0x30] sm:$0xff]  }
 0x2d6   :  { %v787_v22 = vpop.f32.mrb[14].mxu1  ;;  %v5686_v60 = vld [vmem:[%s7399_s5 + $0x1c8] ss:$12 sps:$4 sm:$0xff]  }
 0x2d7   :  { %v846_v23 = vsel %vm514_vm0, %v842_v63, %v843_v20  ;;  %v844_v24 = vrot.slane %v787_v22, 7  ;;  %v789_v25 = vpop.f32.mrb[15].mxu1  ;;  %v5654_v63 = vld [vmem:[%s7400_s6 + $0x50] sm:$0xff]   ;;  %v4346_v22 = vld [vmem:[%s7405_s11 + $0x2] ss:$0 sm:$0xff] }
 0x2d8   :  { %v851_v26 = vsel %vm6261_vm3, %v846_v23, 0.0 }
 0x2d9   :  { %v855_v27 = vadd.f32 %v851_v26, %v785_v21  ;;  %v848_v19 = vsel %vm514_vm0, %v844_v24, %v841_v61  ;;  %v845_v28 = vsel %vm514_vm0, %v843_v20, %v844_v24  ;;  %v5653_v61 = vld [vmem:[%s7400_s6 + $0x8] sm:$0xff]   ;;  %v5664_v20 = vld [vmem:[%s7400_s6 + $0x78] sm:$0xff]   ;;  %v882_v24 = vadd.f32 %v4346_v22, %v6373_v18 }
 0x2da   :  { %v849_v29 = vsel %vm6267_vm4, %v848_v19, 0.0  ;;  %v856_v30 = vadd.f32 %v845_v28, %v789_v25  ;;  %4994 = vmatpush3.bf16.msra.mxu1 %v5653_v61  ;;  %v5665_v21 = vld [vmem:[%s7400_s6 + $0x38] sm:$0xff]   ;;  %v5692_v61 = vld [vmem:[%s7399_s5 + $0x1e4] ss:$12 sps:$4 sm:$0xff]  }
 0x2db   :  { %v6385_v31 = vadd.f32 %v861_v10, %v855_v27  ;;  %v853_v32 = vadd.f32 %v849_v29, %v775_v56  ;;  %v5648_v56 = vld [vmem:[%s7403_s9] sm:$0xff]   ;;  %4995 = vmatprep.subr.bf16.mxu1 %v5654_v63  ;;  %v886_v26 = vadd.f32 %v882_v24, %v243_v52 }
 0x2dc   :  { %v6389_v34 = vadd.f32 %v868_v33, %v856_v30  ;;  %v5690_v63 = vld [vmem:[%s7399_s5 + $0x1e0] ss:$12 sps:$4 sm:$0xff]  }
 0x2dd   :  { %v869_v36 = vadd.f32 %v863_v13, %v853_v32  ;;  %v883_v19 = vadd.f32 %v4346_v22, %v6385_v31 }
 0x2de   :  { %4996 = vmatpush3.bf16.msra.mxu1 %v5655_v0  ;;  %v884_v28 = vadd.f32 %v4346_v22, %v6389_v34  ;;  %v5696_v0 = vld [vmem:[%s7399_s5 + $0x1fc] ss:$12 sps:$4 sm:$0xff]  }
 0x2df   :  { %4997 = vmatprep.subr.bf16.mxu1 %v5656_v1  ;;  %v881_v23 = vadd.f32 %v4346_v22, %v869_v36  ;;  %v6462_v36 = vmax.f32 %v886_v26, 0.0  ;;  %v887_v44 = vadd.f32 %v883_v19, %v244_v53  ;;  %v5669_v53 = vld [vmem:[%s7398_s4 + $0x58] sm:$0xff]  }
 0x2e0   :  { %v888_v49 = vadd.f32 %v884_v28, %v245_v50  ;;  %v5668_v50 = vld [vmem:[%s7398_s4 + $0x50] sm:$0xff]   ;;  %v5694_v1 = vld [vmem:[%s7399_s5 + $0x1f8] ss:$12 sps:$4 sm:$0xff]  }
 0x2e1   :  { %v885_v25 = vadd.f32 %v881_v23, %v242_v51  ;;  %v6470_v52 = vmax.f32 %v887_v44, 0.0 }
 0x2e2   :  { %4998 = vmatpush3.bf16.msra.mxu1 %v5657_v3  ;;  %v6472_v31 = vmax.f32 %v888_v49, 0.0 }
 0x2e3   :  { %4999 = vmatprep.subr.bf16.mxu1 %v5658_v4  ;;  %v6460_v30 = vmax.f32 %v885_v25, 0.0  ;;  %v4370_v4 = vld [vmem:[%s7405_s11 + $0x7] ss:$0 sm:$0xff] }
 0x2e4   :  { %v1222_v34 = vpack.c.bf16 %v6472_v31, %v6470_v52 }
 0x2e5   :  { %v1220_v51 = vpack.c.bf16 %v6462_v36, %v6460_v30 }
 0x2e6   :  { %5000 = vmatpush3.bf16.msra.mxu1 %v5659_v5 }
 0x2e7   :  { %5001 = vmatprep.subr.bf16.mxu1 %v5660_v6 }
 0x2ea   :  { %5002 = vmatpush3.bf16.msra.mxu1 %v5661_v7 }
 0x2eb   :  { %5003 = vmatprep.subr.bf16.mxu1 %v5662_v8 }
 0x2ec   :  { %v1002_v39 = vpop.f32.mrb[16].mxu1 }
 0x2ed   :  { %v1003_v40 = vadd.f32 %v4348_v37, %v1002_v39  ;;  %v5275_v41 = vpop.f32.mrb[17].mxu1  ;;  %v5670_v39 = vld [vmem:[%s7398_s4 + $0x60] sm:$0xff]  }
 0x2ee   :  { %v1005_v42 = vpop.f32.mrb[18].mxu1  ;;  %5004 = vmatpush3.bf16.msra.mxu1 %v5663_v17  ;;  %v5672_v41 = vld [vmem:[%s7398_s4 + $0x70] sm:$0xff]  }
 0x2ef   :  { %v1006_v43 = vadd.f32 %v4348_v37, %v1005_v42  ;;  %v5276_v45 = vpop.f32.mrb[19].mxu1  ;;  %v1009_v48 = vmax.f32 %v1003_v40, 0.0  ;;  %5005 = vmatprep.subr.bf16.mxu1 %v5664_v20  ;;  %v5671_v40 = vld [vmem:[%s7398_s4 + $0x68] sm:$0xff]   ;;  %v5673_v42 = vld [vmem:[%s7398_s4 + $0x78] sm:$0xff]  }
 0x2f0   :  { %v5676_v45 = vld [vmem:[%s7399_s5 + $0x184] ss:$12 sps:$4 sm:$0xff]  }
 0x2f1   :  { %v1010_v54 = vmax.f32 %v1006_v43, 0.0  ;;  %v5674_v43 = vld [vmem:[%s7399_s5 + $0x180] ss:$12 sps:$4 sm:$0xff]  }
 0x2f2   :  { %5006 = vmatpush3.bf16.msra.mxu1 %v5665_v21 }
 0x2f3   :  { %v1031_v55 = vpack.c.bf16 %v1010_v54, %v1009_v48  ;;  %v6510_v48 = vld [vmem:[%s7399_s5 + $0x188] ss:$12 sps:$4 sm:$0xff]   ;;  %1696 = vmatprep.subr.bf16.mxu1 %v5676_v45 }
 0x2f4   :  { %v5680_v54 = vld [vmem:[%s7399_s5 + $0x19c] ss:$12 sps:$4 sm:$0xff]  }
 0x2f5   :  { %5294 = vmatmul.mubr.bf16.vlgmr.msra.gmra.mrb[12].mxu0 %v1031_v55  ;;  %v5678_v55 = vld [vmem:[%s7399_s5 + $0x198] ss:$12 sps:$4 sm:$0xff]  }
 0x2f6   :  { %5299 = vmatprep.mubr.msk.bf16.mxu0 %vm1132_vm7, %v5648_v56  ;;  %v5684_v56 = vld [vmem:[%s7399_s5 + $0x1b4] ss:$12 sps:$4 sm:$0xff]  }
 0x3c8   :  { %v1114_v9 = vpop.f32.mrb[12].mxu0 }
 0x3c9   :  { %v5295_v10 = vpop.f32.mrb[13].mxu0 }
 0x3ca   :  { %v1117_v11 = vpop.f32.mrb[14].mxu0 }
 0x3cb   :  { %v1121_v12 = vpack.c.bf16 %v1117_v11, %v1114_v9  ;;  %v5296_v13 = vpop.f32.mrb[15].mxu0 }
 0x3cd   :  { %5297 = vmatprep.subr.bf16.mxu0 %v1121_v12 }
 0x3ce   :  { %5298 = vmatpush3.bf16.msra.mxu0 %v1121_v12 }
 0x3cf   :  { %5303 = vmatprep.subr.bf16.mxu0 %v5666_v46 }
 0x3d1   :  { %5300 = vmatmul.mubr.msk.bf16.vlgmr.msra.gmra.mrb[16].mxu0 %vm1132_vm7, %v5649_v15 }
 0x3d2   :  { %5304 = vmatpush3.bf16.msra.mxu0 %v5666_v46 }
 0x3d3   :  { %5305 = vmatprep.subr.bf16.mxu0 %v5667_v47 }
 0x3d6   :  { %5306 = vmatpush3.bf16.msra.mxu0 %v5667_v47 }
 0x3d7   :  { %5307 = vmatprep.subr.bf16.mxu0 %v5668_v50 }
 0x3da   :  { %5308 = vmatpush3.bf16.msra.mxu0 %v5668_v50 }
 0x3db   :  { %5309 = vmatprep.subr.bf16.mxu0 %v5669_v53 }
 0x3de   :  { %5310 = vmatpush3.bf16.msra.mxu0 %v5669_v53 }
 0x3df   :  { %5311 = vmatprep.subr.bf16.mxu0 %v5670_v39 }
 0x3e2   :  { %5312 = vmatpush3.bf16.msra.mxu0 %v5670_v39 }
 0x3e3   :  { %5313 = vmatprep.subr.bf16.mxu0 %v5671_v40 }
 0x3e6   :  { %5314 = vmatpush3.bf16.msra.mxu0 %v5671_v40 }
 0x3e7   :  { %5315 = vmatprep.subr.bf16.mxu0 %v5672_v41 }
 0x3ea   :  { %5316 = vmatpush3.bf16.msra.mxu0 %v5672_v41 }
 0x3eb   :  { %5317 = vmatprep.subr.bf16.mxu0 %v5673_v42 }
 0x3ee   :  { %5318 = vmatpush3.bf16.msra.mxu0 %v5673_v42 }
 0x3ef   :  { %5323 = vmatprep.subr.bf16.mxu0 %v6510_v48 }
 0x4a4   :  { %v5301_v27 = vpop.f32.mrb[16].mxu0 }
 0x4a5   :  { %v1173_v29 = vpop.f32.mrb[17].mxu0 }
 0x4a6   :  { %v5302_v32 = vpop.f32.mrb[18].mxu0 }
 0x4a7   :  { %v1223_v33 = vpack.c.bf16 %v5302_v32, %v5301_v27  ;;  %v1176_v37 = vpop.f32.mrb[19].mxu0 }
 0x4a8   :  { %v1221_v18 = vpack.c.bf16 %v1176_v37, %v1173_v29 }
 0x4aa   :  { %1360 = vmatprep.mubr.bf16.mxu1 %v1221_v18 }
 0x4ab   :  { %1361 = vmatmul.mubr.bf16.vlgmr.msra.gmra.mrb[20].mxu1 %v1220_v51 }
 0x4ac   :  { %1368 = vmatprep.mubr.bf16.mxu1 %v1223_v33  ;;  %1697 = vmatpush1.bf16.msra.mxu1 %v5674_v43 }
 0x4ad   :  { %1698 = vmatprep.subr.bf16.mxu1 %v5680_v54 }
 0x4b0   :  { %1699 = vmatpush1.bf16.msra.mxu1 %v5678_v55  ;;  %v5681_v55 = vld [vmem:[%s7399_s5 + $0x1a0] ss:$12 sps:$4 sm:$0xff]  }
 0x4b1   :  { %1700 = vmatprep.subr.bf16.mxu1 %v5684_v56  ;;  %v5698_v56 = vld [vmem:[%s7399_s5 + $0x210] ss:$12 sps:$4 sm:$0xff]  }
 0x4b3   :  { %1369 = vmatmul.mubr.bf16.gmra.mrb[24].mxu1 %v1222_v34 }
 0x4b4   :  { %1728 = vmatprep.mubr.bf16.mxu1 %v5957_v38  ;;  %1701 = vmatpush1.bf16.msra.mxu1 %v5682_v57  ;;  %v5701_v57 = vld [vmem:[%s7399_s5 + $0x218] ss:$12 sps:$4 sm:$0xff]  }
 0x4b5   :  { %1702 = vmatprep.subr.bf16.mxu1 %v5688_v59  ;;  %v5704_v59 = vld [vmem:[%s7399_s5 + $0x22c] ss:$12 sps:$4 sm:$0xff]  }
 0x4b8   :  { %1703 = vmatpush1.bf16.msra.mxu1 %v5686_v60  ;;  %v5702_v60 = vld [vmem:[%s7399_s5 + $0x228] ss:$12 sps:$4 sm:$0xff]  }
 0x4b9   :  { %1704 = vmatprep.subr.bf16.mxu1 %v5692_v61  ;;  %v5705_v61 = vld [vmem:[%s7399_s5 + $0x230] ss:$12 sps:$4 sm:$0xff]  }
 0x4bc   :  { %1705 = vmatpush1.bf16.msra.mxu1 %v5690_v63  ;;  %v5708_v63 = vld [vmem:[%s7399_s5 + $0x244] ss:$12 sps:$4 sm:$0xff]  }
 0x4bd   :  { %1706 = vmatprep.subr.bf16.mxu1 %v5696_v0  ;;  %v5709_v0 = vld [vmem:[%s7399_s5 + $0x248] ss:$12 sps:$4 sm:$0xff]  }
 0x4c0   :  { %1707 = vmatpush1.bf16.msra.mxu1 %v5694_v1 }
 0x57e   :  { %v5007_v3 = vpop.f32.mrb[20].mxu1 }
 0x57f   :  { %v5008_v5 = vpop.f32.mrb[21].mxu1 }
 0x580   :  { %v5009_v6 = vadd.f32 %v5008_v5, %v5007_v3  ;;  %v5010_v7 = vpop.f32.mrb[22].mxu1  ;;  %v4408_v3 = vld [vmem:[%s7405_s11 + $0xa] ss:$0 sm:$0xff] }
 0x581   :  { %v5011_v8 = vpop.f32.mrb[23].mxu1 }
 0x582   :  { %v1363_v9 = vadd.f32 %v5009_v6, %v4370_v4  ;;  %v5012_v10 = vadd.f32 %v5011_v8, %v5010_v7 }
 0x584   :  { %v4387_v11 = vmul.f32 -1.442695, %v1363_v9  ;;  %v1366_v12 = vadd.f32 %v5012_v10, %v4370_v4 }
 0x586   :  { %5894 = vpow2.f32 %v4387_v11  ;;  %v4388_v13 = vmul.f32 -1.442695, %v1366_v12  ;;  %v5013_v15 = vpop.f32.mrb[24].mxu1  ;;  %v5706_v12 = vld [vmem:[%s7399_s5 + $0x240] ss:$12 sps:$4 sm:$0xff]  }
 0x587   :  { %v5014_v17 = vpop.f32.mrb[25].mxu1 }
 0x588   :  { %5896 = vpow2.f32 %v4388_v13  ;;  %v5015_v20 = vadd.f32 %v5014_v17, %v5013_v15  ;;  %v5016_v21 = vpop.f32.mrb[26].mxu1  ;;  %v5712_v15 = vld [vmem:[%s7399_s5 + $0x25c] ss:$12 sps:$4 sm:$0xff]   ;;  %v5713_v17 = vld [vmem:[%s7399_s5 + $0x260] ss:$12 sps:$4 sm:$0xff]  }
 0x589   :  { %v5017_v22 = vpop.f32.mrb[27].mxu1 }
 0x58a   :  { %v1371_v23 = vadd.f32 %v5015_v20, %v4370_v4  ;;  %v5018_v24 = vadd.f32 %v5017_v22, %v5016_v21  ;;  %v5710_v20 = vld [vmem:[%s7399_s5 + $0x258] ss:$12 sps:$4 sm:$0xff]   ;;  %v5716_v21 = vld [vmem:[%s7399_s5 + $0x274] ss:$12 sps:$4 sm:$0xff]   ;;  %v5714_v22 = vld [vmem:[%s7399_s5 + $0x270] ss:$12 sps:$4 sm:$0xff]  }
 0x58c   :  { %v4389_v25 = vmul.f32 -1.442695, %v1371_v23  ;;  %v1374_v26 = vadd.f32 %v5018_v24, %v4370_v4  ;;  %v5717_v23 = vld [vmem:[%s7399_s5 + $0x278] ss:$12 sps:$4 sm:$0xff]  }
 0x58d   :  { %v5720_v24 = vld [vmem:[%s7399_s5 + $0x28c] ss:$12 sps:$4 sm:$0xff]  }
 0x58e   :  { %5898 = vpow2.f32 %v4389_v25  ;;  %v4390_v27 = vmul.f32 -1.442695, %v1374_v26  ;;  %v5718_v25 = vld [vmem:[%s7399_s5 + $0x288] ss:$12 sps:$4 sm:$0xff]   ;;  %v5721_v26 = vld [vmem:[%s7399_s5 + $0x290] ss:$12 sps:$4 sm:$0xff]  }
 0x590   :  { %v5895_v19 = vpop.eup %5894  ;;  %5900 = vpow2.f32 %v4390_v27  ;;  %v5724_v27 = vld [vmem:[%s7399_s5 + $0x2a4] ss:$12 sps:$4 sm:$0xff]  }
 0x591   :  { %v1389_v28 = vadd.f32 1.0, %v5895_v19  ;;  %v5722_v19 = vld [vmem:[%s7399_s5 + $0x2a0] ss:$12 sps:$4 sm:$0xff]  }
 0x592   :  { %v5897_v29 = vpop.eup %5896 }
 0x593   :  { %5902 = vrcp.f32 %v1389_v28  ;;  %v1390_v32 = vadd.f32 1.0, %v5897_v29  ;;  %v5725_v28 = vld [vmem:[%s7399_s5 + $0x2a8] ss:$12 sps:$4 sm:$0xff]  }
 0x594   :  { %v5728_v29 = vld [vmem:[%s7399_s5 + $0x2bc] ss:$12 sps:$4 sm:$0xff]  }
 0x595   :  { %5904 = vrcp.f32 %v1390_v32  ;;  %v5726_v32 = vld [vmem:[%s7399_s5 + $0x2b8] ss:$12 sps:$4 sm:$0xff]  }
 0x598   :  { %v5899_v33 = vpop.eup %5898 }
 0x599   :  { %v1391_v37 = vadd.f32 1.0, %v5899_v33  ;;  %v5729_v33 = vld [vmem:[%s7399_s5 + $0x2c0] ss:$12 sps:$4 sm:$0xff]  }
 0x59a   :  { %v5901_v18 = vpop.eup %5900 }
 0x59b   :  { %5906 = vrcp.f32 %v1391_v37  ;;  %v1392_v44 = vadd.f32 1.0, %v5901_v18  ;;  %v5732_v37 = vld [vmem:[%s7399_s5 + $0x2d4] ss:$12 sps:$4 sm:$0xff]   ;;  %v5730_v18 = vld [vmem:[%s7399_s5 + $0x2d0] ss:$12 sps:$4 sm:$0xff]  }
 0x59d   :  { %v5903_v49 = vpop.eup %5902  ;;  %5908 = vrcp.f32 %v1392_v44  ;;  %v5733_v44 = vld [vmem:[%s7399_s5 + $0x2d8] ss:$12 sps:$4 sm:$0xff]  }
 0x59e   :  { %v1401_v51 = vmul.f32 %v5903_v49, %v6460_v30  ;;  %v5736_v49 = vld [vmem:[%s7399_s5 + $0x2ec] ss:$12 sps:$4 sm:$0xff]  }
 0x59f   :  { %v5905_v34 = vpop.eup %5904 }
 0x5a0   :  { %v1402_v46 = vmul.f32 %v5905_v34, %v6462_v36  ;;  %v1405_v47 = vadd.f32 %v1401_v51, %v6460_v30  ;;  %v5685_v30 = vld [vmem:[%s7399_s5 + $0x1b8] ss:$12 sps:$4 sm:$0xff]   ;;  %v5734_v51 = vld [vmem:[%s7399_s5 + $0x2e8] ss:$12 sps:$4 sm:$0xff]   ;;  %v5737_v34 = vld [vmem:[%s7399_s5 + $0x2f0] ss:$12 sps:$4 sm:$0xff]  }
 0x5a2   :  { %v1406_v50 = vadd.f32 %v1402_v46, %v6462_v36  ;;  %v5689_v36 = vld [vmem:[%s7399_s5 + $0x1d0] ss:$12 sps:$4 sm:$0xff]  }
 0x5a4   :  { %v1426_v53 = vpack.c.bf16 %v1406_v50, %v1405_v47 }
 0x5a5   :  { %v5907_v39 = vpop.eup %5906 }
 0x5a6   :  { %5319 = vmatprep.mubr.bf16.mxu0 %v1426_v53  ;;  %v1403_v40 = vmul.f32 %v5907_v39, %v6470_v52 }
 0x5a7   :  { %v5909_v41 = vpop.eup %5908 }
 0x5a8   :  { %v1404_v42 = vmul.f32 %v5909_v41, %v6472_v31  ;;  %v1407_v43 = vadd.f32 %v1403_v40, %v6470_v52  ;;  %v5693_v52 = vld [vmem:[%s7399_s5 + $0x1e8] ss:$12 sps:$4 sm:$0xff]  }
 0x5aa   :  { %v1408_v45 = vadd.f32 %v1404_v42, %v6472_v31  ;;  %v5697_v31 = vld [vmem:[%s7399_s5 + $0x200] ss:$12 sps:$4 sm:$0xff]  }
 0x5ac   :  { %v1427_v54 = vpack.c.bf16 %v1408_v45, %v1407_v43 }
 0x5ae   :  { %5320 = vmatmul.mubr.bf16.vlgmr.msra.gmra.mrb[20].mxu0 %v1427_v54 }
 0x5af   :  { %5324 = vmatpush3.bf16.msra.mxu0 %v6510_v48  ;;  %v5700_v48 = vld [vmem:[%s7399_s5 + $0x214] ss:$12 sps:$4 sm:$0xff]  }
 0x5b0   :  { %5325 = vmatprep.subr.bf16.mxu0 %v5681_v55  ;;  %1708 = vmatprep.subr.bf16.mxu1 %v5700_v48 }
 0x5b1   :  { %1709 = vmatpush1.bf16.msra.mxu1 %v5698_v56 }
 0x5b2   :  { %1710 = vmatprep.subr.bf16.mxu1 %v5704_v59 }
 0x5b3   :  { %5326 = vmatpush3.bf16.msra.mxu0 %v5681_v55 }
 0x5b4   :  { %5327 = vmatprep.subr.bf16.mxu0 %v5685_v30 }
 0x5b5   :  { %1711 = vmatpush1.bf16.msra.mxu1 %v5702_v60 }
 0x5b6   :  { %2009 = vmatprep.subr.bf16.mxu1 %v5708_v63 }
 0x5b7   :  { %5328 = vmatpush3.bf16.msra.mxu0 %v5685_v30 }
 0x5b8   :  { %5329 = vmatprep.subr.bf16.mxu0 %v5689_v36 }
 0x5bb   :  { %5330 = vmatpush3.bf16.msra.mxu0 %v5689_v36 }
 0x5bc   :  { %5331 = vmatprep.subr.bf16.mxu0 %v5693_v52 }
 0x5bf   :  { %5332 = vmatpush3.bf16.msra.mxu0 %v5693_v52 }
 0x5c0   :  { %5333 = vmatprep.subr.bf16.mxu0 %v5697_v31 }
 0x5c3   :  { %5334 = vmatpush3.bf16.msra.mxu0 %v5697_v31 }
 0x5c4   :  { %5335 = vmatprep.subr.bf16.mxu0 %v5701_v57 }
 0x5c7   :  { %5336 = vmatpush3.bf16.msra.mxu0 %v5701_v57 }
 0x5c8   :  { %5337 = vmatprep.subr.bf16.mxu0 %v5705_v61 }
 0x5cb   :  { %5338 = vmatpush3.bf16.msra.mxu0 %v5705_v61 }
 0x5cc   :  { %5343 = vmatprep.subr.bf16.mxu0 %v5709_v0 }
 0x681   :  { %v5321_v1 = vpop.f32.mrb[20].mxu0 }
 0x682   :  { %v1518_v4 = vpop.f32.mrb[21].mxu0  ;;  %v6603_v10 = vadd.f32 %v5321_v1, %v4408_v3 }
 0x683   :  { %v5322_v5 = vpop.f32.mrb[22].mxu0  ;;  %v6599_v8 = vadd.f32 %v4408_v3, %v1518_v4 }
 0x684   :  { %v6597_v6 = vadd.f32 %v5322_v5, %v4408_v3  ;;  %v1521_v7 = vpop.f32.mrb[23].mxu0 }
 0x685   :  { %v6601_v9 = vadd.f32 %v4408_v3, %v1521_v7 }
 0x686   :  { %v1567_v13 = vpack.c.bf16 %v6597_v6, %v6603_v10 }
 0x687   :  { %v1566_v11 = vpack.c.bf16 %v6601_v9, %v6599_v8 }
 0x689   :  { %1729 = vmatmul.mubr.bf16.vlgmr.msra.gmra.mrb[28].mxu1 %v1566_v11  ;;  %5339 = vmatprep.mubr.bf16.mxu0 %v1566_v11 }
 0x68a   :  { %5340 = vmatmul.mubr.bf16.vlgmr.msra.gmra.mrb[24].mxu0 %v1567_v13  ;;  %1738 = vmatprep.mubr.bf16.mxu1 %v5957_v38 }
 0x68b   :  { %2010 = vmatpush1.bf16.msra.mxu1 %v5706_v12  ;;  %5344 = vmatpush3.bf16.msra.mxu0 %v5709_v0 }
 0x68c   :  { %2011 = vmatprep.subr.bf16.mxu1 %v5712_v15  ;;  %5345 = vmatprep.subr.bf16.mxu0 %v5713_v17 }
 0x68f   :  { %2012 = vmatpush1.bf16.msra.mxu1 %v5710_v20  ;;  %5346 = vmatpush3.bf16.msra.mxu0 %v5713_v17  ;;  %v4474_v17 = vld [vmem:[%s7405_s11 + $0x3] ss:$0 sm:$0xff] }
 0x690   :  { %2013 = vmatprep.subr.bf16.mxu1 %v5716_v21  ;;  %5347 = vmatprep.subr.bf16.mxu0 %v5717_v23 }
 0x691   :  { %1739 = vmatmul.mubr.bf16.gmra.mrb[32].mxu1 %v1567_v13 }
 0x692   :  { %2041 = vmatprep.mubr.bf16.mxu1 %v5957_v38 }
 0x693   :  { %2014 = vmatpush1.bf16.msra.mxu1 %v5714_v22  ;;  %5348 = vmatpush3.bf16.msra.mxu0 %v5717_v23 }
 0x694   :  { %2015 = vmatprep.subr.bf16.mxu1 %v5720_v24  ;;  %5349 = vmatprep.subr.bf16.mxu0 %v5721_v26 }
 0x697   :  { %2016 = vmatpush1.bf16.msra.mxu1 %v5718_v25  ;;  %5350 = vmatpush3.bf16.msra.mxu0 %v5721_v26 }
 0x698   :  { %2017 = vmatprep.subr.bf16.mxu1 %v5724_v27  ;;  %5351 = vmatprep.subr.bf16.mxu0 %v5725_v28 }
 0x69b   :  { %2018 = vmatpush1.bf16.msra.mxu1 %v5722_v19  ;;  %5352 = vmatpush3.bf16.msra.mxu0 %v5725_v28 }
 0x69c   :  { %2019 = vmatprep.subr.bf16.mxu1 %v5728_v29  ;;  %5353 = vmatprep.subr.bf16.mxu0 %v5729_v33 }
 0x69f   :  { %2020 = vmatpush1.bf16.msra.mxu1 %v5726_v32  ;;  %5354 = vmatpush3.bf16.msra.mxu0 %v5729_v33 }
 0x6a0   :  { %2021 = vmatprep.subr.bf16.mxu1 %v5732_v37  ;;  %5355 = vmatprep.subr.bf16.mxu0 %v5733_v44 }
 0x6a3   :  { %2022 = vmatpush1.bf16.msra.mxu1 %v5730_v18  ;;  %5356 = vmatpush3.bf16.msra.mxu0 %v5733_v44 }
 0x6a4   :  { %2023 = vmatprep.subr.bf16.mxu1 %v5736_v49  ;;  %5357 = vmatprep.subr.bf16.mxu0 %v5737_v34  ;;  %v5738_v49 = vld [vmem:[%s7401_s7 + $0x40] sm:$0xff]  }
 0x6a7   :  { %2024 = vmatpush1.bf16.msra.mxu1 %v5734_v51  ;;  %5358 = vmatpush3.bf16.msra.mxu0 %v5737_v34  ;;  %v5739_v34 = vld [vmem:[%s7401_s7 + $0x48] sm:$0xff]  }
 0x6a8   :  { %5363 = vmatprep.subr.bf16.mxu1 %v5958_v14  ;;  %5383 = vmatprep.subr.bf16.mxu0 %v5958_v14 }
 0x75c   :  { %v1730_v46 = vpop.f32.mrb[28].mxu1 }
 0x75d   :  { %v1732_v47 = vpop.f32.mrb[29].mxu1  ;;  %v5341_v50 = vpop.f32.mrb[24].mxu0  ;;  %v1798_v40 = vrot.slane %v1730_v46, 7  ;;  %v5740_v46 = vld [vmem:[%s7401_s7 + $0x50] sm:$0xff]  }
 0x75e   :  { %v1734_v53 = vpop.f32.mrb[30].mxu1  ;;  %v1783_v39 = vpop.f32.mrb[25].mxu0  ;;  %v1816_v54 = vrot.slane %v5341_v50, 1  ;;  %v5742_v50 = vld [vmem:[%s7401_s7 + $0x60] sm:$0xff]  }
 0x75f   :  { %v1799_v41 = vrot.slane %v1734_v53, 7  ;;  %v1814_v42 = vrot.slane %v1783_v39, 1  ;;  %v1736_v43 = vpop.f32.mrb[31].mxu1  ;;  %v5342_v45 = vpop.f32.mrb[26].mxu0  ;;  %v5743_v53 = vld [vmem:[%s7401_s7 + $0x68] sm:$0xff]   ;;  %v5744_v39 = vld [vmem:[%s7401_s7 + $0x70] sm:$0xff]  }
 0x760   :  { %v1817_v55 = vrot.slane %v5342_v45, 1  ;;  %v1786_v30 = vpop.f32.mrb[27].mxu0  ;;  %v5746_v45 = vld [vmem:[%s7402_s8 + $0x40] sm:$0xff]  }
 0x761   :  { %v1804_v36 = vsel %vm514_vm0, %v1798_v40, %v1799_v41  ;;  %v1815_v52 = vrot.slane %v1786_v30, 1  ;;  %v5749_v30 = vld [vmem:[%s7402_s8 + $0x58] sm:$0xff]  }
 0x762   :  { %v1811_v31 = vadd.f32 %v1804_v36, %v1736_v43  ;;  %v1818_v48 = vsel %vm539_vm1, %v1816_v54, %v1817_v55  ;;  %v1821_v56 = vsel %vm539_vm1, %v1817_v55, %v1814_v42  ;;  %v5748_v55 = vld [vmem:[%s7402_s8 + $0x50] sm:$0xff]   ;;  %v5750_v36 = vld [vmem:[%s7402_s8 + $0x60] sm:$0xff]  }
 0x763   :  { %v1819_v57 = vsel %vm539_vm1, %v1815_v52, %v1816_v54  ;;  %v1820_v59 = vsel %vm539_vm1, %v1814_v42, %v1815_v52  ;;  %v1825_v24 = vsel %vm6273_vm5, %v1821_v56, 0.0  ;;  %v4534_v42 = vld [vmem:[%s7395_s1 + $0x18] sm:$0xff]  ;;  %v5747_v54 = vld [vmem:[%s7402_s8 + $0x48] sm:$0xff]  }
 0x764   :  { %v1823_v60 = vsel %vm6246_vm2, %v1819_v57, 0.0  ;;  %v1740_v61 = vpop.f32.mrb[32].mxu1  ;;  %v5751_v52 = vld [vmem:[%s7402_s8 + $0x68] sm:$0xff]  }
 0x765   :  { %v1827_v63 = vadd.f32 %v1823_v60, %v1811_v31  ;;  %v1800_v0 = vrot.slane %v1740_v61, 7  ;;  %v1742_v1 = vpop.f32.mrb[33].mxu1  ;;  %v5752_v31 = vld [vmem:[%s7402_s8 + $0x70] sm:$0xff]  }
 0x766   :  { %v1744_v3 = vpop.f32.mrb[34].mxu1 }
 0x767   :  { %v1803_v4 = vsel %vm514_vm0, %v1799_v41, %v1800_v0  ;;  %v1801_v5 = vrot.slane %v1744_v3, 7  ;;  %v1746_v7 = vpop.f32.mrb[35].mxu1  ;;  %v1839_v26 = vadd.f32 %v4474_v17, %v1827_v63  ;;  %v4533_v41 = vld [vmem:[%s7395_s1 + $0x10] sm:$0xff] }
 0x768   :  { %v1808_v11 = vsel %vm6261_vm3, %v1803_v4, 0.0  ;;  %v2183_v43 = vpack.c.bf16 %v4534_v42, %v4533_v41 }
 0x769   :  { %v1812_v12 = vadd.f32 %v1808_v11, %v1742_v1  ;;  %v1805_v13 = vsel %vm514_vm0, %v1801_v5, %v1798_v40  ;;  %v1802_v15 = vsel %vm514_vm0, %v1800_v0, %v1801_v5  ;;  %v1843_v37 = vmax.f32 %v1839_v26, 0.0  ;;  %v5745_v40 = vld [vmem:[%s7401_s7 + $0x78] sm:$0xff]  }
 0x76a   :  { %v1806_v20 = vsel %vm6267_vm4, %v1805_v13, 0.0  ;;  %v1813_v21 = vadd.f32 %v1802_v15, %v1746_v7 }
 0x76b   :  { %v1828_v22 = vadd.f32 %v1818_v48, %v1812_v12  ;;  %v1810_v23 = vadd.f32 %v1806_v20, %v1732_v47  ;;  %v5741_v47 = vld [vmem:[%s7401_s7 + $0x58] sm:$0xff]  }
 0x76c   :  { %v1829_v25 = vadd.f32 %v1825_v24, %v1813_v21  ;;  %v5753_v48 = vld [vmem:[%s7402_s8 + $0x78] sm:$0xff]  }
 0x76d   :  { %v1840_v27 = vadd.f32 %v4474_v17, %v1828_v22  ;;  %v1826_v19 = vadd.f32 %v1820_v59, %v1810_v23 }
 0x76e   :  { %v1841_v28 = vadd.f32 %v4474_v17, %v1829_v25 }
 0x76f   :  { %v1844_v29 = vmax.f32 %v1840_v27, 0.0  ;;  %v1838_v32 = vadd.f32 %v4474_v17, %v1826_v19 }
 0x770   :  { %v1845_v33 = vmax.f32 %v1841_v28, 0.0 }
 0x771   :  { %v1842_v18 = vmax.f32 %v1838_v32, 0.0 }
 0x772   :  { %v1880_v44 = vpack.c.bf16 %v1845_v33, %v1844_v29 }
 0x773   :  { %v1879_v51 = vpack.c.bf16 %v1843_v37, %v1842_v18 }
 0x775   :  { %2042 = vmatmul.mubr.bf16.vlgmr.msra.gmra.mrb[36].mxu1 %v1879_v51  ;;  %5359 = vmatprep.mubr.bf16.mxu0 %v1879_v51 }
 0x776   :  { %5364 = vmatpush3.bf16.msra.mxu1 %v5738_v49  ;;  %5360 = vmatmul.mubr.bf16.vlgmr.msra.gmra.mrb[28].mxu0 %v1880_v44 }
 0x777   :  { %5365 = vmatprep.subr.bf16.mxu1 %v5958_v14  ;;  %2051 = vmatprep.mubr.bf16.mxu1 %v5957_v38 }
 0x778   :  { %5399 = vmatprep.mubr.msk.bf16.mxu0 %vm5959_vm6, %v5958_v14  ;;  %5384 = vmatpush3.bf16.msra.mxu0 %v5746_v45 }
 0x779   :  { %5385 = vmatprep.subr.bf16.mxu0 %v5958_v14 }
 0x77a   :  { %5366 = vmatpush3.bf16.msra.mxu1 %v5739_v34 }
 0x77b   :  { %5367 = vmatprep.subr.bf16.mxu1 %v5958_v14 }
 0x77c   :  { %5386 = vmatpush3.bf16.msra.mxu0 %v5747_v54 }
 0x77d   :  { %2052 = vmatmul.mubr.bf16.gmra.mrb[40].mxu1 %v1880_v44  ;;  %5387 = vmatprep.subr.bf16.mxu0 %v5958_v14 }
 0x77e   :  { %5368 = vmatpush3.bf16.msra.mxu1 %v5740_v46  ;;  %5379 = vmatprep.mubr.msk.bf16.mxu1 %vm5959_vm6, %v5958_v14 }
 0x77f   :  { %5369 = vmatprep.subr.bf16.mxu1 %v5958_v14 }
 0x780   :  { %5388 = vmatpush3.bf16.msra.mxu0 %v5748_v55 }
 0x781   :  { %5389 = vmatprep.subr.bf16.mxu0 %v5958_v14 }
 0x782   :  { %5370 = vmatpush3.bf16.msra.mxu1 %v5741_v47 }
 0x783   :  { %5371 = vmatprep.subr.bf16.mxu1 %v5958_v14 }
 0x784   :  { %5390 = vmatpush3.bf16.msra.mxu0 %v5749_v30 }
 0x785   :  { %5391 = vmatprep.subr.bf16.mxu0 %v5958_v14 }
 0x786   :  { %5372 = vmatpush3.bf16.msra.mxu1 %v5742_v50 }
 0x787   :  { %5373 = vmatprep.subr.bf16.mxu1 %v5958_v14 }
 0x788   :  { %5392 = vmatpush3.bf16.msra.mxu0 %v5750_v36 }
 0x789   :  { %5393 = vmatprep.subr.bf16.mxu0 %v5958_v14 }
 0x78a   :  { %5374 = vmatpush3.bf16.msra.mxu1 %v5743_v53 }
 0x78b   :  { %5375 = vmatprep.subr.bf16.mxu1 %v5958_v14 }
 0x78c   :  { %5394 = vmatpush3.bf16.msra.mxu0 %v5751_v52  ;;  %v5754_v52 = vld [vmem:[%s7403_s9 + $0x10] sm:$0xff]  }
 0x78d   :  { %5395 = vmatprep.subr.bf16.mxu0 %v5958_v14 }
 0x78e   :  { %5376 = vmatpush3.bf16.msra.mxu1 %v5744_v39  ;;  %v4552_v39 = vld [vmem:[%s7405_s11 + $0xe] ss:$0 sm:$0xff] }
 0x78f   :  { %5377 = vmatprep.subr.bf16.mxu1 %v5958_v14 }
 0x790   :  { %5396 = vmatpush3.bf16.msra.mxu0 %v5752_v31 }
 0x791   :  { %5397 = vmatprep.subr.bf16.mxu0 %v5958_v14 }
 0x792   :  { %5378 = vmatpush3.bf16.msra.mxu1 %v5745_v40 }
 0x794   :  { %5398 = vmatpush3.bf16.msra.mxu0 %v5753_v48 }
 0x795   :  { %5380 = vmatmul.mubr.bf16.vlgmr.msra.gmra.mrb[44].mxu1 %v2183_v43 }
 0x796   :  { %5405 = vmatprep.mubr.msk.bf16.mxu1 %vm1132_vm7, %v5754_v52  ;;  %v5790_v52 = vld [vmem:[%s7399_s5 + $0x334] ss:$12 sps:$4 sm:$0xff]  }
 0x848   :  { %v2043_v56 = vpop.f32.mrb[36].mxu1 }
 0x849   :  { %v2045_v57 = vpop.f32.mrb[37].mxu1  ;;  %v5361_v59 = vpop.f32.mrb[28].mxu0  ;;  %v2111_v63 = vrot.slane %v2043_v56, 7 }
 0x84a   :  { %v2047_v60 = vpop.f32.mrb[38].mxu1  ;;  %v2096_v61 = vpop.f32.mrb[29].mxu0  ;;  %v2129_v5 = vrot.slane %v5361_v59, 1 }
 0x84b   :  { %v2112_v0 = vrot.slane %v2047_v60, 7  ;;  %v2127_v1 = vrot.slane %v2096_v61, 1  ;;  %v2049_v3 = vpop.f32.mrb[39].mxu1  ;;  %v5362_v4 = vpop.f32.mrb[30].mxu0  ;;  %v5756_v60 = vld [vmem:[%s7400_s6 + $0xc0] sm:$0xff]   ;;  %v5755_v61 = vld [vmem:[%s7403_s9 + $0x18] sm:$0xff]  }
 0x84c   :  { %v2130_v7 = vrot.slane %v5362_v4, 1  ;;  %v2099_v11 = vpop.f32.mrb[31].mxu0  ;;  %v5761_v4 = vld [vmem:[%s7400_s6 + $0x90] sm:$0xff]  }
 0x84d   :  { %v2117_v12 = vsel %vm514_vm0, %v2111_v63, %v2112_v0  ;;  %v2128_v13 = vrot.slane %v2099_v11, 1  ;;  %v5764_v11 = vld [vmem:[%s7400_s6 + $0xe0] sm:$0xff]  }
 0x84e   :  { %v2124_v15 = vadd.f32 %v2117_v12, %v2049_v3  ;;  %v2131_v17 = vsel %vm539_vm1, %v2129_v5, %v2130_v7  ;;  %v2134_v20 = vsel %vm539_vm1, %v2130_v7, %v2127_v1  ;;  %v5760_v3 = vld [vmem:[%s7400_s6 + $0xd0] sm:$0xff]   ;;  %v5763_v7 = vld [vmem:[%s7400_s6 + $0x98] sm:$0xff]   ;;  %v5765_v12 = vld [vmem:[%s7400_s6 + $0xa0] sm:$0xff]  }
 0x84f   :  { %v2132_v21 = vsel %vm539_vm1, %v2128_v13, %v2129_v5  ;;  %v2133_v22 = vsel %vm539_vm1, %v2127_v1, %v2128_v13  ;;  %v2138_v47 = vsel %vm6273_vm5, %v2134_v20, 0.0  ;;  %v5759_v1 = vld [vmem:[%s7400_s6 + $0x88] sm:$0xff]   ;;  %v5762_v5 = vld [vmem:[%s7400_s6 + $0xd8] sm:$0xff]   ;;  %v5769_v20 = vld [vmem:[%s7400_s6 + $0xb0] sm:$0xff]  }
 0x850   :  { %v2136_v23 = vsel %vm6246_vm2, %v2132_v21, 0.0  ;;  %v2053_v24 = vpop.f32.mrb[40].mxu1  ;;  %v5766_v13 = vld [vmem:[%s7400_s6 + $0xe8] sm:$0xff]   ;;  %v5770_v21 = vld [vmem:[%s7400_s6 + $0xf8] sm:$0xff]  }
 0x851   :  { %v6791_v25 = vadd.f32 %v2136_v23, %v2124_v15  ;;  %v2113_v26 = vrot.slane %v2053_v24, 7  ;;  %v2055_v27 = vpop.f32.mrb[41].mxu1  ;;  %v5767_v15 = vld [vmem:[%s7400_s6 + $0xa8] sm:$0xff]   ;;  %v4532_v23 = vld [vmem:[%s7405_s11 + $0x4] ss:$0 sm:$0xff] }
 0x852   :  { %v2057_v19 = vpop.f32.mrb[42].mxu1 }
 0x853   :  { %v2116_v28 = vsel %vm514_vm0, %v2112_v0, %v2113_v26  ;;  %v2114_v29 = vrot.slane %v2057_v19, 7  ;;  %v2059_v32 = vpop.f32.mrb[43].mxu1  ;;  %v5758_v0 = vld [vmem:[%s7400_s6 + $0xc8] sm:$0xff]  }
 0x854   :  { %v2121_v33 = vsel %vm6261_vm3, %v2116_v28, 0.0 }
 0x855   :  { %v2125_v37 = vadd.f32 %v2121_v33, %v2055_v27  ;;  %v2118_v18 = vsel %vm514_vm0, %v2114_v29, %v2111_v63  ;;  %v2115_v44 = vsel %vm514_vm0, %v2113_v26, %v2114_v29  ;;  %v5757_v63 = vld [vmem:[%s7400_s6 + $0x80] sm:$0xff]   ;;  %v2152_v26 = vadd.f32 %v4532_v23, %v6791_v25 }
 0x856   :  { %v2119_v49 = vsel %vm6267_vm4, %v2118_v18, 0.0  ;;  %v2126_v51 = vadd.f32 %v2115_v44, %v2059_v32 }
 0x857   :  { %v6803_v34 = vadd.f32 %v2131_v17, %v2125_v37  ;;  %v2123_v46 = vadd.f32 %v2119_v49, %v2045_v57  ;;  %v5768_v17 = vld [vmem:[%s7400_s6 + $0xf0] sm:$0xff]   ;;  %v2156_v19 = vadd.f32 %v2152_v26, %v6601_v9 }
 0x858   :  { %v6807_v50 = vadd.f32 %v2138_v47, %v2126_v51 }
 0x859   :  { %v2139_v53 = vadd.f32 %v2133_v22, %v2123_v46  ;;  %v5771_v22 = vld [vmem:[%s7400_s6 + $0xb8] sm:$0xff]   ;;  %v2153_v29 = vadd.f32 %v4532_v23, %v6803_v34  ;;  %v6878_v51 = vmax.f32 %v2156_v19, 0.0 }
 0x85a   :  { %v2154_v32 = vadd.f32 %v4532_v23, %v6807_v50 }
 0x85b   :  { %v2151_v24 = vadd.f32 %v4532_v23, %v2139_v53  ;;  %v2157_v25 = vadd.f32 %v2153_v29, %v6603_v10  ;;  %v5773_v10 = vld [vmem:[%s7398_s4 + $0x88] sm:$0xff]   ;;  %v5774_v53 = vld [vmem:[%s7398_s4 + $0x90] sm:$0xff]  }
 0x85d   :  { %v2155_v27 = vadd.f32 %v2151_v24, %v6599_v8  ;;  %v2158_v8 = vadd.f32 %v2154_v32, %v6597_v6  ;;  %v6884_v34 = vmax.f32 %v2157_v25, 0.0  ;;  %v5772_v6 = vld [vmem:[%s7398_s4 + $0x80] sm:$0xff]  }
 0x85e   :  { %5409 = vmatprep.subr.bf16.mxu0 %v5772_v6 }
 0x85f   :  { %v6876_v37 = vmax.f32 %v2155_v27, 0.0  ;;  %v6886_v47 = vmax.f32 %v2158_v8, 0.0 }
 0x861   :  { %v2494_v9 = vpack.c.bf16 %v6878_v51, %v6876_v37  ;;  %v2496_v50 = vpack.c.bf16 %v6886_v47, %v6884_v34 }
 0x868   :  { %v2274_v40 = vpop.f32.mrb[44].mxu1 }
 0x869   :  { %v2275_v41 = vadd.f32 %v4552_v39, %v2274_v40  ;;  %v5381_v42 = vpop.f32.mrb[45].mxu1  ;;  %v5776_v40 = vld [vmem:[%s7398_s4 + $0xa0] sm:$0xff]  }
 0x86a   :  { %v2277_v43 = vpop.f32.mrb[46].mxu1  ;;  %v5778_v42 = vld [vmem:[%s7398_s4 + $0xb0] sm:$0xff]  }
 0x86b   :  { %v2278_v45 = vadd.f32 %v4552_v39, %v2277_v43  ;;  %v5382_v54 = vpop.f32.mrb[47].mxu1  ;;  %v2281_v55 = vmax.f32 %v2275_v41, 0.0  ;;  %v5775_v39 = vld [vmem:[%s7398_s4 + $0x98] sm:$0xff]   ;;  %v5777_v41 = vld [vmem:[%s7398_s4 + $0xa8] sm:$0xff]  }
 0x86c   :  { %v5779_v43 = vld [vmem:[%s7398_s4 + $0xb8] sm:$0xff]   ;;  %v5782_v54 = vld [vmem:[%s7399_s5 + $0x304] ss:$12 sps:$4 sm:$0xff]  }
 0x86d   :  { %v2282_v30 = vmax.f32 %v2278_v45, 0.0  ;;  %v5780_v45 = vld [vmem:[%s7399_s5 + $0x300] ss:$12 sps:$4 sm:$0xff]  }
 0x86f   :  { %v2305_v36 = vpack.c.bf16 %v2282_v30, %v2281_v55  ;;  %v6924_v55 = vld [vmem:[%s7399_s5 + $0x308] ss:$12 sps:$4 sm:$0xff]  }
 0x870   :  { %v5786_v30 = vld [vmem:[%s7399_s5 + $0x31c] ss:$12 sps:$4 sm:$0xff]  }
 0x871   :  { %5400 = vmatmul.mubr.bf16.vlgmr.msra.gmra.mrb[32].mxu0 %v2305_v36  ;;  %v5784_v36 = vld [vmem:[%s7399_s5 + $0x318] ss:$12 sps:$4 sm:$0xff]  }
 0x872   :  { %5410 = vmatpush3.bf16.msra.mxu0 %v5772_v6 }
 0x873   :  { %5411 = vmatprep.subr.bf16.mxu0 %v5773_v10 }
 0x876   :  { %5412 = vmatpush3.bf16.msra.mxu0 %v5773_v10 }
 0x877   :  { %5413 = vmatprep.subr.bf16.mxu0 %v5774_v53 }
 0x87a   :  { %5414 = vmatpush3.bf16.msra.mxu0 %v5774_v53 }
 0x87b   :  { %5415 = vmatprep.subr.bf16.mxu0 %v5775_v39 }
 0x87e   :  { %5416 = vmatpush3.bf16.msra.mxu0 %v5775_v39 }
 0x87f   :  { %5417 = vmatprep.subr.bf16.mxu0 %v5776_v40 }
 0x882   :  { %5418 = vmatpush3.bf16.msra.mxu0 %v5776_v40 }
 0x883   :  { %5419 = vmatprep.subr.bf16.mxu0 %v5777_v41 }
 0x886   :  { %5420 = vmatpush3.bf16.msra.mxu0 %v5777_v41 }
 0x887   :  { %5421 = vmatprep.subr.bf16.mxu0 %v5778_v42 }
 0x88a   :  { %5422 = vmatpush3.bf16.msra.mxu0 %v5778_v42 }
 0x88b   :  { %5423 = vmatprep.subr.bf16.mxu0 %v5779_v43 }
 0x88e   :  { %5424 = vmatpush3.bf16.msra.mxu0 %v5779_v43 }
 0x88f   :  { %5429 = vmatprep.subr.bf16.mxu0 %v6924_v55 }
 0x944   :  { %v2388_v31 = vpop.f32.mrb[32].mxu0 }
 0x945   :  { %v5401_v48 = vpop.f32.mrb[33].mxu0 }
 0x946   :  { %v2391_v56 = vpop.f32.mrb[34].mxu0  ;;  %v5794_v48 = vld [vmem:[%s7399_s5 + $0x34c] ss:$12 sps:$4 sm:$0xff]  }
 0x947   :  { %v2395_v57 = vpack.c.bf16 %v2391_v56, %v2388_v31  ;;  %v5402_v59 = vpop.f32.mrb[35].mxu0  ;;  %v5788_v31 = vld [vmem:[%s7399_s5 + $0x330] ss:$12 sps:$4 sm:$0xff]   ;;  %v5792_v56 = vld [vmem:[%s7399_s5 + $0x348] ss:$12 sps:$4 sm:$0xff]  }
 0x948   :  { %v5796_v59 = vld [vmem:[%s7399_s5 + $0x360] ss:$12 sps:$4 sm:$0xff]  }
 0x949   :  { %5403 = vmatprep.subr.bf16.mxu1 %v2395_v57 }
 0x94a   :  { %5404 = vmatpush3.bf16.msra.mxu1 %v2395_v57  ;;  %v5798_v57 = vld [vmem:[%s7399_s5 + $0x364] ss:$12 sps:$4 sm:$0xff]  }
 0x94b   :  { %5070 = vmatprep.subr.bf16.mxu1 %v5756_v60  ;;  %v5802_v60 = vld [vmem:[%s7399_s5 + $0x37c] ss:$12 sps:$4 sm:$0xff]  }
 0x94d   :  { %5406 = vmatmul.mubr.msk.bf16.vlgmr.msra.gmra.mrb[48].mxu1 %vm1132_vm7, %v5755_v61  ;;  %v5800_v61 = vld [vmem:[%s7399_s5 + $0x378] ss:$12 sps:$4 sm:$0xff]  }
 0x94e   :  { %5071 = vmatpush3.bf16.msra.mxu1 %v5757_v63 }
 0x94f   :  { %5072 = vmatprep.subr.bf16.mxu1 %v5758_v0  ;;  %v4626_v0 = vld [vmem:[%s7405_s11 + $0x8] ss:$0 sm:$0xff] }
 0x952   :  { %5073 = vmatpush3.bf16.msra.mxu1 %v5759_v1 }
 0x953   :  { %5074 = vmatprep.subr.bf16.mxu1 %v5760_v3 }
 0x956   :  { %5075 = vmatpush3.bf16.msra.mxu1 %v5761_v4 }
 0x957   :  { %5076 = vmatprep.subr.bf16.mxu1 %v5762_v5 }
 0x95a   :  { %5077 = vmatpush3.bf16.msra.mxu1 %v5763_v7 }
 0x95b   :  { %5078 = vmatprep.subr.bf16.mxu1 %v5764_v11 }
 0x95e   :  { %5079 = vmatpush3.bf16.msra.mxu1 %v5765_v12 }
 0x95f   :  { %5080 = vmatprep.subr.bf16.mxu1 %v5766_v13 }
 0x962   :  { %5081 = vmatpush3.bf16.msra.mxu1 %v5767_v15 }
 0x963   :  { %5082 = vmatprep.subr.bf16.mxu1 %v5768_v17 }
 0x966   :  { %5083 = vmatpush3.bf16.msra.mxu1 %v5769_v20 }
 0x967   :  { %5084 = vmatprep.subr.bf16.mxu1 %v5770_v21 }
 0x96a   :  { %5085 = vmatpush3.bf16.msra.mxu1 %v5771_v22 }
 0x96b   :  { %2970 = vmatprep.subr.bf16.mxu1 %v5782_v54 }
 0xa20   :  { %v5407_v28 = vpop.f32.mrb[48].mxu1 }
 0xa21   :  { %v2446_v33 = vpop.f32.mrb[49].mxu1 }
 0xa22   :  { %v5408_v18 = vpop.f32.mrb[50].mxu1 }
 0xa23   :  { %v2497_v44 = vpack.c.bf16 %v5408_v18, %v5407_v28  ;;  %v2449_v49 = vpop.f32.mrb[51].mxu1 }
 0xa24   :  { %v2495_v46 = vpack.c.bf16 %v2449_v49, %v2446_v33 }
 0xa26   :  { %2634 = vmatprep.mubr.bf16.mxu1 %v2495_v46 }
 0xa27   :  { %2635 = vmatmul.mubr.bf16.vlgmr.msra.gmra.mrb[52].mxu1 %v2494_v9 }
 0xa28   :  { %2642 = vmatprep.mubr.bf16.mxu1 %v2497_v44  ;;  %2971 = vmatpush1.bf16.msra.mxu1 %v5780_v45 }
 0xa29   :  { %2972 = vmatprep.subr.bf16.mxu1 %v5786_v30 }
 0xa2c   :  { %2973 = vmatpush1.bf16.msra.mxu1 %v5784_v36  ;;  %v5787_v36 = vld [vmem:[%s7399_s5 + $0x320] ss:$12 sps:$4 sm:$0xff]  }
 0xa2d   :  { %2974 = vmatprep.subr.bf16.mxu1 %v5790_v52  ;;  %v5804_v52 = vld [vmem:[%s7399_s5 + $0x390] ss:$12 sps:$4 sm:$0xff]  }
 0xa2f   :  { %2643 = vmatmul.mubr.bf16.gmra.mrb[56].mxu1 %v2496_v50 }
 0xa30   :  { %3002 = vmatprep.mubr.bf16.mxu1 %v5957_v38  ;;  %2975 = vmatpush1.bf16.msra.mxu1 %v5788_v31  ;;  %v5807_v31 = vld [vmem:[%s7399_s5 + $0x398] ss:$12 sps:$4 sm:$0xff]  }
 0xa31   :  { %2976 = vmatprep.subr.bf16.mxu1 %v5794_v48  ;;  %v5810_v48 = vld [vmem:[%s7399_s5 + $0x3ac] ss:$12 sps:$4 sm:$0xff]  }
 0xa34   :  { %2977 = vmatpush1.bf16.msra.mxu1 %v5792_v56  ;;  %v5808_v56 = vld [vmem:[%s7399_s5 + $0x3a8] ss:$12 sps:$4 sm:$0xff]  }
 0xa35   :  { %2978 = vmatprep.subr.bf16.mxu1 %v5798_v57  ;;  %v5811_v57 = vld [vmem:[%s7399_s5 + $0x3b0] ss:$12 sps:$4 sm:$0xff]  }
 0xa38   :  { %2979 = vmatpush1.bf16.msra.mxu1 %v5796_v59  ;;  %v5814_v59 = vld [vmem:[%s7399_s5 + $0x3c4] ss:$12 sps:$4 sm:$0xff]  }
 0xa39   :  { %2980 = vmatprep.subr.bf16.mxu1 %v5802_v60  ;;  %v5815_v60 = vld [vmem:[%s7399_s5 + $0x3c8] ss:$12 sps:$4 sm:$0xff]  }
 0xa3c   :  { %2981 = vmatpush1.bf16.msra.mxu1 %v5800_v61 }
 0xafa   :  { %v5086_v63 = vpop.f32.mrb[52].mxu1 }
 0xafb   :  { %v5087_v1 = vpop.f32.mrb[53].mxu1 }
 0xafc   :  { %v5088_v3 = vadd.f32 %v5087_v1, %v5086_v63  ;;  %v5089_v4 = vpop.f32.mrb[54].mxu1  ;;  %v4664_v63 = vld [vmem:[%s7405_s11 + $0xb] ss:$0 sm:$0xff] }
 0xafd   :  { %v5090_v5 = vpop.f32.mrb[55].mxu1 }
 0xafe   :  { %v2637_v7 = vadd.f32 %v5088_v3, %v4626_v0  ;;  %v5091_v11 = vadd.f32 %v5090_v5, %v5089_v4 }
 0xb00   :  { %v4643_v12 = vmul.f32 -1.442695, %v2637_v7  ;;  %v2640_v13 = vadd.f32 %v5091_v11, %v4626_v0 }
 0xb02   :  { %5910 = vpow2.f32 %v4643_v12  ;;  %v4644_v15 = vmul.f32 -1.442695, %v2640_v13  ;;  %v5092_v17 = vpop.f32.mrb[56].mxu1  ;;  %v5812_v13 = vld [vmem:[%s7399_s5 + $0x3c0] ss:$12 sps:$4 sm:$0xff]  }
 0xb03   :  { %v5093_v20 = vpop.f32.mrb[57].mxu1 }
 0xb04   :  { %5912 = vpow2.f32 %v4644_v15  ;;  %v5094_v21 = vadd.f32 %v5093_v20, %v5092_v17  ;;  %v5095_v22 = vpop.f32.mrb[58].mxu1  ;;  %v5818_v17 = vld [vmem:[%s7399_s5 + $0x3dc] ss:$12 sps:$4 sm:$0xff]   ;;  %v5819_v20 = vld [vmem:[%s7399_s5 + $0x3e0] ss:$12 sps:$4 sm:$0xff]  }
 0xb05   :  { %v5096_v23 = vpop.f32.mrb[59].mxu1 }
 0xb06   :  { %v2645_v24 = vadd.f32 %v5094_v21, %v4626_v0  ;;  %v5097_v26 = vadd.f32 %v5096_v23, %v5095_v22  ;;  %v5816_v21 = vld [vmem:[%s7399_s5 + $0x3d8] ss:$12 sps:$4 sm:$0xff]   ;;  %v5822_v22 = vld [vmem:[%s7399_s5 + $0x3f4] ss:$12 sps:$4 sm:$0xff]   ;;  %v5820_v23 = vld [vmem:[%s7399_s5 + $0x3f0] ss:$12 sps:$4 sm:$0xff]  }
 0xb08   :  { %v4645_v27 = vmul.f32 -1.442695, %v2645_v24  ;;  %v2648_v19 = vadd.f32 %v5097_v26, %v4626_v0  ;;  %v5823_v24 = vld [vmem:[%s7399_s5 + $0x3f8] ss:$12 sps:$4 sm:$0xff]  }
 0xb09   :  { %v5826_v26 = vld [vmem:[%s7399_s5 + $0x40c] ss:$12 sps:$4 sm:$0xff]  }
 0xb0a   :  { %5914 = vpow2.f32 %v4645_v27  ;;  %v4646_v28 = vmul.f32 -1.442695, %v2648_v19  ;;  %v5824_v27 = vld [vmem:[%s7399_s5 + $0x408] ss:$12 sps:$4 sm:$0xff]   ;;  %v5827_v19 = vld [vmem:[%s7399_s5 + $0x410] ss:$12 sps:$4 sm:$0xff]  }
 0xb0c   :  { %v5911_v29 = vpop.eup %5910  ;;  %5916 = vpow2.f32 %v4646_v28  ;;  %v5830_v28 = vld [vmem:[%s7399_s5 + $0x424] ss:$12 sps:$4 sm:$0xff]  }
 0xb0d   :  { %v2663_v32 = vadd.f32 1.0, %v5911_v29  ;;  %v5828_v29 = vld [vmem:[%s7399_s5 + $0x420] ss:$12 sps:$4 sm:$0xff]  }
 0xb0e   :  { %v5913_v33 = vpop.eup %5912 }
 0xb0f   :  { %5918 = vrcp.f32 %v2663_v32  ;;  %v2664_v18 = vadd.f32 1.0, %v5913_v33  ;;  %v5831_v32 = vld [vmem:[%s7399_s5 + $0x428] ss:$12 sps:$4 sm:$0xff]  }
 0xb10   :  { %v5834_v33 = vld [vmem:[%s7399_s5 + $0x43c] ss:$12 sps:$4 sm:$0xff]  }
 0xb11   :  { %5920 = vrcp.f32 %v2664_v18  ;;  %v5832_v18 = vld [vmem:[%s7399_s5 + $0x438] ss:$12 sps:$4 sm:$0xff]  }
 0xb14   :  { %v5915_v44 = vpop.eup %5914 }
 0xb15   :  { %v2665_v49 = vadd.f32 1.0, %v5915_v44  ;;  %v5835_v44 = vld [vmem:[%s7399_s5 + $0x440] ss:$12 sps:$4 sm:$0xff]  }
 0xb16   :  { %v5917_v46 = vpop.eup %5916 }
 0xb17   :  { %5922 = vrcp.f32 %v2665_v49  ;;  %v2666_v25 = vadd.f32 1.0, %v5917_v46  ;;  %v5838_v49 = vld [vmem:[%s7399_s5 + $0x454] ss:$12 sps:$4 sm:$0xff]   ;;  %v5836_v46 = vld [vmem:[%s7399_s5 + $0x450] ss:$12 sps:$4 sm:$0xff]  }
 0xb19   :  { %v5919_v8 = vpop.eup %5918  ;;  %5924 = vrcp.f32 %v2666_v25  ;;  %v5839_v25 = vld [vmem:[%s7399_s5 + $0x458] ss:$12 sps:$4 sm:$0xff]  }
 0xb1a   :  { %v2675_v9 = vmul.f32 %v5919_v8, %v6876_v37  ;;  %v5842_v8 = vld [vmem:[%s7399_s5 + $0x46c] ss:$12 sps:$4 sm:$0xff]  }
 0xb1b   :  { %v5921_v50 = vpop.eup %5920 }
 0xb1c   :  { %v2676_v6 = vmul.f32 %v5921_v50, %v6878_v51  ;;  %v2679_v10 = vadd.f32 %v2675_v9, %v6876_v37  ;;  %v5791_v37 = vld [vmem:[%s7399_s5 + $0x338] ss:$12 sps:$4 sm:$0xff]   ;;  %v5840_v9 = vld [vmem:[%s7399_s5 + $0x468] ss:$12 sps:$4 sm:$0xff]   ;;  %v5843_v50 = vld [vmem:[%s7399_s5 + $0x470] ss:$12 sps:$4 sm:$0xff]  }
 0xb1e   :  { %v2680_v53 = vadd.f32 %v2676_v6, %v6878_v51  ;;  %v5795_v51 = vld [vmem:[%s7399_s5 + $0x350] ss:$12 sps:$4 sm:$0xff]  }
 0xb20   :  { %v2700_v39 = vpack.c.bf16 %v2680_v53, %v2679_v10 }
 0xb21   :  { %v5923_v40 = vpop.eup %5922 }
 0xb22   :  { %5425 = vmatprep.mubr.bf16.mxu0 %v2700_v39  ;;  %v2677_v41 = vmul.f32 %v5923_v40, %v6884_v34 }
 0xb23   :  { %v5925_v42 = vpop.eup %5924 }
 0xb24   :  { %v2678_v43 = vmul.f32 %v5925_v42, %v6886_v47  ;;  %v2681_v45 = vadd.f32 %v2677_v41, %v6884_v34  ;;  %v5799_v34 = vld [vmem:[%s7399_s5 + $0x368] ss:$12 sps:$4 sm:$0xff]  }
 0xb26   :  { %v2682_v54 = vadd.f32 %v2678_v43, %v6886_v47  ;;  %v5803_v47 = vld [vmem:[%s7399_s5 + $0x380] ss:$12 sps:$4 sm:$0xff]  }
 0xb28   :  { %v2701_v30 = vpack.c.bf16 %v2682_v54, %v2681_v45 }
 0xb2a   :  { %5426 = vmatmul.mubr.bf16.vlgmr.msra.gmra.mrb[36].mxu0 %v2701_v30 }
 0xb2b   :  { %5430 = vmatpush3.bf16.msra.mxu0 %v6924_v55  ;;  %v5806_v55 = vld [vmem:[%s7399_s5 + $0x394] ss:$12 sps:$4 sm:$0xff]  }
 0xb2c   :  { %5431 = vmatprep.subr.bf16.mxu0 %v5787_v36  ;;  %2982 = vmatprep.subr.bf16.mxu1 %v5806_v55 }
 0xb2d   :  { %2983 = vmatpush1.bf16.msra.mxu1 %v5804_v52 }
 0xb2e   :  { %2984 = vmatprep.subr.bf16.mxu1 %v5810_v48 }
 0xb2f   :  { %5432 = vmatpush3.bf16.msra.mxu0 %v5787_v36 }
 0xb30   :  { %5433 = vmatprep.subr.bf16.mxu0 %v5791_v37 }
 0xb31   :  { %2985 = vmatpush1.bf16.msra.mxu1 %v5808_v56 }
 0xb32   :  { %3283 = vmatprep.subr.bf16.mxu1 %v5814_v59 }
 0xb33   :  { %5434 = vmatpush3.bf16.msra.mxu0 %v5791_v37 }
 0xb34   :  { %5435 = vmatprep.subr.bf16.mxu0 %v5795_v51 }
 0xb37   :  { %5436 = vmatpush3.bf16.msra.mxu0 %v5795_v51 }
 0xb38   :  { %5437 = vmatprep.subr.bf16.mxu0 %v5799_v34 }
 0xb3b   :  { %5438 = vmatpush3.bf16.msra.mxu0 %v5799_v34 }
 0xb3c   :  { %5439 = vmatprep.subr.bf16.mxu0 %v5803_v47 }
 0xb3f   :  { %5440 = vmatpush3.bf16.msra.mxu0 %v5803_v47 }
 0xb40   :  { %5441 = vmatprep.subr.bf16.mxu0 %v5807_v31 }
 0xb43   :  { %5442 = vmatpush3.bf16.msra.mxu0 %v5807_v31 }
 0xb44   :  { %5443 = vmatprep.subr.bf16.mxu0 %v5811_v57 }
 0xb47   :  { %5444 = vmatpush3.bf16.msra.mxu0 %v5811_v57 }
 0xb48   :  { %5449 = vmatprep.subr.bf16.mxu0 %v5815_v60 }
 0xbfd   :  { %v5427_v61 = vpop.f32.mrb[36].mxu0 }
 0xbfe   :  { %v2792_v0 = vpop.f32.mrb[37].mxu0  ;;  %v7017_v11 = vadd.f32 %v5427_v61, %v4664_v63 }
 0xbff   :  { %v5428_v1 = vpop.f32.mrb[38].mxu0  ;;  %v7013_v5 = vadd.f32 %v4664_v63, %v2792_v0 }
 0xc00   :  { %v7011_v3 = vadd.f32 %v5428_v1, %v4664_v63  ;;  %v2795_v4 = vpop.f32.mrb[39].mxu0 }
 0xc01   :  { %v7015_v7 = vadd.f32 %v4664_v63, %v2795_v4 }
 0xc02   :  { %v2841_v15 = vpack.c.bf16 %v7011_v3, %v7017_v11 }
 0xc03   :  { %v2840_v12 = vpack.c.bf16 %v7015_v7, %v7013_v5 }
 0xc05   :  { %3003 = vmatmul.mubr.bf16.vlgmr.msra.gmra.mrb[60].mxu1 %v2840_v12  ;;  %5445 = vmatprep.mubr.bf16.mxu0 %v2840_v12 }
 0xc06   :  { %5446 = vmatmul.mubr.bf16.vlgmr.msra.gmra.mrb[40].mxu0 %v2841_v15  ;;  %3012 = vmatprep.mubr.bf16.mxu1 %v5957_v38 }
 0xc07   :  { %3284 = vmatpush1.bf16.msra.mxu1 %v5812_v13  ;;  %5450 = vmatpush3.bf16.msra.mxu0 %v5815_v60 }
 0xc08   :  { %3285 = vmatprep.subr.bf16.mxu1 %v5818_v17  ;;  %5451 = vmatprep.subr.bf16.mxu0 %v5819_v20 }
 0xc0b   :  { %3286 = vmatpush1.bf16.msra.mxu1 %v5816_v21  ;;  %5452 = vmatpush3.bf16.msra.mxu0 %v5819_v20  ;;  %v4730_v20 = vld [vmem:[%s7405_s11 + $0x5] ss:$0 sm:$0xff] }
 0xc0c   :  { %3287 = vmatprep.subr.bf16.mxu1 %v5822_v22  ;;  %5453 = vmatprep.subr.bf16.mxu0 %v5823_v24 }
 0xc0d   :  { %3013 = vmatmul.mubr.bf16.gmra.mrb[64].mxu1 %v2841_v15 }
 0xc0e   :  { %3315 = vmatprep.mubr.bf16.mxu1 %v5957_v38 }
 0xc0f   :  { %3288 = vmatpush1.bf16.msra.mxu1 %v5820_v23  ;;  %5454 = vmatpush3.bf16.msra.mxu0 %v5823_v24 }
 0xc10   :  { %3289 = vmatprep.subr.bf16.mxu1 %v5826_v26  ;;  %5455 = vmatprep.subr.bf16.mxu0 %v5827_v19 }
 0xc13   :  { %3290 = vmatpush1.bf16.msra.mxu1 %v5824_v27  ;;  %5456 = vmatpush3.bf16.msra.mxu0 %v5827_v19 }
 0xc14   :  { %3291 = vmatprep.subr.bf16.mxu1 %v5830_v28  ;;  %5457 = vmatprep.subr.bf16.mxu0 %v5831_v32 }
 0xc17   :  { %3292 = vmatpush1.bf16.msra.mxu1 %v5828_v29  ;;  %5458 = vmatpush3.bf16.msra.mxu0 %v5831_v32 }
 0xc18   :  { %3293 = vmatprep.subr.bf16.mxu1 %v5834_v33  ;;  %5459 = vmatprep.subr.bf16.mxu0 %v5835_v44 }
 0xc1b   :  { %3294 = vmatpush1.bf16.msra.mxu1 %v5832_v18  ;;  %5460 = vmatpush3.bf16.msra.mxu0 %v5835_v44 }
 0xc1c   :  { %3295 = vmatprep.subr.bf16.mxu1 %v5838_v49  ;;  %5461 = vmatprep.subr.bf16.mxu0 %v5839_v25 }
 0xc1f   :  { %3296 = vmatpush1.bf16.msra.mxu1 %v5836_v46  ;;  %5462 = vmatpush3.bf16.msra.mxu0 %v5839_v25 }
 0xc20   :  { %3297 = vmatprep.subr.bf16.mxu1 %v5842_v8  ;;  %5463 = vmatprep.subr.bf16.mxu0 %v5843_v50  ;;  %v5844_v8 = vld [vmem:[%s7401_s7 + $0x80] sm:$0xff]  }
 0xc23   :  { %3298 = vmatpush1.bf16.msra.mxu1 %v5840_v9  ;;  %5464 = vmatpush3.bf16.msra.mxu0 %v5843_v50  ;;  %v5845_v50 = vld [vmem:[%s7401_s7 + $0x88] sm:$0xff]  }
 0xc24   :  { %5469 = vmatprep.subr.bf16.mxu1 %v5958_v14  ;;  %5489 = vmatprep.subr.bf16.mxu0 %v5958_v14 }
 0xcd8   :  { %v3004_v6 = vpop.f32.mrb[60].mxu1 }
 0xcd9   :  { %v3006_v10 = vpop.f32.mrb[61].mxu1  ;;  %v5447_v53 = vpop.f32.mrb[40].mxu0  ;;  %v3072_v41 = vrot.slane %v3004_v6, 7  ;;  %v5846_v6 = vld [vmem:[%s7401_s7 + $0x90] sm:$0xff]  }
 0xcda   :  { %v3008_v39 = vpop.f32.mrb[62].mxu1  ;;  %v3057_v40 = vpop.f32.mrb[41].mxu0  ;;  %v3090_v30 = vrot.slane %v5447_v53, 1  ;;  %v5849_v53 = vld [vmem:[%s7401_s7 + $0xa8] sm:$0xff]  }
 0xcdb   :  { %v3073_v42 = vrot.slane %v3008_v39, 7  ;;  %v3088_v43 = vrot.slane %v3057_v40, 1  ;;  %v3010_v45 = vpop.f32.mrb[63].mxu1  ;;  %v5448_v54 = vpop.f32.mrb[42].mxu0  ;;  %v5850_v39 = vld [vmem:[%s7401_s7 + $0xb0] sm:$0xff]   ;;  %v5851_v40 = vld [vmem:[%s7401_s7 + $0xb8] sm:$0xff]  }
 0xcdc   :  { %v3091_v36 = vrot.slane %v5448_v54, 1  ;;  %v3060_v37 = vpop.f32.mrb[43].mxu0  ;;  %v5853_v54 = vld [vmem:[%s7402_s8 + $0x88] sm:$0xff]  }
 0xcdd   :  { %v3078_v51 = vsel %vm514_vm0, %v3072_v41, %v3073_v42  ;;  %v3089_v34 = vrot.slane %v3060_v37, 1  ;;  %v5856_v37 = vld [vmem:[%s7402_s8 + $0xa0] sm:$0xff]  }
 0xcde   :  { %v3085_v47 = vadd.f32 %v3078_v51, %v3010_v45  ;;  %v3092_v55 = vsel %vm539_vm1, %v3090_v30, %v3091_v36  ;;  %v3095_v52 = vsel %vm539_vm1, %v3091_v36, %v3088_v43  ;;  %v5852_v45 = vld [vmem:[%s7402_s8 + $0x80] sm:$0xff]   ;;  %v5855_v36 = vld [vmem:[%s7402_s8 + $0x98] sm:$0xff]   ;;  %v5857_v51 = vld [vmem:[%s7402_s8 + $0xa8] sm:$0xff]  }
 0xcdf   :  { %v3093_v31 = vsel %vm539_vm1, %v3089_v34, %v3090_v30  ;;  %v3094_v48 = vsel %vm539_vm1, %v3088_v43, %v3089_v34  ;;  %v3099_v26 = vsel %vm6273_vm5, %v3095_v52, 0.0  ;;  %v5854_v30 = vld [vmem:[%s7402_s8 + $0x90] sm:$0xff]  }
 0xce0   :  { %v3097_v56 = vsel %vm6246_vm2, %v3093_v31, 0.0  ;;  %v3014_v57 = vpop.f32.mrb[64].mxu1  ;;  %v5858_v34 = vld [vmem:[%s7402_s8 + $0xb0] sm:$0xff]  }
 0xce1   :  { %v3101_v59 = vadd.f32 %v3097_v56, %v3085_v47  ;;  %v3074_v60 = vrot.slane %v3014_v57, 7  ;;  %v3016_v61 = vpop.f32.mrb[65].mxu1  ;;  %v5859_v47 = vld [vmem:[%s7402_s8 + $0xb8] sm:$0xff]   ;;  %s4939_s8 = sld [smem:[#allocation2 + $0x2]] }
 0xce2   :  { %v3018_v63 = vpop.f32.mrb[66].mxu1 }
 0xce3   :  { %v3077_v0 = vsel %vm514_vm0, %v3073_v42, %v3074_v60  ;;  %v3075_v1 = vrot.slane %v3018_v63, 7  ;;  %v3020_v4 = vpop.f32.mrb[67].mxu1  ;;  %v3113_v19 = vadd.f32 %v4730_v20, %v3101_v59  ;;  %v4790_v42 = vld [vmem:[%s7395_s1 + $0x28] sm:$0xff] }
 0xce4   :  { %v3082_v12 = vsel %vm6261_vm3, %v3077_v0, 0.0 }
 0xce5   :  { %v3086_v13 = vadd.f32 %v3082_v12, %v3016_v61  ;;  %v3079_v15 = vsel %vm514_vm0, %v3075_v1, %v3072_v41  ;;  %v3076_v17 = vsel %vm514_vm0, %v3074_v60, %v3075_v1  ;;  %v3117_v49 = vmax.f32 %v3113_v19, 0.0  ;;  %v4789_v41 = vld [vmem:[%s7395_s1 + $0x20] sm:$0xff] }
 0xce6   :  { %v3080_v21 = vsel %vm6267_vm4, %v3079_v15, 0.0  ;;  %v3087_v22 = vadd.f32 %v3076_v17, %v3020_v4  ;;  %v3457_v43 = vpack.c.bf16 %v4790_v42, %v4789_v41 }
 0xce7   :  { %v3102_v23 = vadd.f32 %v3092_v55, %v3086_v13  ;;  %v3084_v24 = vadd.f32 %v3080_v21, %v3006_v10  ;;  %v5847_v10 = vld [vmem:[%s7401_s7 + $0x98] sm:$0xff]  }
 0xce8   :  { %v3103_v27 = vadd.f32 %v3099_v26, %v3087_v22 }
 0xce9   :  { %v3114_v28 = vadd.f32 %v4730_v20, %v3102_v23  ;;  %v3100_v29 = vadd.f32 %v3094_v48, %v3084_v24 }
 0xcea   :  { %v3115_v32 = vadd.f32 %v4730_v20, %v3103_v27 }
 0xceb   :  { %v3118_v33 = vmax.f32 %v3114_v28, 0.0  ;;  %v3112_v18 = vadd.f32 %v4730_v20, %v3100_v29 }
 0xcec   :  { %v3119_v44 = vmax.f32 %v3115_v32, 0.0 }
 0xced   :  { %v3116_v46 = vmax.f32 %v3112_v18, 0.0 }
 0xcee   :  { %v3154_v25 = vpack.c.bf16 %v3119_v44, %v3118_v33 }
 0xcef   :  { %v3153_v9 = vpack.c.bf16 %v3117_v49, %v3116_v46 }
 0xcf1   :  { %3316 = vmatmul.mubr.bf16.vlgmr.msra.gmra.mrb[68].mxu1 %v3153_v9  ;;  %5465 = vmatprep.mubr.bf16.mxu0 %v3153_v9 }
 0xcf2   :  { %5470 = vmatpush3.bf16.msra.mxu1 %v5844_v8  ;;  %5466 = vmatmul.mubr.bf16.vlgmr.msra.gmra.mrb[44].mxu0 %v3154_v25 }
 0xcf3   :  { %5471 = vmatprep.subr.bf16.mxu1 %v5958_v14  ;;  %3325 = vmatprep.mubr.bf16.mxu1 %v5957_v38  ;;  %v5848_v38 = vld [vmem:[%s7401_s7 + $0xa0] sm:$0xff]  }
 0xcf4   :  { %5505 = vmatprep.mubr.msk.bf16.mxu0 %vm5959_vm6, %v5958_v14  ;;  %5490 = vmatpush3.bf16.msra.mxu0 %v5852_v45 }
 0xcf5   :  { %5491 = vmatprep.subr.bf16.mxu0 %v5958_v14 }
 0xcf6   :  { %5472 = vmatpush3.bf16.msra.mxu1 %v5845_v50 }
 0xcf7   :  { %5473 = vmatprep.subr.bf16.mxu1 %v5958_v14 }
 0xcf8   :  { %5492 = vmatpush3.bf16.msra.mxu0 %v5853_v54 }
 0xcf9   :  { %3326 = vmatmul.mubr.bf16.gmra.mrb[72].mxu1 %v3154_v25  ;;  %5493 = vmatprep.subr.bf16.mxu0 %v5958_v14 }
 0xcfa   :  { %5474 = vmatpush3.bf16.msra.mxu1 %v5846_v6  ;;  %5485 = vmatprep.mubr.msk.bf16.mxu1 %vm5959_vm6, %v5958_v14  ;;  %v4808_v6 = vld [vmem:[%s7405_s11 + $0xf] ss:$0 sm:$0xff] }
 0xcfb   :  { %5475 = vmatprep.subr.bf16.mxu1 %v5958_v14 }
 0xcfc   :  { %5494 = vmatpush3.bf16.msra.mxu0 %v5854_v30 }
 0xcfd   :  { %5495 = vmatprep.subr.bf16.mxu0 %v5958_v14 }
 0xcfe   :  { %5476 = vmatpush3.bf16.msra.mxu1 %v5847_v10 }
 0xcff   :  { %5477 = vmatprep.subr.bf16.mxu1 %v5958_v14 }
 0xd00   :  { %5496 = vmatpush3.bf16.msra.mxu0 %v5855_v36 }
 0xd01   :  { %5497 = vmatprep.subr.bf16.mxu0 %v5958_v14 }
 0xd02   :  { %5478 = vmatpush3.bf16.msra.mxu1 %v5848_v38 }
 0xd03   :  { %5479 = vmatprep.subr.bf16.mxu1 %v5958_v14 }
 0xd04   :  { %5498 = vmatpush3.bf16.msra.mxu0 %v5856_v37  ;;  %v5862_v37 = vld [vmem:[%s7400_s6 + $0x140] sm:$0xff]  }
 0xd05   :  { %5499 = vmatprep.subr.bf16.mxu0 %v5958_v14 }
 0xd06   :  { %5480 = vmatpush3.bf16.msra.mxu1 %v5849_v53 }
 0xd07   :  { %5481 = vmatprep.subr.bf16.mxu1 %v5958_v14 }
 0xd08   :  { %5500 = vmatpush3.bf16.msra.mxu0 %v5857_v51  ;;  %v5861_v51 = vld [vmem:[%s7403_s9 + $0x28] sm:$0xff]  }
 0xd09   :  { %5501 = vmatprep.subr.bf16.mxu0 %v5958_v14 }
 0xd0a   :  { %5482 = vmatpush3.bf16.msra.mxu1 %v5850_v39 }
 0xd0b   :  { %5483 = vmatprep.subr.bf16.mxu1 %v5958_v14 }
 0xd0c   :  { %5502 = vmatpush3.bf16.msra.mxu0 %v5858_v34  ;;  %v5863_v34 = vld [vmem:[%s7400_s6 + $0x100] sm:$0xff]  }
 0xd0d   :  { %5503 = vmatprep.subr.bf16.mxu0 %v5958_v14 }
 0xd0e   :  { %5484 = vmatpush3.bf16.msra.mxu1 %v5851_v40 }
 0xd10   :  { %5504 = vmatpush3.bf16.msra.mxu0 %v5859_v47  ;;  %v5864_v47 = vld [vmem:[%s7400_s6 + $0x148] sm:$0xff]  }
 0xd11   :  { %5486 = vmatmul.mubr.bf16.vlgmr.msra.gmra.mrb[76].mxu1 %v3457_v43 }
 0xd12   :  { %5511 = vmatprep.mubr.msk.bf16.mxu1 %vm1132_vm7, %v5860_v2 }
 0xdc4   :  { %v3317_v55 = vpop.f32.mrb[68].mxu1 }
 0xdc5   :  { %v3319_v52 = vpop.f32.mrb[69].mxu1  ;;  %v5467_v31 = vpop.f32.mrb[44].mxu0  ;;  %v3385_v57 = vrot.slane %v3317_v55, 7  ;;  %v5865_v55 = vld [vmem:[%s7400_s6 + $0x108] sm:$0xff]  }
 0xdc6   :  { %v3321_v48 = vpop.f32.mrb[70].mxu1  ;;  %v3370_v56 = vpop.f32.mrb[45].mxu0  ;;  %v3403_v0 = vrot.slane %v5467_v31, 1  ;;  %v5867_v31 = vld [vmem:[%s7400_s6 + $0x110] sm:$0xff]  }
 0xdc7   :  { %v3386_v59 = vrot.slane %v3321_v48, 7  ;;  %v3401_v60 = vrot.slane %v3370_v56, 1  ;;  %v3323_v61 = vpop.f32.mrb[71].mxu1  ;;  %v5468_v63 = vpop.f32.mrb[46].mxu0  ;;  %v5868_v48 = vld [vmem:[%s7400_s6 + $0x158] sm:$0xff]  }
 0xdc8   :  { %v3404_v1 = vrot.slane %v5468_v63, 1  ;;  %v3373_v4 = vpop.f32.mrb[47].mxu0  ;;  %v5869_v56 = vld [vmem:[%s7400_s6 + $0x118] sm:$0xff]   ;;  %v5874_v63 = vld [vmem:[%s7400_s6 + $0x170] sm:$0xff]  }
 0xdc9   :  { %v3391_v14 = vsel %vm514_vm0, %v3385_v57, %v3386_v59  ;;  %v3402_v12 = vrot.slane %v3373_v4, 1  ;;  %v5877_v4 = vld [vmem:[%s7400_s6 + $0x138] sm:$0xff]  }
 0xdca   :  { %v3398_v13 = vadd.f32 %v3391_v14, %v3323_v61  ;;  %v3405_v15 = vsel %vm539_vm1, %v3403_v0, %v3404_v1  ;;  %v3408_v17 = vsel %vm539_vm1, %v3404_v1, %v3401_v60  ;;  %v5873_v61 = vld [vmem:[%s7400_s6 + $0x128] sm:$0xff]   ;;  %v5876_v1 = vld [vmem:[%s7400_s6 + $0x178] sm:$0xff]   ;;  %v4788_v14 = vld [vmem:[%s7405_s11 + $0x6] ss:$0 sm:$0xff] }
 0xdcb   :  { %v3406_v20 = vsel %vm539_vm1, %v3402_v12, %v3403_v0  ;;  %v3407_v21 = vsel %vm539_vm1, %v3401_v60, %v3402_v12  ;;  %v3412_v9 = vsel %vm6273_vm5, %v3408_v17, 0.0  ;;  %v5872_v60 = vld [vmem:[%s7400_s6 + $0x168] sm:$0xff]   ;;  %v5875_v0 = vld [vmem:[%s7400_s6 + $0x130] sm:$0xff]  }
 0xdcc   :  { %v3410_v22 = vsel %vm6246_vm2, %v3406_v20, 0.0  ;;  %v3327_v23 = vpop.f32.mrb[72].mxu1 }
 0xdcd   :  { %v7205_v24 = vadd.f32 %v3410_v22, %v3398_v13  ;;  %v3387_v26 = vrot.slane %v3327_v23, 7  ;;  %v3329_v27 = vpop.f32.mrb[73].mxu1 }
 0xdce   :  { %v3331_v19 = vpop.f32.mrb[74].mxu1 }
 0xdcf   :  { %v3390_v28 = vsel %vm514_vm0, %v3386_v59, %v3387_v26  ;;  %v3388_v29 = vrot.slane %v3331_v19, 7  ;;  %v3333_v32 = vpop.f32.mrb[75].mxu1  ;;  %v5871_v59 = vld [vmem:[%s7400_s6 + $0x120] sm:$0xff]   ;;  %v3426_v13 = vadd.f32 %v4788_v14, %v7205_v24 }
 0xdd0   :  { %v3395_v33 = vsel %vm6261_vm3, %v3390_v28, 0.0 }
 0xdd1   :  { %v3399_v18 = vadd.f32 %v3395_v33, %v3329_v27  ;;  %v3392_v44 = vsel %vm514_vm0, %v3388_v29, %v3385_v57  ;;  %v3389_v35 = vsel %vm514_vm0, %v3387_v26, %v3388_v29  ;;  %v5870_v57 = vld [vmem:[%s7400_s6 + $0x160] sm:$0xff]   ;;  %v3430_v17 = vadd.f32 %v3426_v13, %v7015_v7 }
 0xdd2   :  { %v3393_v49 = vsel %vm6267_vm4, %v3392_v44, 0.0  ;;  %v3400_v46 = vadd.f32 %v3389_v35, %v3333_v32  ;;  %v5880_v35 = vld [vmem:[%s7398_s4 + $0xd0] sm:$0xff]  }
 0xdd3   :  { %v7217_v25 = vadd.f32 %v3405_v15, %v3399_v18  ;;  %v3397_v8 = vadd.f32 %v3393_v49, %v3319_v52  ;;  %v5866_v52 = vld [vmem:[%s7400_s6 + $0x150] sm:$0xff]   ;;  %v7292_v29 = vmax.f32 %v3430_v17, 0.0  ;;  %v5881_v49 = vld [vmem:[%s7398_s4 + $0xd8] sm:$0xff]  }
 0xdd4   :  { %v7221_v50 = vadd.f32 %v3412_v9, %v3400_v46  ;;  %v5882_v46 = vld [vmem:[%s7398_s4 + $0xe0] sm:$0xff]   ;;  %v5885_v9 = vld [vmem:[%s7398_s4 + $0xf8] sm:$0xff]  }
 0xdd5   :  { %v3413_v58 = vadd.f32 %v3407_v21, %v3397_v8  ;;  %v3427_v21 = vadd.f32 %v4788_v14, %v7217_v25  ;;  %v5883_v25 = vld [vmem:[%s7398_s4 + $0xe8] sm:$0xff]   ;;  %v5884_v8 = vld [vmem:[%s7398_s4 + $0xf0] sm:$0xff]  }
 0xdd6   :  { %v3428_v22 = vadd.f32 %v4788_v14, %v7221_v50  ;;  %v5886_v50 = vld [vmem:[%s7404_s10] sm:$0xff]  }
 0xdd7   :  { %v3425_v12 = vadd.f32 %v4788_v14, %v3413_v58  ;;  %v3431_v24 = vadd.f32 %v3427_v21, %v7017_v11  ;;  %v5878_v11 = vld [vmem:[%s7398_s4 + $0xc0] sm:$0xff]   ;;  %v5887_v58 = vld [vmem:[%s7404_s10 + $0x8] sm:$0xff]  }
 0xdd8   :  { %5515 = vmatprep.subr.bf16.mxu0 %v5878_v11 }
 0xdd9   :  { %v3429_v15 = vadd.f32 %v3425_v12, %v7013_v5  ;;  %v3432_v5 = vadd.f32 %v3428_v22, %v7011_v3  ;;  %v7298_v33 = vmax.f32 %v3431_v24, 0.0  ;;  %v5879_v3 = vld [vmem:[%s7398_s4 + $0xc8] sm:$0xff]  }
 0xddb   :  { %v7290_v26 = vmax.f32 %v3429_v15, 0.0  ;;  %v7300_v18 = vmax.f32 %v3432_v5, 0.0 }
 0xddd   :  { %v3768_v7 = vpack.c.bf16 %v7292_v29, %v7290_v26  ;;  %v3770_v44 = vpack.c.bf16 %v7300_v18, %v7298_v33 }
 0xde4   :  { %v3548_v10 = vpop.f32.mrb[76].mxu1 }
 0xde5   :  { %v3549_v16 = vadd.f32 %v4808_v6, %v3548_v10  ;;  %v5487_v38 = vpop.f32.mrb[77].mxu1  ;;  %v5889_v10 = vld [vmem:[%s7404_s10 + $0x18] sm:$0xff]  }
 0xde6   :  { %v3551_v53 = vpop.f32.mrb[78].mxu1  ;;  %v5891_v38 = vld [vmem:[%s7404_s10 + $0x28] sm:$0xff]  }
 0xde7   :  { %v3552_v62 = vadd.f32 %v4808_v6, %v3551_v53  ;;  %v5488_v39 = vpop.f32.mrb[79].mxu1  ;;  %v3555_v40 = vmax.f32 %v3549_v16, 0.0  ;;  %v5888_v6 = vld [vmem:[%s7404_s10 + $0x10] sm:$0xff]   ;;  %v5890_v16 = vld [vmem:[%s7404_s10 + $0x20] sm:$0xff]  }
 0xde9   :  { %v3556_v41 = vmax.f32 %v3552_v62, 0.0  ;;  %v4882_v62 = vld [vmem:[%s7405_s11 + $0x9] ss:$0 sm:$0xff] }
 0xdeb   :  { %v3579_v42 = vpack.c.bf16 %v3556_v41, %v3555_v40 }
 0xded   :  { %5506 = vmatmul.mubr.bf16.vlgmr.msra.gmra.mrb[48].mxu0 %v3579_v42 }
 0xdee   :  { %5516 = vmatpush3.bf16.msra.mxu0 %v5878_v11 }
 0xdef   :  { %5517 = vmatprep.subr.bf16.mxu0 %v5879_v3 }
 0xdf2   :  { %5518 = vmatpush3.bf16.msra.mxu0 %v5879_v3 }
 0xdf3   :  { %5519 = vmatprep.subr.bf16.mxu0 %v5880_v35 }
 0xdf6   :  { %5520 = vmatpush3.bf16.msra.mxu0 %v5880_v35 }
 0xdf7   :  { %5521 = vmatprep.subr.bf16.mxu0 %v5881_v49 }
 0xdfa   :  { %5522 = vmatpush3.bf16.msra.mxu0 %v5881_v49 }
 0xdfb   :  { %5523 = vmatprep.subr.bf16.mxu0 %v5882_v46 }
 0xdfe   :  { %5524 = vmatpush3.bf16.msra.mxu0 %v5882_v46 }
 0xdff   :  { %5525 = vmatprep.subr.bf16.mxu0 %v5883_v25 }
 0xe02   :  { %5526 = vmatpush3.bf16.msra.mxu0 %v5883_v25 }
 0xe03   :  { %5527 = vmatprep.subr.bf16.mxu0 %v5884_v8 }
 0xe06   :  { %5528 = vmatpush3.bf16.msra.mxu0 %v5884_v8  ;;  %v4100_v8 = vstv %s4929_s3 }
 0xe07   :  { %5529 = vmatprep.subr.bf16.mxu0 %v5885_v9 }
 0xe0a   :  { %5530 = vmatpush3.bf16.msra.mxu0 %v5885_v9 }
 0xec0   :  { %v3662_v43 = vpop.f32.mrb[48].mxu0 }
 0xec1   :  { %v5507_v45 = vpop.f32.mrb[49].mxu0 }
 0xec2   :  { %v3665_v54 = vpop.f32.mrb[50].mxu0 }
 0xec3   :  { %v3669_v30 = vpack.c.bf16 %v3665_v54, %v3662_v43  ;;  %v5508_v36 = vpop.f32.mrb[51].mxu0 }
 0xec5   :  { %5509 = vmatprep.subr.bf16.mxu1 %v3669_v30 }
 0xec6   :  { %5510 = vmatpush3.bf16.msra.mxu1 %v3669_v30 }
 0xec7   :  { %5149 = vmatprep.subr.bf16.mxu1 %v5862_v37 }
 0xec9   :  { %5512 = vmatmul.mubr.msk.bf16.vlgmr.msra.gmra.mrb[80].mxu1 %vm1132_vm7, %v5861_v51 }
 0xeca   :  { %5150 = vmatpush3.bf16.msra.mxu1 %v5863_v34 }
 0xecb   :  { %5151 = vmatprep.subr.bf16.mxu1 %v5864_v47 }
 0xece   :  { %5152 = vmatpush3.bf16.msra.mxu1 %v5865_v55 }
 0xecf   :  { %5153 = vmatprep.subr.bf16.mxu1 %v5866_v52 }
 0xed2   :  { %5154 = vmatpush3.bf16.msra.mxu1 %v5867_v31 }
 0xed3   :  { %5155 = vmatprep.subr.bf16.mxu1 %v5868_v48 }
 0xed6   :  { %5156 = vmatpush3.bf16.msra.mxu1 %v5869_v56 }
 0xed7   :  { %5157 = vmatprep.subr.bf16.mxu1 %v5870_v57 }
 0xeda   :  { %5158 = vmatpush3.bf16.msra.mxu1 %v5871_v59 }
 0xedb   :  { %5159 = vmatprep.subr.bf16.mxu1 %v5872_v60 }
 0xede   :  { %5160 = vmatpush3.bf16.msra.mxu1 %v5873_v61 }
 0xedf   :  { %5161 = vmatprep.subr.bf16.mxu1 %v5874_v63 }
 0xee2   :  { %5162 = vmatpush3.bf16.msra.mxu1 %v5875_v0 }
 0xee3   :  { %5163 = vmatprep.subr.bf16.mxu1 %v5876_v1 }
 0xee6   :  { %5164 = vmatpush3.bf16.msra.mxu1 %v5877_v4 }
 0xee7   :  { %5535 = vmatprep.subr.bf16.mxu1 %v5886_v50 }
 0xf9c   :  { %v5513_v20 = vpop.f32.mrb[80].mxu1 }
 0xf9d   :  { %v3720_v23 = vpop.f32.mrb[81].mxu1 }
 0xf9e   :  { %v5514_v27 = vpop.f32.mrb[82].mxu1 }
 0xf9f   :  { %v3771_v19 = vpack.c.bf16 %v5514_v27, %v5513_v20  ;;  %v3723_v28 = vpop.f32.mrb[83].mxu1 }
 0xfa0   :  { %v3769_v32 = vpack.c.bf16 %v3723_v28, %v3720_v23 }
 0xfa2   :  { %3908 = vmatprep.mubr.bf16.mxu1 %v3769_v32 }
 0xfa3   :  { %3909 = vmatmul.mubr.bf16.vlgmr.msra.gmra.mrb[84].mxu1 %v3768_v7  ;;  %v4920_v7 = vld [vmem:[%s7405_s11 + $0xc] ss:$0 sm:$0xff] }
 0xfa4   :  { %3916 = vmatprep.mubr.bf16.mxu1 %v3771_v19  ;;  %5536 = vmatpush3.bf16.msra.mxu1 %v5886_v50  ;;  %v4206_v50 = vld [vmem:[%s7396_s2 + $0x10] sm:$0xff] }
 0xfa5   :  { %5537 = vmatprep.subr.bf16.mxu1 %v5887_v58 }
 0xfa8   :  { %5538 = vmatpush3.bf16.msra.mxu1 %v5887_v58  ;;  %v4204_v58 = vld [vmem:[%s7396_s2] sm:$0xff] }
 0xfa9   :  { %5539 = vmatprep.subr.bf16.mxu1 %v5888_v6 }
 0xfab   :  { %3917 = vmatmul.mubr.bf16.gmra.mrb[88].mxu1 %v3770_v44 }
 0xfac   :  { %5540 = vmatpush3.bf16.msra.mxu1 %v5888_v6 }
 0xfad   :  { %5541 = vmatprep.subr.bf16.mxu1 %v5889_v10 }
 0xfb0   :  { %5542 = vmatpush3.bf16.msra.mxu1 %v5889_v10  ;;  %v4199_v10 = vstv %s4198_s30 }
 0xfb1   :  { %5543 = vmatprep.subr.bf16.mxu1 %v5890_v16 }
 0xfb4   :  { %5544 = vmatpush3.bf16.msra.mxu1 %v5890_v16  ;;  %v4207_v16 = vld [vmem:[%s7396_s2 + $0x18] sm:$0xff] }
 0xfb5   :  { %5545 = vmatprep.subr.bf16.mxu1 %v5891_v38 }
 0xfb8   :  { %5546 = vmatpush3.bf16.msra.mxu1 %v5891_v38 }
0x1076   :  { %v5165_v53 = vpop.f32.mrb[84].mxu1 }
0x1077   :  { %v5166_v39 = vpop.f32.mrb[85].mxu1 }
0x1078   :  { %v5167_v40 = vadd.f32 %v5166_v39, %v5165_v53  ;;  %v5168_v41 = vpop.f32.mrb[86].mxu1 }
0x1079   :  { %v5169_v42 = vpop.f32.mrb[87].mxu1 }
0x107a   :  { %v3911_v2 = vadd.f32 %v5167_v40, %v4882_v62  ;;  %v5170_v43 = vadd.f32 %v5169_v42, %v5168_v41 }
0x107c   :  { %v4899_v45 = vmul.f32 -1.442695, %v3911_v2  ;;  %v3914_v54 = vadd.f32 %v5170_v43, %v4882_v62 }
0x107e   :  { %5926 = vpow2.f32 %v4899_v45  ;;  %v4900_v30 = vmul.f32 -1.442695, %v3914_v54  ;;  %v5171_v36 = vpop.f32.mrb[88].mxu1 }
0x107f   :  { %v5172_v37 = vpop.f32.mrb[89].mxu1 }
0x1080   :  { %5928 = vpow2.f32 %v4900_v30  ;;  %v5173_v51 = vadd.f32 %v5172_v37, %v5171_v36  ;;  %v5174_v34 = vpop.f32.mrb[90].mxu1 }
0x1081   :  { %v5175_v47 = vpop.f32.mrb[91].mxu1 }
0x1082   :  { %v3919_v55 = vadd.f32 %v5173_v51, %v4882_v62  ;;  %v5176_v52 = vadd.f32 %v5175_v47, %v5174_v34  ;;  %v4219_v51 = vstv %s4939_s8 }
0x1084   :  { %v4901_v31 = vmul.f32 -1.442695, %v3919_v55  ;;  %v3922_v48 = vadd.f32 %v5176_v52, %v4882_v62  ;;  %v4205_v62 = vld [vmem:[%s7396_s2 + $0x8] sm:$0xff]  ;;  %s5960_s2 = smov 16  }
0x1086   :  { %5930 = vpow2.f32 %v4901_v31  ;;  %v4902_v56 = vmul.f32 -1.442695, %v3922_v48 }
0x1088   :  { %v5927_v57 = vpop.eup %5926  ;;  %5932 = vpow2.f32 %v4902_v56 }
0x1089   :  { %v3937_v59 = vadd.f32 1.0, %v5927_v57 }
0x108a   :  { %v5929_v60 = vpop.eup %5928 }
0x108b   :  { %5934 = vrcp.f32 %v3937_v59  ;;  %v3938_v61 = vadd.f32 1.0, %v5929_v60 }
0x108d   :  { %5936 = vrcp.f32 %v3938_v61 }
0x1090   :  { %v5931_v63 = vpop.eup %5930 }
0x1091   :  { %v3939_v0 = vadd.f32 1.0, %v5931_v63 }
0x1092   :  { %v5933_v1 = vpop.eup %5932 }
0x1093   :  { %5938 = vrcp.f32 %v3939_v0  ;;  %v3940_v4 = vadd.f32 1.0, %v5933_v1 }
0x1095   :  { %v5935_v14 = vpop.eup %5934  ;;  %5940 = vrcp.f32 %v3940_v4 }
0x1096   :  { %v3949_v12 = vmul.f32 %v5935_v14, %v7290_v26 }
0x1097   :  { %v5937_v13 = vpop.eup %5936 }
0x1098   :  { %v3950_v15 = vmul.f32 %v5937_v13, %v7292_v29  ;;  %v3953_v17 = vadd.f32 %v3949_v12, %v7290_v26  ;;  %v5892_v26 = vld [vmem:[%s7404_s10 + $0x30] sm:$0xff]  }
0x1099   :  { %5547 = vmatprep.subr.bf16.mxu1 %v5892_v26 }
0x109a   :  { %v3954_v20 = vadd.f32 %v3950_v15, %v7292_v29  ;;  %5548 = vmatpush3.bf16.msra.mxu1 %v5892_v26  ;;  %v5893_v29 = vld [vmem:[%s7404_s10 + $0x38] sm:$0xff]   ;;  %s4938_s10 = sld [smem:[#allocation2 + $0x1]] }
0x109b   :  { %5549 = vmatprep.subr.bf16.mxu1 %v5893_v29 }
0x109c   :  { %v3974_v21 = vpack.c.bf16 %v3954_v20, %v3953_v17 }
0x109d   :  { %v5939_v22 = vpop.eup %5938 }
0x109e   :  { %5531 = vmatprep.mubr.bf16.mxu0 %v3974_v21  ;;  %v3951_v23 = vmul.f32 %v5939_v22, %v7298_v33  ;;  %5550 = vmatpush3.bf16.msra.mxu1 %v5893_v29 }
0x109f   :  { %v5941_v27 = vpop.eup %5940 }
0x10a0   :  { %v3952_v19 = vmul.f32 %v5941_v27, %v7300_v18  ;;  %v3955_v28 = vadd.f32 %v3951_v23, %v7298_v33  ;;  %v4209_v9 = vstv %s4938_s10 }
0x10a1   :  { %v4212_v39 = vmul.f32 %v4209_v9, %v4206_v50  ;;  %v4210_v42 = vmul.f32 %v4209_v9, %v4204_v58  ;;  %v4213_v45 = vmul.f32 %v4209_v9, %v4207_v16  ;;  %v4211_v37 = vmul.f32 %v4209_v9, %v4205_v62 }
0x10a2   :  { %v3956_v32 = vadd.f32 %v3952_v19, %v7300_v18 }
0x10a4   :  { %v3975_v24 = vpack.c.bf16 %v3956_v32, %v3955_v28 }
0x10a6   :  { %5532 = vmatmul.mubr.bf16.vlgmr.msra.gmra.mrb[52].mxu0 %v3975_v24 }
0x1179   :  { %v5533_v5 = vpop.f32.mrb[52].mxu0 }
0x117a   :  { %v4066_v33 = vpop.f32.mrb[53].mxu0  ;;  %v4075_v44 = vadd.f32 %v5533_v5, %v4920_v7 }
0x117b   :  { %v5534_v18 = vpop.f32.mrb[54].mxu0  ;;  %v4067_v35 = vadd.f32 %v4920_v7, %v4066_v33 }
0x117c   :  { %v4078_v11 = vadd.f32 %v5534_v18, %v4920_v7  ;;  %v4069_v3 = vpop.f32.mrb[55].mxu0 }
0x117d   :  { %v4070_v49 = vadd.f32 %v4920_v7, %v4069_v3 }
0x117e   :  { %v4098_v46 = vpack.c.bf16 %v4078_v11, %v4075_v44 }
0x117f   :  { %v4097_v25 = vpack.c.bf16 %v4070_v49, %v4067_v35 }
0x1181   :  { %5551 = vmatprep.mubr.bf16.mxu1 %v4097_v25 }
0x1182   :  { %5552 = vmatmul.mubr.bf16.vlgmr.msra.gmra.mrb[92].mxu1 %v4098_v46 }
0x1255   :  { %v5553_v6 = vpop.f32.mrb[92].mxu1 }
0x1256   :  { %v4192_v38 = vadd.f32 %v5553_v6, %v4100_v8  ;;  %v4183_v53 = vpop.f32.mrb[93].mxu1 }
0x1257   :  { %v4184_v40 = vadd.f32 %v4183_v53, %v4100_v8  ;;  %v5554_v41 = vpop.f32.mrb[94].mxu1 }
0x1258   :  { %v4202_v2 = vmul.f32 %v4199_v10, %v4192_v38  ;;  %v4195_v43 = vadd.f32 %v5554_v41, %v4100_v8  ;;  %v4186_v54 = vpop.f32.mrb[95].mxu1 }
0x1259   :  { %v4200_v30 = vmul.f32 %v4199_v10, %v4184_v40  ;;  %v4187_v36 = vadd.f32 %v4186_v54, %v4100_v8 }
0x125a   :  { %v4203_v34 = vmul.f32 %v4199_v10, %v4195_v43  ;;  %v4216_v47 = vadd.f32 %v4212_v39, %v4202_v2 }
0x125b   :  { %v4201_v55 = vmul.f32 %v4199_v10, %v4187_v36  ;;  %v4214_v52 = vadd.f32 %v4210_v42, %v4200_v30 }
0x125c   :  { %v4217_v31 = vadd.f32 %v4213_v45, %v4203_v34  ;;  %v4222_v48 = vadd.f32 %v4219_v51, %v4216_v47 }
0x125d   :  { %v4215_v56 = vadd.f32 %v4211_v37, %v4201_v55  ;;  %v4220_v57 = vadd.f32 %v4219_v51, %v4214_v52 }
0x125e   :  { %4232 = vrot.lane.b32.xlu1 %v4222_v48, %s5960_s2  ;;  %v4223_v59 = vadd.f32 %v4219_v51, %v4217_v31 }
0x125f   :  { %4228 = vrot.lane.b32.xlu0 %v4220_v57, %s5960_s2  ;;  %v4221_v60 = vadd.f32 %v4219_v51, %v4215_v56 }
0x1262   :  { %4234 = vrot.lane.b32.xlu1 %v4223_v59, %s5960_s2 }
0x1263   :  { %4230 = vrot.lane.b32.xlu0 %v4221_v60, %s5960_s2 }
0x12d0   :  { %v4233_v61 = vpop.permute.xlu1 %4232 }
0x12d1   :  { %v4242_v63 = vsel %vm1132_vm7, %v4192_v38, %v4233_v61  ;;  %v4229_v0 = vpop.permute.xlu0 %4228 }
0x12d2   :  { %4247 = vst.msk [vmem:[%s7406_s12 + $0x10] sm:$0xff] %vm4244_vm8, %v4242_v63  ;;  %v4240_v1 = vsel %vm1132_vm7, %v4184_v40, %v4229_v0 }
0x12d3   :  { %4245 = vst.msk [vmem:[%s7406_s12] sm:$0xff] %vm4244_vm8, %v4240_v1 }
0x12d4   :  { %v4235_v4 = vpop.permute.xlu1 %4234 }
0x12d5   :  { %v4243_v14 = vsel %vm1132_vm7, %v4195_v43, %v4235_v4  ;;  %v4231_v12 = vpop.permute.xlu0 %4230 }
0x12d6   :  { %4248 = vst.msk [vmem:[%s7406_s12 + $0x18] sm:$0xff] %vm4244_vm8, %v4243_v14  ;;  %v4241_v13 = vsel %vm1132_vm7, %v4187_v36, %v4231_v12 }
0x12d7   :  { %4246 = vst.msk [vmem:[%s7406_s12 + $0x8] sm:$0xff] %vm4244_vm8, %v4241_v13 }
0x12d8   :  { %4253 = vsyncpa [#allocation3], 1 }

</bundles_post_ra>
